<compile_context>
chip_gen: v7x
topology: tpu7x:2x2x1
jax: 0.10.0
libtpu: 0.0.40
codegen_flags: <defaults>
</compile_context>

<pallas_src>
import jax
import jax.numpy as jnp
from jax import lax
from jax.experimental import pallas as pl
from jax.experimental.pallas import tpu as pltpu

EPS = 1e-5                       # PyTorch BatchNorm2d default
LANE = 128                       # TPU lane width
VMEM_LIMIT = 32 * 1024 * 1024    # explicit scoped-VMEM limit (safe on v5e / v6e / v7x)
VMEM_BUDGET = 16 * 1024 * 1024   # tile-sizing budget (headroom below the limit)


def _round_up(x, m):
    return (x + m - 1) // m * m


# ----------------------------------------------------------------------------- Pallas kernels ----

def _tile_stats(y):
    """Pack per-channel sum (row 0) and sum-of-squares (row 1) of a (tm, N) f32 tile into (8, N)."""
    s = jnp.sum(y, axis=0, keepdims=True)
    ss = jnp.sum(y * y, axis=0, keepdims=True)
    pad = jnp.zeros((6, y.shape[1]), jnp.float32)
    return jnp.concatenate([s, ss, pad], axis=0)


def _make_matmul_stats_kernel(n_mats):
    """bf16 MXU matmul(s) of one patch tile against n_mats weight matrices + BN stat partials."""
    def kernel(*refs):
        x_ref = refs[0]
        w_refs = refs[1:1 + n_mats]
        y_refs = refs[1 + n_mats:1 + 2 * n_mats]
        s_refs = refs[1 + 2 * n_mats:]
        x = x_ref[...]                                              # (tm, Kp) bf16
        for w_ref, y_ref, s_ref in zip(w_refs, y_refs, s_refs):
            y = jnp.dot(x, w_ref[...], preferred_element_type=jnp.float32)   # MXU, f32 acc
            y_ref[...] = y
            s_ref[...] = _tile_stats(y)
    return kernel


def _affine_relu_kernel(y_ref, a_ref, b_ref, o_ref):
    o = y_ref[...] * a_ref[...] + b_ref[...]
    o_ref[...] = jnp.maximum(o, 0.0).astype(o_ref.dtype)


def _affine_add_relu_kernel(y_ref, r_ref, a_ref, b_ref, ar_ref, br_ref, o_ref):
    o = (y_ref[...] * a_ref[...] + b_ref[...]) + (r_ref[...] * ar_ref[...] + br_ref[...])
    o_ref[...] = jnp.maximum(o, 0.0).astype(o_ref.dtype)


# --------------------------------------------------------------------------- pallas_call glue ----

def _compiler_params():
    return pltpu.CompilerParams(dimension_semantics=("parallel",),
                                vmem_limit_bytes=VMEM_LIMIT)


def _conv_matmul_stats(patches, weights, tm):
    """patches: (Mp, Kp) bf16; weights: list of (Kp, Np) bf16.
    Returns ([y_i (Mp, Np) f32], [stats_i (G*8, Np) f32]); rows 0/1 of each 8-row stats slab hold
    the per-tile channel sum / sum-of-squares (zero rows from M/K padding contribute exactly 0)."""
    Mp, Kp = patches.shape
    Np = weights[0].shape[1]
    G = Mp // tm
    nm = len(weights)

    out_shape = tuple([jax.ShapeDtypeStruct((Mp, Np), jnp.float32)] * nm
                      + [jax.ShapeDtypeStruct((G * 8, Np), jnp.float32)] * nm)
    in_specs = ([pl.BlockSpec((tm, Kp), lambda i: (i, 0))]
                + [pl.BlockSpec((Kp, Np), lambda i: (0, 0))] * nm)     # weights stay VMEM-resident
    out_specs = tuple([pl.BlockSpec((tm, Np), lambda i: (i, 0))] * nm
                      + [pl.BlockSpec((8, Np), lambda i: (i, 0))] * nm)

    cost = pl.CostEstimate(
        flops=2 * Mp * Kp * Np * nm,
        transcendentals=0,
        bytes_accessed=Mp * Kp * 2 + nm * (Kp * Np * 2 + Mp * Np * 4 + G * 8 * Np * 4))

    outs = pl.pallas_call(
        _make_matmul_stats_kernel(nm),
        grid=(G,),
        out_shape=out_shape,
        in_specs=in_specs,
        out_specs=out_specs,
        compiler_params=_compiler_params(),
        cost_estimate=cost,
    )(patches, *weights)
    return list(outs[:nm]), list(outs[nm:])


def _affine_relu(y, a, b, tm, out_dtype):
    Mp, Np = y.shape
    G = Mp // tm
    return pl.pallas_call(
        _affine_relu_kernel,
        grid=(G,),
        out_shape=jax.ShapeDtypeStruct((Mp, Np), out_dtype),
        in_specs=[pl.BlockSpec((tm, Np), lambda i: (i, 0)),
                  pl.BlockSpec((1, Np), lambda i: (0, 0)),
                  pl.BlockSpec((1, Np), lambda i: (0, 0))],
        out_specs=pl.BlockSpec((tm, Np), lambda i: (i, 0)),
        compiler_params=_compiler_params(),
    )(y, a, b)


def _affine_add_relu(y, r, a, b, ar, br, tm):
    Mp, Np = y.shape
    G = Mp // tm
    return pl.pallas_call(
        _affine_add_relu_kernel,
        grid=(G,),
        out_shape=jax.ShapeDtypeStruct((Mp, Np), jnp.float32),
        in_specs=[pl.BlockSpec((tm, Np), lambda i: (i, 0)),
                  pl.BlockSpec((tm, Np), lambda i: (i, 0)),
                  pl.BlockSpec((1, Np), lambda i: (0, 0)),
                  pl.BlockSpec((1, Np), lambda i: (0, 0)),
                  pl.BlockSpec((1, Np), lambda i: (0, 0)),
                  pl.BlockSpec((1, Np), lambda i: (0, 0))],
        out_specs=pl.BlockSpec((tm, Np), lambda i: (i, 0)),
        compiler_params=_compiler_params(),
    )(y, r, a, b, ar, br)


# ---------------------------------------------------------------------------------- JAX glue ----

def _pick_tm(m, k_max, n):
    """Largest row-tile whose double-buffered VMEM footprint fits the budget (v7x-safe)."""
    m8 = _round_up(max(m, 8), 8)
    for tm in (1024, 512, 256, 128, 64, 32, 16, 8):
        if tm > m8:
            continue
        need = (2 * tm * k_max * 2          # bf16 patch tile, double-buffered
                + 2 * 2 * tm * n * 4        # up to two f32 output tiles, double-buffered
                + 2 * 2 * k_max * n * 2)    # up to two resident bf16 weight matrices
        if need <= VMEM_BUDGET:
            return tm
    return 8


def _pad2d(a, rows, cols):
    r, c = a.shape
    if r == rows and c == cols:
        return a
    return jnp.pad(a, ((0, rows - r), (0, cols - c)))


def _bn_affine(stats, count, gamma, beta, Np):
    """Fold train-mode BatchNorm (biased variance, eps=1e-5) into per-channel y*a + b (f32)."""
    st = stats.reshape(-1, 8, Np)
    s = jnp.sum(st[:, 0, :], axis=0)
    ss = jnp.sum(st[:, 1, :], axis=0)
    mean = s / count
    var = jnp.maximum(ss / count - mean * mean, 0.0)   # f32 accumulators throughout
    inv = lax.rsqrt(var + EPS)
    g = jnp.pad(gamma, (0, Np - gamma.shape[0]))       # zero-pad -> padded channels map to 0
    b = jnp.pad(beta, (0, Np - beta.shape[0]))
    a = g * inv
    sh = b - mean * a
    return a.reshape(1, Np), sh.reshape(1, Np)


def _im2col_3x3(x_nhwc, stride):
    """3x3, padding=1 im2col.  Returns (B*Ho*Wo, 9*C) and (B, Ho, Wo)."""
    B, H, W, C = x_nhwc.shape
    xp = jnp.pad(x_nhwc, ((0, 0), (1, 1), (1, 1), (0, 0)))
    Ho = (H + 2 - 3) // stride + 1
    Wo = (W + 2 - 3) // stride + 1
    cols = []
    for ky in range(3):
        for kx in range(3):
            cols.append(xp[:, ky:ky + stride * Ho:stride, kx:kx + stride * Wo:stride, :])
    patches = jnp.concatenate(cols, axis=-1)           # (B, Ho, Wo, 9*C)
    return patches.reshape(B * Ho * Wo, 9 * C), (B, Ho, Wo)


def _upsample_nearest(x_nhwc, s):
    return jnp.repeat(jnp.repeat(x_nhwc, s, axis=1), s, axis=2)


def init_params(key, inplanes, planes, scale_factor):
    ks = jax.random.split(key, 10)
    params = {
        "w1": jax.random.normal(ks[0], (3, 3, inplanes, planes), jnp.float32) * (2.0 / (9 * inplanes)) ** 0.5,
        "w2": jax.random.normal(ks[1], (3, 3, planes, planes), jnp.float32) * (2.0 / (9 * planes)) ** 0.5,
        "g1": 1.0 + 0.1 * jax.random.normal(ks[2], (planes,), jnp.float32),
        "b1": 0.1 * jax.random.normal(ks[3], (planes,), jnp.float32),
        "g2": 1.0 + 0.1 * jax.random.normal(ks[4], (planes,), jnp.float32),
        "b2": 0.1 * jax.random.normal(ks[5], (planes,), jnp.float32),
    }
    if scale_factor != 1:
        params["wr"] = jax.random.normal(ks[6], (inplanes, planes), jnp.float32) * (1.0 / inplanes) ** 0.5
        params["gr"] = 1.0 + 0.1 * jax.random.normal(ks[7], (planes,), jnp.float32)
        params["br"] = 0.1 * jax.random.normal(ks[8], (planes,), jnp.float32)
    return params


def basic_block_forward(x_nchw, params, scale_factor):
    """Pallas implementation of BasicBlockUpDownScale.forward (train-mode BN)."""
    x = jnp.transpose(x_nchw.astype(jnp.float32), (0, 2, 3, 1))     # -> NHWC
    B, H, W, Cin = x.shape
    planes = params["w1"].shape[-1]
    Np = _round_up(planes, LANE)
    has_rescaler = scale_factor != 1

    # ---- conv1 input patches (host-side im2col; see TODO(synk) above) ----
    if scale_factor < 1:
        stride = int(round(1 / scale_factor))
        patches_raw, (B, Ho, Wo) = _im2col_3x3(x, stride)
    elif scale_factor == 1:
        assert Cin == planes, "identity residual requires inplanes == planes"
        patches_raw, (B, Ho, Wo) = _im2col_3x3(x, 1)
    else:
        s = int(round(scale_factor))
        xu = _upsample_nearest(x, s)
        patches_raw, (B, Ho, Wo) = _im2col_3x3(xu, 1)

    M = B * Ho * Wo
    K1 = 9 * Cin
    Kp1 = _round_up(K1, LANE)
    Kp2 = 9 * Np                                                     # already lane-aligned
    tm = _pick_tm(M, max(Kp1, Kp2), Np)
    Mp = _round_up(M, tm)

    patches1 = _pad2d(patches_raw, Mp, Kp1).astype(jnp.bfloat16)

    # conv1 weight (HWIO -> (9*Cin, planes)), zero-padded to (Kp1, Np), bf16
    w1 = _pad2d(params["w1"].reshape(K1, planes), Kp1, Np).astype(jnp.bfloat16)
    weights = [w1]
    if has_rescaler:
        # 1x1 rescaler weight embedded at the centre-tap rows (tap ky=1,kx=1) of the 3x3 patch
        # layout: the centre tap of the stride-s, pad-1 patches is exactly x[::s, ::s] / xu.
        wr = jnp.zeros((K1, planes), jnp.float32).at[4 * Cin:5 * Cin].set(params["wr"])
        weights.append(_pad2d(wr, Kp1, Np).astype(jnp.bfloat16))

    # ---- pass 1: conv1 (+ fused residual 1x1) matmul + BN stat partials ----
    ys, stats = _conv_matmul_stats(patches1, weights, tm)
    y1 = ys[0]
    a1, b1 = _bn_affine(stats[0], M, params["g1"], params["b1"], Np)

    # ---- pass 2: bn1 + relu (stored lane-dense bf16, padded channels are exact zeros) ----
    out1 = _affine_relu(y1, a1, b1, tm, jnp.bfloat16)                # (Mp, Np) bf16

    if has_rescaler:
        yr = ys[1]                                                   # raw 1x1-conv output, f32
        ar, br = _bn_affine(stats[1], M, params["gr"], params["br"], Np)
    else:
        yr = _pad2d(x.reshape(M, Cin), Mp, Np)                       # identity residual, f32
        ar = jnp.ones((1, Np), jnp.float32)
        br = jnp.zeros((1, Np), jnp.float32)

    # ---- conv2 ----
    out1_img = out1[:M].reshape(B, Ho, Wo, Np)
    p2, _ = _im2col_3x3(out1_img, 1)                                 # (M, 9*Np) bf16
    patches2 = jnp.pad(p2, ((0, Mp - M), (0, 0)))

    w2 = params["w2"].reshape(9, planes, planes)
    w2p = (jnp.zeros((9, Np, Np), jnp.float32)
           .at[:, :planes, :planes].set(w2)
           .reshape(Kp2, Np).astype(jnp.bfloat16))

    (y2,), (s2,) = _conv_matmul_stats(patches2, [w2p], tm)
    a2, b2 = _bn_affine(s2, M, params["g2"], params["b2"], Np)

    # ---- pass 2: bn2 + residual add (residual BN folded into per-channel affine) + relu ----
    out = _affine_add_relu(y2, yr, a2, b2, ar, br, tm)               # (Mp, Np) f32

    out = out[:M, :planes].reshape(B, Ho, Wo, planes)
    return jnp.transpose(out, (0, 3, 1, 2))                          # -> NCHW


# ------------------------------------------------------------------------- pure-JAX reference ----

def _ref_bn(y_nhwc, g, b):
    mean = jnp.mean(y_nhwc, axis=(0, 1, 2), keepdims=True)
    var = jnp.mean((y_nhwc - mean) ** 2, axis=(0, 1, 2), keepdims=True)
    return g * (y_nhwc - mean) * lax.rsqrt(var + EPS) + b


def _ref_conv(x_nhwc, w_hwio, stride, pad):
    # Same numerics as the Pallas path: bf16 operands, f32 accumulation on the MXU.
    return lax.conv_general_dilated(
        x_nhwc.astype(jnp.bfloat16), w_hwio.astype(jnp.bfloat16),
        (stride, stride), [(pad, pad), (pad, pad)],
        dimension_numbers=("NHWC", "HWIO", "NHWC"),
        preferred_element_type=jnp.float32)


def reference_forward(x_nchw, params, scale_factor):
    x = jnp.transpose(x_nchw.astype(jnp.float32), (0, 2, 3, 1))
    if scale_factor < 1:
        stride = int(round(1 / scale_factor))
        out = _ref_conv(x, params["w1"], stride, 1)
        residual = _ref_bn(_ref_conv(x, params["wr"].reshape(1, 1, *params["wr"].shape), stride, 0),
                           params["gr"], params["br"])
    elif scale_factor == 1:
        out = _ref_conv(x, params["w1"], 1, 1)
        residual = x
    else:
        s = int(round(scale_factor))
        xu = _upsample_nearest(x, s)
        out = _ref_conv(xu, params["w1"], 1, 1)
        residual = _ref_bn(_ref_conv(xu, params["wr"].reshape(1, 1, *params["wr"].shape), 1, 0),
                           params["gr"], params["br"])
    out = jnp.maximum(_ref_bn(out, params["g1"], params["b1"]), 0.0)
    out = _ref_bn(_ref_conv(out, params["w2"], 1, 1), params["g2"], params["b2"])
    out = jnp.maximum(out + residual, 0.0)
    return jnp.transpose(out, (0, 3, 1, 2))


# -------------------------------------------------------------------------------------- main ----

if __name__ == "__main__":
    key = jax.random.PRNGKey(0)
    kx, kp = jax.random.split(key)
    x = jax.random.normal(kx, (2, 4, 16, 16), jnp.float32)           # NCHW, like the PyTorch module

    configs = [
        # (inplanes, planes, scale_factor, expected spatial)
        (4, 4, 1, 16),     # plain residual block (identity residual)
        (4, 8, 0.5, 8),    # downscale: conv3x3 s2 + conv1x1 s2 + BN rescaler
        (4, 8, 2, 32),     # upscale: nearest x2 + conv3x3, nearest x2 + conv1x1 + BN rescaler
    ]

    fwd = jax.jit(basic_block_forward, static_argnums=(2,))
    ref_fwd = jax.jit(reference_forward, static_argnums=(2,))

    for inplanes, planes, sf, hw in configs:
        params = init_params(kp, inplanes, planes, sf)
        out = jax.block_until_ready(fwd(x, params, sf))
        assert out.shape == (2, planes, hw, hw), (sf, out.shape)
        ref = jax.block_until_ready(ref_fwd(x, params, sf))
        assert bool(jnp.all(jnp.isfinite(out)))
        err = float(jnp.max(jnp.abs(out - ref)))
        # bf16 MXU matmuls with f32 accumulation on both sides -> expected diff O(1e-4).
        assert jnp.allclose(out, ref, rtol=2e-2, atol=2e-2), (sf, err)

    print("KERNEL_OK")
</pallas_src>

<mosaic_0001>
module attributes {stable_mosaic.version = 11 : i64} {
  func.func @kernel(%arg0: i32, %arg1: memref<512x128xbf16, #tpu.memory_space<vmem>>, %arg2: memref<128x128xbf16, #tpu.memory_space<vmem>>, %arg3: memref<512x128xf32, #tpu.memory_space<vmem>>, %arg4: memref<8x128xf32, #tpu.memory_space<vmem>>) attributes {dimension_semantics = [#tpu.dimension_semantics<parallel>], iteration_bounds = array<i64: 1>, scalar_prefetch = 0 : i64, scratch_operands = 0 : i64, tpu.core_type = #tpu.core_type<tc>, window_params = [{transform_indices = @transform_0, window_bounds = array<i64: 512, 128>}, {pipeline_mode = #tpu.pipeline_mode<synchronous>, transform_indices = @transform_1, window_bounds = array<i64: 128, 128>}, {transform_indices = @transform_2, window_bounds = array<i64: 512, 128>}, {transform_indices = @transform_3, window_bounds = array<i64: 8, 128>}]} {
    %c0 = arith.constant 0 : index
    %c0_0 = arith.constant 0 : index
    %0 = vector.load %arg1[%c0, %c0_0] : memref<512x128xbf16, #tpu.memory_space<vmem>>, vector<512x128xbf16>
    %c0_1 = arith.constant 0 : index
    %c0_2 = arith.constant 0 : index
    %1 = vector.load %arg2[%c0_1, %c0_2] : memref<128x128xbf16, #tpu.memory_space<vmem>>, vector<128x128xbf16>
    %cst = arith.constant dense<0.000000e+00> : vector<512x128xf32>
    %2 = tpu.matmul %0, %1, %cst {dimension_numbers = #tpu.dot_dimension_numbers<[1], [0], [0], [1], [0, 0, 1, 1], [], []>} : vector<512x128xbf16>, vector<128x128xbf16>, vector<512x128xf32> -> vector<512x128xf32>
    %c0_3 = arith.constant 0 : index
    %c0_4 = arith.constant 0 : index
    %3 = vector.load %arg3[%c0_3, %c0_4] : memref<512x128xf32, #tpu.memory_space<vmem>>, vector<512x128xf32>
    tpu.vector_store %arg3[%c0_3, %c0_4], %2 {strides = array<i32>} : memref<512x128xf32, #tpu.memory_space<vmem>>, vector<512x128xf32>,
    %cst_5 = arith.constant dense<0.000000e+00> : vector<128xf32>
    %4 = vector.multi_reduction <add>, %2, %cst_5 [0] : vector<512x128xf32> to vector<128xf32>
    %5 = vector.shape_cast %4 : vector<128xf32> to vector<1x128xf32>
    %6 = arith.mulf %2, %2 : vector<512x128xf32>
    %cst_6 = arith.constant dense<0.000000e+00> : vector<128xf32>
    %7 = vector.multi_reduction <add>, %6, %cst_6 [0] : vector<512x128xf32> to vector<128xf32>
    %8 = vector.shape_cast %7 : vector<128xf32> to vector<1x128xf32>
    %cst_7 = arith.constant 0.000000e+00 : f32
    %9 = vector.broadcast %cst_7 : f32 to vector<6x128xf32>
    %10 = tpu.concatenate %5, %8, %9 in 0 : vector<1x128xf32>, vector<1x128xf32>, vector<6x128xf32> -> vector<8x128xf32>
    %c0_8 = arith.constant 0 : index
    %c0_9 = arith.constant 0 : index
    %11 = vector.load %arg4[%c0_8, %c0_9] : memref<8x128xf32, #tpu.memory_space<vmem>>, vector<8x128xf32>
    tpu.vector_store %arg4[%c0_8, %c0_9], %10 {strides = array<i32>} : memref<8x128xf32, #tpu.memory_space<vmem>>, vector<8x128xf32>,
    return
  }
  func.func @transform_0(%arg0: i32) -> (i32, i32) {
    %c0_i32 = arith.constant 0 : i32
    %c0_i32_0 = arith.constant 0 : i32
    return %arg0, %c0_i32 : i32, i32
  }
  func.func @transform_1(%arg0: i32) -> (i32, i32) {
    %c0_i32 = arith.constant 0 : i32
    %c0_i32_0 = arith.constant 0 : i32
    %c0_i32_1 = arith.constant 0 : i32
    return %c0_i32, %c0_i32_0 : i32, i32
  }
  func.func @transform_2(%arg0: i32) -> (i32, i32) {
    %c0_i32 = arith.constant 0 : i32
    %c0_i32_0 = arith.constant 0 : i32
    return %arg0, %c0_i32 : i32, i32
  }
  func.func @transform_3(%arg0: i32) -> (i32, i32) {
    %c0_i32 = arith.constant 0 : i32
    %c0_i32_0 = arith.constant 0 : i32
    return %arg0, %c0_i32 : i32, i32
  }
}

module attributes {stable_mosaic.version = 11 : i64} {
  func.func @_affine_relu_kernel(%arg0: i32, %arg1: memref<512x128xf32, #tpu.memory_space<vmem>>, %arg2: memref<1x128xf32, #tpu.memory_space<vmem>>, %arg3: memref<1x128xf32, #tpu.memory_space<vmem>>, %arg4: memref<512x128xbf16, #tpu.memory_space<vmem>>) attributes {dimension_semantics = [#tpu.dimension_semantics<parallel>], iteration_bounds = array<i64: 1>, scalar_prefetch = 0 : i64, scratch_operands = 0 : i64, tpu.core_type = #tpu.core_type<tc>, window_params = [{transform_indices = @transform_0, window_bounds = array<i64: 512, 128>}, {pipeline_mode = #tpu.pipeline_mode<synchronous>, transform_indices = @transform_1, window_bounds = array<i64: 1, 128>}, {pipeline_mode = #tpu.pipeline_mode<synchronous>, transform_indices = @transform_2, window_bounds = array<i64: 1, 128>}, {transform_indices = @transform_3, window_bounds = array<i64: 512, 128>}]} {
    %c0 = arith.constant 0 : index
    %c0_0 = arith.constant 0 : index
    %0 = vector.load %arg1[%c0, %c0_0] : memref<512x128xf32, #tpu.memory_space<vmem>>, vector<512x128xf32>
    %c0_1 = arith.constant 0 : index
    %c0_2 = arith.constant 0 : index
    %1 = vector.load %arg2[%c0_1, %c0_2] : memref<1x128xf32, #tpu.memory_space<vmem>>, vector<1x128xf32>
    %2 = vector.broadcast %1 : vector<1x128xf32> to vector<512x128xf32>
    %3 = arith.mulf %0, %2 : vector<512x128xf32>
    %c0_3 = arith.constant 0 : index
    %c0_4 = arith.constant 0 : index
    %4 = vector.load %arg3[%c0_3, %c0_4] : memref<1x128xf32, #tpu.memory_space<vmem>>, vector<1x128xf32>
    %5 = vector.broadcast %4 : vector<1x128xf32> to vector<512x128xf32>
    %6 = arith.addf %3, %5 : vector<512x128xf32>
    %cst = arith.constant 0.000000e+00 : f32
    %7 = vector.broadcast %cst : f32 to vector<512x128xf32>
    %8 = arith.maximumf %6, %7 : vector<512x128xf32>
    %9 = arith.truncf %8 : vector<512x128xf32> to vector<512x128xbf16>
    %c0_5 = arith.constant 0 : index
    %c0_6 = arith.constant 0 : index
    %10 = vector.load %arg4[%c0_5, %c0_6] : memref<512x128xbf16, #tpu.memory_space<vmem>>, vector<512x128xbf16>
    tpu.vector_store %arg4[%c0_5, %c0_6], %9 {strides = array<i32>} : memref<512x128xbf16, #tpu.memory_space<vmem>>, vector<512x128xbf16>,
    return
  }
  func.func @transform_0(%arg0: i32) -> (i32, i32) {
    %c0_i32 = arith.constant 0 : i32
    %c0_i32_0 = arith.constant 0 : i32
    return %arg0, %c0_i32 : i32, i32
  }
  func.func @transform_1(%arg0: i32) -> (i32, i32) {
    %c0_i32 = arith.constant 0 : i32
    %c0_i32_0 = arith.constant 0 : i32
    %c0_i32_1 = arith.constant 0 : i32
    return %c0_i32, %c0_i32_0 : i32, i32
  }
  func.func @transform_2(%arg0: i32) -> (i32, i32) {
    %c0_i32 = arith.constant 0 : i32
    %c0_i32_0 = arith.constant 0 : i32
    %c0_i32_1 = arith.constant 0 : i32
    return %c0_i32, %c0_i32_0 : i32, i32
  }
  func.func @transform_3(%arg0: i32) -> (i32, i32) {
    %c0_i32 = arith.constant 0 : i32
    %c0_i32_0 = arith.constant 0 : i32
    return %arg0, %c0_i32 : i32, i32
  }
}

module attributes {stable_mosaic.version = 11 : i64} {
  func.func @kernel(%arg0: i32, %arg1: memref<512x1152xbf16, #tpu.memory_space<vmem>>, %arg2: memref<1152x128xbf16, #tpu.memory_space<vmem>>, %arg3: memref<512x128xf32, #tpu.memory_space<vmem>>, %arg4: memref<8x128xf32, #tpu.memory_space<vmem>>) attributes {dimension_semantics = [#tpu.dimension_semantics<parallel>], iteration_bounds = array<i64: 1>, scalar_prefetch = 0 : i64, scratch_operands = 0 : i64, tpu.core_type = #tpu.core_type<tc>, window_params = [{transform_indices = @transform_0, window_bounds = array<i64: 512, 1152>}, {pipeline_mode = #tpu.pipeline_mode<synchronous>, transform_indices = @transform_1, window_bounds = array<i64: 1152, 128>}, {transform_indices = @transform_2, window_bounds = array<i64: 512, 128>}, {transform_indices = @transform_3, window_bounds = array<i64: 8, 128>}]} {
    %c0 = arith.constant 0 : index
    %c0_0 = arith.constant 0 : index
    %0 = vector.load %arg1[%c0, %c0_0] : memref<512x1152xbf16, #tpu.memory_space<vmem>>, vector<512x1152xbf16>
    %c0_1 = arith.constant 0 : index
    %c0_2 = arith.constant 0 : index
    %1 = vector.load %arg2[%c0_1, %c0_2] : memref<1152x128xbf16, #tpu.memory_space<vmem>>, vector<1152x128xbf16>
    %cst = arith.constant dense<0.000000e+00> : vector<512x128xf32>
    %2 = tpu.matmul %0, %1, %cst {dimension_numbers = #tpu.dot_dimension_numbers<[1], [0], [0], [1], [0, 0, 1, 1], [], []>} : vector<512x1152xbf16>, vector<1152x128xbf16>, vector<512x128xf32> -> vector<512x128xf32>
    %c0_3 = arith.constant 0 : index
    %c0_4 = arith.constant 0 : index
    %3 = vector.load %arg3[%c0_3, %c0_4] : memref<512x128xf32, #tpu.memory_space<vmem>>, vector<512x128xf32>
    tpu.vector_store %arg3[%c0_3, %c0_4], %2 {strides = array<i32>} : memref<512x128xf32, #tpu.memory_space<vmem>>, vector<512x128xf32>,
    %cst_5 = arith.constant dense<0.000000e+00> : vector<128xf32>
    %4 = vector.multi_reduction <add>, %2, %cst_5 [0] : vector<512x128xf32> to vector<128xf32>
    %5 = vector.shape_cast %4 : vector<128xf32> to vector<1x128xf32>
    %6 = arith.mulf %2, %2 : vector<512x128xf32>
    %cst_6 = arith.constant dense<0.000000e+00> : vector<128xf32>
    %7 = vector.multi_reduction <add>, %6, %cst_6 [0] : vector<512x128xf32> to vector<128xf32>
    %8 = vector.shape_cast %7 : vector<128xf32> to vector<1x128xf32>
    %cst_7 = arith.constant 0.000000e+00 : f32
    %9 = vector.broadcast %cst_7 : f32 to vector<6x128xf32>
    %10 = tpu.concatenate %5, %8, %9 in 0 : vector<1x128xf32>, vector<1x128xf32>, vector<6x128xf32> -> vector<8x128xf32>
    %c0_8 = arith.constant 0 : index
    %c0_9 = arith.constant 0 : index
    %11 = vector.load %arg4[%c0_8, %c0_9] : memref<8x128xf32, #tpu.memory_space<vmem>>, vector<8x128xf32>
    tpu.vector_store %arg4[%c0_8, %c0_9], %10 {strides = array<i32>} : memref<8x128xf32, #tpu.memory_space<vmem>>, vector<8x128xf32>,
    return
  }
  func.func @transform_0(%arg0: i32) -> (i32, i32) {
    %c0_i32 = arith.constant 0 : i32
    %c0_i32_0 = arith.constant 0 : i32
    return %arg0, %c0_i32 : i32, i32
  }
  func.func @transform_1(%arg0: i32) -> (i32, i32) {
    %c0_i32 = arith.constant 0 : i32
    %c0_i32_0 = arith.constant 0 : i32
    %c0_i32_1 = arith.constant 0 : i32
    return %c0_i32, %c0_i32_0 : i32, i32
  }
  func.func @transform_2(%arg0: i32) -> (i32, i32) {
    %c0_i32 = arith.constant 0 : i32
    %c0_i32_0 = arith.constant 0 : i32
    return %arg0, %c0_i32 : i32, i32
  }
  func.func @transform_3(%arg0: i32) -> (i32, i32) {
    %c0_i32 = arith.constant 0 : i32
    %c0_i32_0 = arith.constant 0 : i32
    return %arg0, %c0_i32 : i32, i32
  }
}

module attributes {stable_mosaic.version = 11 : i64} {
  func.func @_affine_add_relu_kernel(%arg0: i32, %arg1: memref<512x128xf32, #tpu.memory_space<vmem>>, %arg2: memref<512x128xf32, #tpu.memory_space<vmem>>, %arg3: memref<1x128xf32, #tpu.memory_space<vmem>>, %arg4: memref<1x128xf32, #tpu.memory_space<vmem>>, %arg5: memref<1x128xf32, #tpu.memory_space<vmem>>, %arg6: memref<1x128xf32, #tpu.memory_space<vmem>>, %arg7: memref<512x128xf32, #tpu.memory_space<vmem>>) attributes {dimension_semantics = [#tpu.dimension_semantics<parallel>], iteration_bounds = array<i64: 1>, scalar_prefetch = 0 : i64, scratch_operands = 0 : i64, tpu.core_type = #tpu.core_type<tc>, window_params = [{transform_indices = @transform_0, window_bounds = array<i64: 512, 128>}, {transform_indices = @transform_1, window_bounds = array<i64: 512, 128>}, {pipeline_mode = #tpu.pipeline_mode<synchronous>, transform_indices = @transform_2, window_bounds = array<i64: 1, 128>}, {pipeline_mode = #tpu.pipeline_mode<synchronous>, transform_indices = @transform_3, window_bounds = array<i64: 1, 128>}, {pipeline_mode = #tpu.pipeline_mode<synchronous>, transform_indices = @transform_4, window_bounds = array<i64: 1, 128>}, {pipeline_mode = #tpu.pipeline_mode<synchronous>, transform_indices = @transform_5, window_bounds = array<i64: 1, 128>}, {transform_indices = @transform_6, window_bounds = array<i64: 512, 128>}]} {
    %c0 = arith.constant 0 : index
    %c0_0 = arith.constant 0 : index
    %0 = vector.load %arg1[%c0, %c0_0] : memref<512x128xf32, #tpu.memory_space<vmem>>, vector<512x128xf32>
    %c0_1 = arith.constant 0 : index
    %c0_2 = arith.constant 0 : index
    %1 = vector.load %arg3[%c0_1, %c0_2] : memref<1x128xf32, #tpu.memory_space<vmem>>, vector<1x128xf32>
    %2 = vector.broadcast %1 : vector<1x128xf32> to vector<512x128xf32>
    %3 = arith.mulf %0, %2 : vector<512x128xf32>
    %c0_3 = arith.constant 0 : index
    %c0_4 = arith.constant 0 : index
    %4 = vector.load %arg4[%c0_3, %c0_4] : memref<1x128xf32, #tpu.memory_space<vmem>>, vector<1x128xf32>
    %5 = vector.broadcast %4 : vector<1x128xf32> to vector<512x128xf32>
    %6 = arith.addf %3, %5 : vector<512x128xf32>
    %c0_5 = arith.constant 0 : index
    %c0_6 = arith.constant 0 : index
    %7 = vector.load %arg2[%c0_5, %c0_6] : memref<512x128xf32, #tpu.memory_space<vmem>>, vector<512x128xf32>
    %c0_7 = arith.constant 0 : index
    %c0_8 = arith.constant 0 : index
    %8 = vector.load %arg5[%c0_7, %c0_8] : memref<1x128xf32, #tpu.memory_space<vmem>>, vector<1x128xf32>
    %9 = vector.broadcast %8 : vector<1x128xf32> to vector<512x128xf32>
    %10 = arith.mulf %7, %9 : vector<512x128xf32>
    %c0_9 = arith.constant 0 : index
    %c0_10 = arith.constant 0 : index
    %11 = vector.load %arg6[%c0_9, %c0_10] : memref<1x128xf32, #tpu.memory_space<vmem>>, vector<1x128xf32>
    %12 = vector.broadcast %11 : vector<1x128xf32> to vector<512x128xf32>
    %13 = arith.addf %10, %12 : vector<512x128xf32>
    %14 = arith.addf %6, %13 : vector<512x128xf32>
    %cst = arith.constant 0.000000e+00 : f32
    %15 = vector.broadcast %cst : f32 to vector<512x128xf32>
    %16 = arith.maximumf %14, %15 : vector<512x128xf32>
    %c0_11 = arith.constant 0 : index
    %c0_12 = arith.constant 0 : index
    %17 = vector.load %arg7[%c0_11, %c0_12] : memref<512x128xf32, #tpu.memory_space<vmem>>, vector<512x128xf32>
    tpu.vector_store %arg7[%c0_11, %c0_12], %16 {strides = array<i32>} : memref<512x128xf32, #tpu.memory_space<vmem>>, vector<512x128xf32>,
    return
  }
  func.func @transform_0(%arg0: i32) -> (i32, i32) {
    %c0_i32 = arith.constant 0 : i32
    %c0_i32_0 = arith.constant 0 : i32
    return %arg0, %c0_i32 : i32, i32
  }
  func.func @transform_1(%arg0: i32) -> (i32, i32) {
    %c0_i32 = arith.constant 0 : i32
    %c0_i32_0 = arith.constant 0 : i32
    return %arg0, %c0_i32 : i32, i32
  }
  func.func @transform_2(%arg0: i32) -> (i32, i32) {
    %c0_i32 = arith.constant 0 : i32
    %c0_i32_0 = arith.constant 0 : i32
    %c0_i32_1 = arith.constant 0 : i32
    return %c0_i32, %c0_i32_0 : i32, i32
  }
  func.func @transform_3(%arg0: i32) -> (i32, i32) {
    %c0_i32 = arith.constant 0 : i32
    %c0_i32_0 = arith.constant 0 : i32
    %c0_i32_1 = arith.constant 0 : i32
    return %c0_i32, %c0_i32_0 : i32, i32
  }
  func.func @transform_4(%arg0: i32) -> (i32, i32) {
    %c0_i32 = arith.constant 0 : i32
    %c0_i32_0 = arith.constant 0 : i32
    %c0_i32_1 = arith.constant 0 : i32
    return %c0_i32, %c0_i32_0 : i32, i32
  }
  func.func @transform_5(%arg0: i32) -> (i32, i32) {
    %c0_i32 = arith.constant 0 : i32
    %c0_i32_0 = arith.constant 0 : i32
    %c0_i32_1 = arith.constant 0 : i32
    return %c0_i32, %c0_i32_0 : i32, i32
  }
  func.func @transform_6(%arg0: i32) -> (i32, i32) {
    %c0_i32 = arith.constant 0 : i32
    %c0_i32_0 = arith.constant 0 : i32
    return %arg0, %c0_i32 : i32, i32
  }
}

</mosaic_0001>

<bundles_post_ra>
// kernel: basic_block_forward.5
= control target key start
LH: loop header
LB: loop body
LE: loop exit
PB: predicated region body
PF: predicated region fallthrough
CT: control target
= control target key end

     0   :  { %s1375_s0 = inlined_call_operand.vmem [shape: f32[512,128], index: 0, kind: input, shape index: {}]   ;;  %s1376_s1 = inlined_call_operand.vmem [shape: f32[1,128], index: 1, kind: input, shape index: {}]   ;;  %s1377_s2 = inlined_call_operand.vmem [shape: f32[1,128], index: 2, kind: input, shape index: {}]   ;;  %s1378_s3 = inlined_call_operand.vmem [shape: bf16[512,128], index: 3, kind: output, shape index: {}]  }
   0x1   :  { %v14_v0 = vld [vmem:[%s1375_s0] sm:$0xff]  ;;  %v15_v1 = vld [vmem:[%s1375_s0 + $0x8] sm:$0xff]  ;;  %v16_v6 = vld [vmem:[%s1375_s0 + $0x10] sm:$0xff] }
   0x2   :  { %v958_v2 = vld [vmem:[%s1376_s1] ss:$0 sm:$0xff]  ;;  %v17_v7 = vld [vmem:[%s1375_s0 + $0x18] sm:$0xff]  ;;  %v19_v11 = vld [vmem:[%s1375_s0 + $0x28] sm:$0xff] }
   0x3   :  { %v85_v3 = vmul.f32 %v958_v2, %v14_v0  ;;  %v86_v4 = vmul.f32 %v958_v2, %v15_v1  ;;  %v965_v5 = vld [vmem:[%s1377_s2] ss:$0 sm:$0xff]  ;;  %v87_v8 = vmul.f32 %v958_v2, %v16_v6  ;;  %v88_v9 = vmul.f32 %v958_v2, %v17_v7  ;;  %v20_v12 = vld [vmem:[%s1375_s0 + $0x30] sm:$0xff]  ;;  %v21_v17 = vld [vmem:[%s1375_s0 + $0x38] sm:$0xff] }
   0x4   :  { %v18_v10 = vld [vmem:[%s1375_s0 + $0x20] sm:$0xff]  ;;  %v90_v16 = vmul.f32 %v958_v2, %v19_v11  ;;  %v91_v20 = vmul.f32 %v958_v2, %v20_v12  ;;  %v92_v21 = vmul.f32 %v958_v2, %v21_v17  ;;  %v23_v27 = vld [vmem:[%s1375_s0 + $0x48] sm:$0xff]  ;;  %v24_v32 = vld [vmem:[%s1375_s0 + $0x50] sm:$0xff] }
   0x5   :  { %v156_v13 = vadd.f32 %v965_v5, %v85_v3  ;;  %v157_v14 = vadd.f32 %v965_v5, %v86_v4  ;;  %v89_v15 = vmul.f32 %v958_v2, %v18_v10  ;;  %v158_v18 = vadd.f32 %v965_v5, %v87_v8  ;;  %v22_v22 = vld [vmem:[%s1375_s0 + $0x40] sm:$0xff]  ;;  %v25_v33 = vld [vmem:[%s1375_s0 + $0x58] sm:$0xff]  ;;  %v27_v39 = vld [vmem:[%s1375_s0 + $0x68] sm:$0xff] }
   0x6   :  { %v159_v19 = vadd.f32 %v965_v5, %v88_v9  ;;  %v161_v26 = vadd.f32 %v965_v5, %v90_v16  ;;  %v162_v30 = vadd.f32 %v965_v5, %v91_v20  ;;  %v163_v31 = vadd.f32 %v965_v5, %v92_v21  ;;  %v26_v38 = vld [vmem:[%s1375_s0 + $0x60] sm:$0xff]  ;;  %v28_v44 = vld [vmem:[%s1375_s0 + $0x70] sm:$0xff]  ;;  %v29_v49 = vld [vmem:[%s1375_s0 + $0x78] sm:$0xff] }
   0x7   :  { %v220_v23 = vmax.f32 %v156_v13, 0.0  ;;  %v221_v24 = vmax.f32 %v157_v14, 0.0  ;;  %v160_v25 = vadd.f32 %v965_v5, %v89_v15  ;;  %v222_v28 = vmax.f32 %v158_v18, 0.0  ;;  %v30_v54 = vld [vmem:[%s1375_s0 + $0x80] sm:$0xff]  ;;  %v31_v63 = vld [vmem:[%s1375_s0 + $0x88] sm:$0xff]  ;;  %v32_v6 = vld [vmem:[%s1375_s0 + $0x90] sm:$0xff] }
   0x8   :  { %v223_v29 = vmax.f32 %v159_v19, 0.0  ;;  %v225_v36 = vmax.f32 %v161_v26, 0.0  ;;  %v93_v37 = vmul.f32 %v958_v2, %v22_v22  ;;  %v226_v41 = vmax.f32 %v162_v30, 0.0  ;;  %v33_v7 = vld [vmem:[%s1375_s0 + $0x98] sm:$0xff]  ;;  %v34_v12 = vld [vmem:[%s1375_s0 + $0xa0] sm:$0xff]  ;;  %v35_v13 = vld [vmem:[%s1375_s0 + $0xa8] sm:$0xff] }
   0x9   :  { %v741_v34 = vpack.c.bf16 %v221_v24, %v220_v23  ;;  %v224_v35 = vmax.f32 %v160_v25, 0.0  ;;  %v227_v42 = vmax.f32 %v163_v31, 0.0  ;;  %v94_v43 = vmul.f32 %v958_v2, %v23_v27  ;;  %v36_v18 = vld [vmem:[%s1375_s0 + $0xb0] sm:$0xff]  ;;  %v37_v23 = vld [vmem:[%s1375_s0 + $0xb8] sm:$0xff] }
   0xa   :  { %v746_v40 = vpack.c.bf16 %v223_v29, %v222_v28  ;;  %v164_v46 = vadd.f32 %v965_v5, %v93_v37  ;;  %v95_v47 = vmul.f32 %v958_v2, %v24_v32  ;;  %v96_v48 = vmul.f32 %v958_v2, %v25_v33  ;;  %v38_v28 = vld [vmem:[%s1375_s0 + $0xc0] sm:$0xff]  ;;  %v39_v37 = vld [vmem:[%s1375_s0 + $0xc8] sm:$0xff] }
   0xb   :  { %742 = vst [vmem:[%s1378_s3] sm:$0xff] %v741_v34   ;;  %v751_v45 = vpack.c.bf16 %v225_v36, %v224_v35  ;;  %v756_v50 = vpack.c.bf16 %v227_v42, %v226_v41  ;;  %v165_v51 = vadd.f32 %v965_v5, %v94_v43  ;;  %v97_v52 = vmul.f32 %v958_v2, %v26_v38  ;;  %v40_v42 = vld [vmem:[%s1375_s0 + $0xd0] sm:$0xff]  ;;  %v41_v43 = vld [vmem:[%s1375_s0 + $0xd8] sm:$0xff] }
   0xc   :  { %898 = vst [vmem:[%s1378_s3 + $0x8] sm:$0xff] %v746_v40   ;;  %v98_v53 = vmul.f32 %v958_v2, %v27_v39  ;;  %v228_v55 = vmax.f32 %v164_v46, 0.0  ;;  %v166_v56 = vadd.f32 %v965_v5, %v95_v47  ;;  %v167_v57 = vadd.f32 %v965_v5, %v96_v48  ;;  %v42_v48 = vld [vmem:[%s1375_s0 + $0xe0] sm:$0xff] }
   0xd   :  { %899 = vst [vmem:[%s1378_s3 + $0x10] sm:$0xff] %v751_v45   ;;  %v99_v58 = vmul.f32 %v958_v2, %v28_v44  ;;  %900 = vst [vmem:[%s1378_s3 + $0x18] sm:$0xff] %v756_v50   ;;  %v229_v59 = vmax.f32 %v165_v51, 0.0  ;;  %v168_v60 = vadd.f32 %v965_v5, %v97_v52  ;;  %v100_v62 = vmul.f32 %v958_v2, %v29_v49  ;;  %v43_v49 = vld [vmem:[%s1375_s0 + $0xe8] sm:$0xff] }
   0xe   :  { %v169_v61 = vadd.f32 %v965_v5, %v98_v53  ;;  %v230_v0 = vmax.f32 %v166_v56, 0.0  ;;  %v231_v1 = vmax.f32 %v167_v57, 0.0  ;;  %v101_v4 = vmul.f32 %v958_v2, %v30_v54  ;;  %v44_v54 = vld [vmem:[%s1375_s0 + $0xf0] sm:$0xff] }
   0xf   :  { %v170_v3 = vadd.f32 %v965_v5, %v99_v58  ;;  %v761_v8 = vpack.c.bf16 %v229_v59, %v228_v55  ;;  %v232_v9 = vmax.f32 %v168_v60, 0.0  ;;  %v171_v11 = vadd.f32 %v965_v5, %v100_v62  ;;  %v45_v59 = vld [vmem:[%s1375_s0 + $0xf8] sm:$0xff] }
  0x10   :  { %v233_v10 = vmax.f32 %v169_v61, 0.0  ;;  %v766_v14 = vpack.c.bf16 %v231_v1, %v230_v0  ;;  %v102_v16 = vmul.f32 %v958_v2, %v31_v63  ;;  %v172_v17 = vadd.f32 %v965_v5, %v101_v4  ;;  %v46_v0 = vld [vmem:[%s1375_s0 + $0x100] sm:$0xff] }
  0x11   :  { %v234_v15 = vmax.f32 %v170_v3, 0.0  ;;  %901 = vst [vmem:[%s1378_s3 + $0x20] sm:$0xff] %v761_v8   ;;  %v235_v20 = vmax.f32 %v171_v11, 0.0  ;;  %v103_v21 = vmul.f32 %v958_v2, %v32_v6  ;;  %v104_v22 = vmul.f32 %v958_v2, %v33_v7  ;;  %v47_v11 = vld [vmem:[%s1375_s0 + $0x108] sm:$0xff] }
  0x12   :  { %v771_v19 = vpack.c.bf16 %v233_v10, %v232_v9  ;;  %902 = vst [vmem:[%s1378_s3 + $0x28] sm:$0xff] %v766_v14   ;;  %v173_v24 = vadd.f32 %v965_v5, %v102_v16  ;;  %v236_v25 = vmax.f32 %v172_v17, 0.0  ;;  %v105_v26 = vmul.f32 %v958_v2, %v34_v12  ;;  %v48_v16 = vld [vmem:[%s1375_s0 + $0x110] sm:$0xff]  ;;  %v49_v17 = vld [vmem:[%s1375_s0 + $0x118] sm:$0xff] }
  0x13   :  { %v106_v27 = vmul.f32 %v958_v2, %v35_v13  ;;  %v776_v29 = vpack.c.bf16 %v235_v20, %v234_v15  ;;  %v174_v30 = vadd.f32 %v965_v5, %v103_v21  ;;  %v175_v31 = vadd.f32 %v965_v5, %v104_v22  ;;  %v50_v22 = vld [vmem:[%s1375_s0 + $0x120] sm:$0xff] }
  0x14   :  { %903 = vst [vmem:[%s1378_s3 + $0x30] sm:$0xff] %v771_v19   ;;  %v107_v32 = vmul.f32 %v958_v2, %v36_v18  ;;  %v237_v33 = vmax.f32 %v173_v24, 0.0  ;;  %v176_v34 = vadd.f32 %v965_v5, %v105_v26  ;;  %v108_v36 = vmul.f32 %v958_v2, %v37_v23  ;;  %v51_v23 = vld [vmem:[%s1375_s0 + $0x128] sm:$0xff] }
  0x15   :  { %v177_v35 = vadd.f32 %v965_v5, %v106_v27  ;;  %904 = vst [vmem:[%s1378_s3 + $0x38] sm:$0xff] %v776_v29   ;;  %v238_v38 = vmax.f32 %v174_v30, 0.0  ;;  %v239_v39 = vmax.f32 %v175_v31, 0.0  ;;  %v109_v41 = vmul.f32 %v958_v2, %v38_v28  ;;  %v52_v28 = vld [vmem:[%s1375_s0 + $0x130] sm:$0xff] }
  0x16   :  { %v178_v40 = vadd.f32 %v965_v5, %v107_v32  ;;  %v781_v44 = vpack.c.bf16 %v237_v33, %v236_v25  ;;  %v240_v45 = vmax.f32 %v176_v34, 0.0  ;;  %v179_v47 = vadd.f32 %v965_v5, %v108_v36  ;;  %v53_v33 = vld [vmem:[%s1375_s0 + $0x138] sm:$0xff] }
  0x17   :  { %v241_v46 = vmax.f32 %v177_v35, 0.0  ;;  %v786_v50 = vpack.c.bf16 %v239_v39, %v238_v38  ;;  %v110_v52 = vmul.f32 %v958_v2, %v39_v37  ;;  %v180_v53 = vadd.f32 %v965_v5, %v109_v41  ;;  %v54_v38 = vld [vmem:[%s1375_s0 + $0x140] sm:$0xff] }
  0x18   :  { %v242_v51 = vmax.f32 %v178_v40, 0.0  ;;  %905 = vst [vmem:[%s1378_s3 + $0x40] sm:$0xff] %v781_v44   ;;  %v243_v56 = vmax.f32 %v179_v47, 0.0  ;;  %v111_v57 = vmul.f32 %v958_v2, %v40_v42  ;;  %v112_v58 = vmul.f32 %v958_v2, %v41_v43  ;;  %v55_v47 = vld [vmem:[%s1375_s0 + $0x148] sm:$0xff] }
  0x19   :  { %v791_v55 = vpack.c.bf16 %v241_v46, %v240_v45  ;;  %906 = vst [vmem:[%s1378_s3 + $0x48] sm:$0xff] %v786_v50   ;;  %v181_v60 = vadd.f32 %v965_v5, %v110_v52  ;;  %v244_v61 = vmax.f32 %v180_v53, 0.0  ;;  %v113_v62 = vmul.f32 %v958_v2, %v42_v48  ;;  %v56_v52 = vld [vmem:[%s1375_s0 + $0x150] sm:$0xff]  ;;  %v57_v53 = vld [vmem:[%s1375_s0 + $0x158] sm:$0xff] }
  0x1a   :  { %v114_v63 = vmul.f32 %v958_v2, %v43_v49  ;;  %v796_v1 = vpack.c.bf16 %v243_v56, %v242_v51  ;;  %v182_v3 = vadd.f32 %v965_v5, %v111_v57  ;;  %v183_v4 = vadd.f32 %v965_v5, %v112_v58  ;;  %v58_v58 = vld [vmem:[%s1375_s0 + $0x160] sm:$0xff] }
  0x1b   :  { %907 = vst [vmem:[%s1378_s3 + $0x50] sm:$0xff] %v791_v55   ;;  %v115_v6 = vmul.f32 %v958_v2, %v44_v54  ;;  %v245_v7 = vmax.f32 %v181_v60, 0.0  ;;  %v184_v8 = vadd.f32 %v965_v5, %v113_v62  ;;  %v116_v10 = vmul.f32 %v958_v2, %v45_v59  ;;  %v59_v59 = vld [vmem:[%s1375_s0 + $0x168] sm:$0xff] }
  0x1c   :  { %v185_v9 = vadd.f32 %v965_v5, %v114_v63  ;;  %908 = vst [vmem:[%s1378_s3 + $0x58] sm:$0xff] %v796_v1   ;;  %v246_v12 = vmax.f32 %v182_v3, 0.0  ;;  %v247_v13 = vmax.f32 %v183_v4, 0.0  ;;  %v117_v15 = vmul.f32 %v958_v2, %v46_v0  ;;  %v60_v0 = vld [vmem:[%s1375_s0 + $0x170] sm:$0xff] }
  0x1d   :  { %v186_v14 = vadd.f32 %v965_v5, %v115_v6  ;;  %v801_v18 = vpack.c.bf16 %v245_v7, %v244_v61  ;;  %v248_v19 = vmax.f32 %v184_v8, 0.0  ;;  %v187_v21 = vadd.f32 %v965_v5, %v116_v10  ;;  %v61_v7 = vld [vmem:[%s1375_s0 + $0x178] sm:$0xff] }
  0x1e   :  { %v249_v20 = vmax.f32 %v185_v9, 0.0  ;;  %v806_v24 = vpack.c.bf16 %v247_v13, %v246_v12  ;;  %v118_v26 = vmul.f32 %v958_v2, %v47_v11  ;;  %v188_v27 = vadd.f32 %v965_v5, %v117_v15  ;;  %v62_v12 = vld [vmem:[%s1375_s0 + $0x180] sm:$0xff] }
  0x1f   :  { %v250_v25 = vmax.f32 %v186_v14, 0.0  ;;  %909 = vst [vmem:[%s1378_s3 + $0x60] sm:$0xff] %v801_v18   ;;  %v251_v30 = vmax.f32 %v187_v21, 0.0  ;;  %v119_v31 = vmul.f32 %v958_v2, %v48_v16  ;;  %v120_v32 = vmul.f32 %v958_v2, %v49_v17  ;;  %v63_v21 = vld [vmem:[%s1375_s0 + $0x188] sm:$0xff] }
  0x20   :  { %v811_v29 = vpack.c.bf16 %v249_v20, %v248_v19  ;;  %910 = vst [vmem:[%s1378_s3 + $0x68] sm:$0xff] %v806_v24   ;;  %v189_v34 = vadd.f32 %v965_v5, %v118_v26  ;;  %v252_v35 = vmax.f32 %v188_v27, 0.0  ;;  %v121_v36 = vmul.f32 %v958_v2, %v50_v22  ;;  %v64_v26 = vld [vmem:[%s1375_s0 + $0x190] sm:$0xff]  ;;  %v65_v27 = vld [vmem:[%s1375_s0 + $0x198] sm:$0xff] }
  0x21   :  { %v122_v37 = vmul.f32 %v958_v2, %v51_v23  ;;  %v816_v39 = vpack.c.bf16 %v251_v30, %v250_v25  ;;  %v190_v40 = vadd.f32 %v965_v5, %v119_v31  ;;  %v191_v41 = vadd.f32 %v965_v5, %v120_v32  ;;  %v66_v32 = vld [vmem:[%s1375_s0 + $0x1a0] sm:$0xff] }
  0x22   :  { %911 = vst [vmem:[%s1378_s3 + $0x70] sm:$0xff] %v811_v29   ;;  %v123_v42 = vmul.f32 %v958_v2, %v52_v28  ;;  %v253_v43 = vmax.f32 %v189_v34, 0.0  ;;  %v192_v44 = vadd.f32 %v965_v5, %v121_v36  ;;  %v124_v46 = vmul.f32 %v958_v2, %v53_v33  ;;  %v67_v33 = vld [vmem:[%s1375_s0 + $0x1a8] sm:$0xff] }
  0x23   :  { %v193_v45 = vadd.f32 %v965_v5, %v122_v37  ;;  %912 = vst [vmem:[%s1378_s3 + $0x78] sm:$0xff] %v816_v39   ;;  %v254_v48 = vmax.f32 %v190_v40, 0.0  ;;  %v255_v49 = vmax.f32 %v191_v41, 0.0  ;;  %v125_v51 = vmul.f32 %v958_v2, %v54_v38  ;;  %v68_v38 = vld [vmem:[%s1375_s0 + $0x1b0] sm:$0xff] }
  0x24   :  { %v194_v50 = vadd.f32 %v965_v5, %v123_v42  ;;  %v821_v54 = vpack.c.bf16 %v253_v43, %v252_v35  ;;  %v256_v55 = vmax.f32 %v192_v44, 0.0  ;;  %v195_v57 = vadd.f32 %v965_v5, %v124_v46  ;;  %v69_v43 = vld [vmem:[%s1375_s0 + $0x1b8] sm:$0xff] }
  0x25   :  { %v257_v56 = vmax.f32 %v193_v45, 0.0  ;;  %v826_v60 = vpack.c.bf16 %v255_v49, %v254_v48  ;;  %v126_v62 = vmul.f32 %v958_v2, %v55_v47  ;;  %v196_v63 = vadd.f32 %v965_v5, %v125_v51  ;;  %v70_v48 = vld [vmem:[%s1375_s0 + $0x1c0] sm:$0xff] }
  0x26   :  { %v258_v61 = vmax.f32 %v194_v50, 0.0  ;;  %913 = vst [vmem:[%s1378_s3 + $0x80] sm:$0xff] %v821_v54   ;;  %v259_v3 = vmax.f32 %v195_v57, 0.0  ;;  %v127_v4 = vmul.f32 %v958_v2, %v56_v52  ;;  %v128_v6 = vmul.f32 %v958_v2, %v57_v53  ;;  %v71_v57 = vld [vmem:[%s1375_s0 + $0x1c8] sm:$0xff] }
  0x27   :  { %v831_v1 = vpack.c.bf16 %v257_v56, %v256_v55  ;;  %914 = vst [vmem:[%s1378_s3 + $0x88] sm:$0xff] %v826_v60   ;;  %v197_v8 = vadd.f32 %v965_v5, %v126_v62  ;;  %v260_v9 = vmax.f32 %v196_v63, 0.0  ;;  %v129_v10 = vmul.f32 %v958_v2, %v58_v58  ;;  %v72_v62 = vld [vmem:[%s1375_s0 + $0x1d0] sm:$0xff]  ;;  %v73_v63 = vld [vmem:[%s1375_s0 + $0x1d8] sm:$0xff] }
  0x28   :  { %v130_v11 = vmul.f32 %v958_v2, %v59_v59  ;;  %v836_v13 = vpack.c.bf16 %v259_v3, %v258_v61  ;;  %v198_v14 = vadd.f32 %v965_v5, %v127_v4  ;;  %v199_v15 = vadd.f32 %v965_v5, %v128_v6  ;;  %v74_v6 = vld [vmem:[%s1375_s0 + $0x1e0] sm:$0xff] }
  0x29   :  { %915 = vst [vmem:[%s1378_s3 + $0x90] sm:$0xff] %v831_v1   ;;  %v131_v16 = vmul.f32 %v958_v2, %v60_v0  ;;  %v261_v17 = vmax.f32 %v197_v8, 0.0  ;;  %v200_v18 = vadd.f32 %v965_v5, %v129_v10  ;;  %v132_v20 = vmul.f32 %v958_v2, %v61_v7  ;;  %v75_v7 = vld [vmem:[%s1375_s0 + $0x1e8] sm:$0xff] }
  0x2a   :  { %v201_v19 = vadd.f32 %v965_v5, %v130_v11  ;;  %916 = vst [vmem:[%s1378_s3 + $0x98] sm:$0xff] %v836_v13   ;;  %v262_v22 = vmax.f32 %v198_v14, 0.0  ;;  %v263_v23 = vmax.f32 %v199_v15, 0.0  ;;  %v133_v25 = vmul.f32 %v958_v2, %v62_v12  ;;  %v76_v12 = vld [vmem:[%s1375_s0 + $0x1f0] sm:$0xff] }
  0x2b   :  { %v202_v24 = vadd.f32 %v965_v5, %v131_v16  ;;  %v841_v28 = vpack.c.bf16 %v261_v17, %v260_v9  ;;  %v264_v29 = vmax.f32 %v200_v18, 0.0  ;;  %v203_v31 = vadd.f32 %v965_v5, %v132_v20  ;;  %v77_v17 = vld [vmem:[%s1375_s0 + $0x1f8] sm:$0xff] }
  0x2c   :  { %v265_v30 = vmax.f32 %v201_v19, 0.0  ;;  %v846_v34 = vpack.c.bf16 %v263_v23, %v262_v22  ;;  %v134_v36 = vmul.f32 %v958_v2, %v63_v21  ;;  %v204_v37 = vadd.f32 %v965_v5, %v133_v25 }
  0x2d   :  { %v266_v35 = vmax.f32 %v202_v24, 0.0  ;;  %917 = vst [vmem:[%s1378_s3 + $0xa0] sm:$0xff] %v841_v28   ;;  %v267_v40 = vmax.f32 %v203_v31, 0.0  ;;  %v135_v41 = vmul.f32 %v958_v2, %v64_v26  ;;  %v136_v42 = vmul.f32 %v958_v2, %v65_v27 }
  0x2e   :  { %v851_v39 = vpack.c.bf16 %v265_v30, %v264_v29  ;;  %918 = vst [vmem:[%s1378_s3 + $0xa8] sm:$0xff] %v846_v34   ;;  %v205_v44 = vadd.f32 %v965_v5, %v134_v36  ;;  %v268_v45 = vmax.f32 %v204_v37, 0.0  ;;  %v137_v46 = vmul.f32 %v958_v2, %v66_v32 }
  0x2f   :  { %v138_v47 = vmul.f32 %v958_v2, %v67_v33  ;;  %v856_v49 = vpack.c.bf16 %v267_v40, %v266_v35  ;;  %v206_v50 = vadd.f32 %v965_v5, %v135_v41  ;;  %v207_v51 = vadd.f32 %v965_v5, %v136_v42 }
  0x30   :  { %919 = vst [vmem:[%s1378_s3 + $0xb0] sm:$0xff] %v851_v39   ;;  %v139_v52 = vmul.f32 %v958_v2, %v68_v38  ;;  %v269_v53 = vmax.f32 %v205_v44, 0.0  ;;  %v208_v54 = vadd.f32 %v965_v5, %v137_v46  ;;  %v140_v56 = vmul.f32 %v958_v2, %v69_v43 }
  0x31   :  { %v209_v55 = vadd.f32 %v965_v5, %v138_v47  ;;  %920 = vst [vmem:[%s1378_s3 + $0xb8] sm:$0xff] %v856_v49   ;;  %v270_v58 = vmax.f32 %v206_v50, 0.0  ;;  %v271_v59 = vmax.f32 %v207_v51, 0.0  ;;  %v141_v61 = vmul.f32 %v958_v2, %v70_v48 }
  0x32   :  { %v210_v60 = vadd.f32 %v965_v5, %v139_v52  ;;  %v861_v0 = vpack.c.bf16 %v269_v53, %v268_v45  ;;  %v272_v1 = vmax.f32 %v208_v54, 0.0  ;;  %v211_v4 = vadd.f32 %v965_v5, %v140_v56 }
  0x33   :  { %v273_v3 = vmax.f32 %v209_v55, 0.0  ;;  %v866_v8 = vpack.c.bf16 %v271_v59, %v270_v58  ;;  %v142_v10 = vmul.f32 %v958_v2, %v71_v57  ;;  %v212_v11 = vadd.f32 %v965_v5, %v141_v61 }
  0x34   :  { %v274_v9 = vmax.f32 %v210_v60, 0.0  ;;  %921 = vst [vmem:[%s1378_s3 + $0xc0] sm:$0xff] %v861_v0   ;;  %v275_v14 = vmax.f32 %v211_v4, 0.0  ;;  %v143_v15 = vmul.f32 %v958_v2, %v72_v62  ;;  %v144_v16 = vmul.f32 %v958_v2, %v73_v63 }
  0x35   :  { %v871_v13 = vpack.c.bf16 %v273_v3, %v272_v1  ;;  %922 = vst [vmem:[%s1378_s3 + $0xc8] sm:$0xff] %v866_v8   ;;  %v213_v18 = vadd.f32 %v965_v5, %v142_v10  ;;  %v276_v19 = vmax.f32 %v212_v11, 0.0  ;;  %v145_v20 = vmul.f32 %v958_v2, %v74_v6 }
  0x36   :  { %v146_v21 = vmul.f32 %v958_v2, %v75_v7  ;;  %v876_v22 = vpack.c.bf16 %v275_v14, %v274_v9  ;;  %v214_v23 = vadd.f32 %v965_v5, %v143_v15  ;;  %v215_v24 = vadd.f32 %v965_v5, %v144_v16 }
  0x37   :  { %923 = vst [vmem:[%s1378_s3 + $0xd0] sm:$0xff] %v871_v13   ;;  %v147_v25 = vmul.f32 %v958_v2, %v76_v12  ;;  %v277_v26 = vmax.f32 %v213_v18, 0.0  ;;  %v216_v27 = vadd.f32 %v965_v5, %v145_v20  ;;  %v148_v29 = vmul.f32 %v958_v2, %v77_v17 }
  0x38   :  { %v217_v28 = vadd.f32 %v965_v5, %v146_v21  ;;  %924 = vst [vmem:[%s1378_s3 + $0xd8] sm:$0xff] %v876_v22   ;;  %v278_v30 = vmax.f32 %v214_v23, 0.0  ;;  %v279_v31 = vmax.f32 %v215_v24, 0.0 }
  0x39   :  { %v218_v32 = vadd.f32 %v965_v5, %v147_v25  ;;  %v881_v33 = vpack.c.bf16 %v277_v26, %v276_v19  ;;  %v280_v34 = vmax.f32 %v216_v27, 0.0  ;;  %v219_v36 = vadd.f32 %v965_v5, %v148_v29 }
  0x3a   :  { %v281_v35 = vmax.f32 %v217_v28, 0.0  ;;  %v886_v37 = vpack.c.bf16 %v279_v31, %v278_v30 }
  0x3b   :  { %v282_v38 = vmax.f32 %v218_v32, 0.0  ;;  %925 = vst [vmem:[%s1378_s3 + $0xe0] sm:$0xff] %v881_v33   ;;  %v283_v39 = vmax.f32 %v219_v36, 0.0 }
  0x3c   :  { %v891_v2 = vpack.c.bf16 %v281_v35, %v280_v34  ;;  %926 = vst [vmem:[%s1378_s3 + $0xe8] sm:$0xff] %v886_v37  }
  0x3d   :  { %v896_v40 = vpack.c.bf16 %v283_v39, %v282_v38 }
  0x3e   :  { %927 = vst [vmem:[%s1378_s3 + $0xf0] sm:$0xff] %v891_v2  }
  0x3f   :  { %928 = vst [vmem:[%s1378_s3 + $0xf8] sm:$0xff] %v896_v40  }

// kernel: basic_block_forward.4
= control target key start
LH: loop header
LB: loop body
LE: loop exit
PB: predicated region body
PF: predicated region fallthrough
CT: control target
= control target key end

     0   :  { %vm889_vm0 = vcmask 1040384   ;;  %vm891_vm1 = vcmask 1041408   ;;  %s1645_s1 = inlined_call_operand.vmem [shape: bf16[128,128], index: 1, kind: input, shape index: {}]   ;;  %s1646_s0 = inlined_call_operand.vmem [shape: bf16[512,128], index: 0, kind: input, shape index: {}]   ;;  %s1647_s2 = inlined_call_operand.vmem [shape: f32[512,128], index: 2, kind: output, shape index: {0}]   ;;  %s1648_s3 = inlined_call_operand.vmem [shape: f32[8,128], index: 3, kind: output, shape index: {1}]  }
   0x1   :  { %v1078_v0 = vld [vmem:[%s1645_s1] sm:$0xff]   ;;  %v1079_v1 = vld [vmem:[%s1645_s1 + $0x8] sm:$0xff]   ;;  %v1080_v2 = vld [vmem:[%s1645_s1 + $0x10] sm:$0xff]  }
   0x2   :  { %982 = vmatprep.subr.bf16.mxu0 %v1078_v0  ;;  %1062 = vmatprep.subr.bf16.mxu1 %v1078_v0  ;;  %v1081_v3 = vld [vmem:[%s1645_s1 + $0x18] sm:$0xff]   ;;  %v1086_v4 = vld [vmem:[%s1646_s0] sm:$0xff]   ;;  %v1083_v6 = vld [vmem:[%s1645_s1 + $0x28] sm:$0xff]  }
   0x3   :  { %983 = vmatpush3.bf16.msra.mxu0 %v1078_v0  ;;  %1070 = vmatpush3.bf16.msra.mxu1 %v1078_v0  ;;  %v1082_v5 = vld [vmem:[%s1645_s1 + $0x20] sm:$0xff]   ;;  %v1084_v7 = vld [vmem:[%s1645_s1 + $0x30] sm:$0xff]   ;;  %v1085_v8 = vld [vmem:[%s1645_s1 + $0x38] sm:$0xff]  }
   0x4   :  { %984 = vmatprep.subr.bf16.mxu0 %v1079_v1  ;;  %1063 = vmatprep.subr.bf16.mxu1 %v1079_v1  ;;  %v1102_v9 = vld [vmem:[%s1646_s0 + $0x80] sm:$0xff]   ;;  %v1087_v10 = vld [vmem:[%s1646_s0 + $0x8] sm:$0xff]   ;;  %v1088_v11 = vld [vmem:[%s1646_s0 + $0x10] sm:$0xff]  }
   0x5   :  { %998 = vmatprep.mubr.bf16.mxu0 %v1086_v4  ;;  %1030 = vmatprep.mubr.bf16.mxu1 %v1102_v9  ;;  %v1103_v12 = vld [vmem:[%s1646_s0 + $0x88] sm:$0xff]   ;;  %v1104_v13 = vld [vmem:[%s1646_s0 + $0x90] sm:$0xff]   ;;  %v1089_v14 = vld [vmem:[%s1646_s0 + $0x18] sm:$0xff]  }
   0x6   :  { %v1090_v15 = vld [vmem:[%s1646_s0 + $0x20] sm:$0xff]   ;;  %v1105_v16 = vld [vmem:[%s1646_s0 + $0x98] sm:$0xff]   ;;  %v1091_v18 = vld [vmem:[%s1646_s0 + $0x28] sm:$0xff]  }
   0x7   :  { %985 = vmatpush3.bf16.msra.mxu0 %v1079_v1  ;;  %1071 = vmatpush3.bf16.msra.mxu1 %v1079_v1  ;;  %v1106_v17 = vld [vmem:[%s1646_s0 + $0xa0] sm:$0xff]   ;;  %v1107_v19 = vld [vmem:[%s1646_s0 + $0xa8] sm:$0xff]   ;;  %v1092_v20 = vld [vmem:[%s1646_s0 + $0x30] sm:$0xff]  }
   0x8   :  { %986 = vmatprep.subr.bf16.mxu0 %v1080_v2  ;;  %1064 = vmatprep.subr.bf16.mxu1 %v1080_v2  ;;  %v1108_v21 = vld [vmem:[%s1646_s0 + $0xb0] sm:$0xff]   ;;  %v1093_v22 = vld [vmem:[%s1646_s0 + $0x38] sm:$0xff]   ;;  %v1094_v24 = vld [vmem:[%s1646_s0 + $0x40] sm:$0xff]  }
   0x9   :  { %v1109_v23 = vld [vmem:[%s1646_s0 + $0xb8] sm:$0xff]   ;;  %v1110_v25 = vld [vmem:[%s1646_s0 + $0xc0] sm:$0xff]   ;;  %v1095_v26 = vld [vmem:[%s1646_s0 + $0x48] sm:$0xff]  }
   0xa   :  { %v1111_v27 = vld [vmem:[%s1646_s0 + $0xc8] sm:$0xff]   ;;  %v1096_v28 = vld [vmem:[%s1646_s0 + $0x50] sm:$0xff]   ;;  %v1097_v30 = vld [vmem:[%s1646_s0 + $0x58] sm:$0xff]  }
   0xb   :  { %987 = vmatpush3.bf16.msra.mxu0 %v1080_v2  ;;  %1072 = vmatpush3.bf16.msra.mxu1 %v1080_v2  ;;  %v1112_v29 = vld [vmem:[%s1646_s0 + $0xd0] sm:$0xff]   ;;  %v1113_v31 = vld [vmem:[%s1646_s0 + $0xd8] sm:$0xff]   ;;  %v1098_v32 = vld [vmem:[%s1646_s0 + $0x60] sm:$0xff]  }
   0xc   :  { %988 = vmatprep.subr.bf16.mxu0 %v1081_v3  ;;  %1065 = vmatprep.subr.bf16.mxu1 %v1081_v3  ;;  %v1114_v33 = vld [vmem:[%s1646_s0 + $0xe0] sm:$0xff]   ;;  %v1099_v34 = vld [vmem:[%s1646_s0 + $0x68] sm:$0xff]   ;;  %v1100_v36 = vld [vmem:[%s1646_s0 + $0x70] sm:$0xff]  }
   0xd   :  { %v1115_v35 = vld [vmem:[%s1646_s0 + $0xe8] sm:$0xff]   ;;  %v1116_v37 = vld [vmem:[%s1646_s0 + $0xf0] sm:$0xff]   ;;  %v1101_v38 = vld [vmem:[%s1646_s0 + $0x78] sm:$0xff]  }
   0xe   :  { %v1117_v39 = vld [vmem:[%s1646_s0 + $0xf8] sm:$0xff]  }
   0xf   :  { %989 = vmatpush3.bf16.msra.mxu0 %v1081_v3  ;;  %1073 = vmatpush3.bf16.msra.mxu1 %v1081_v3 }
  0x10   :  { %990 = vmatprep.subr.bf16.mxu0 %v1082_v5  ;;  %1066 = vmatprep.subr.bf16.mxu1 %v1082_v5 }
  0x13   :  { %991 = vmatpush3.bf16.msra.mxu0 %v1082_v5  ;;  %1074 = vmatpush3.bf16.msra.mxu1 %v1082_v5 }
  0x14   :  { %992 = vmatprep.subr.bf16.mxu0 %v1083_v6  ;;  %1067 = vmatprep.subr.bf16.mxu1 %v1083_v6 }
  0x17   :  { %993 = vmatpush3.bf16.msra.mxu0 %v1083_v6  ;;  %1075 = vmatpush3.bf16.msra.mxu1 %v1083_v6 }
  0x18   :  { %994 = vmatprep.subr.bf16.mxu0 %v1084_v7  ;;  %1068 = vmatprep.subr.bf16.mxu1 %v1084_v7 }
  0x1b   :  { %995 = vmatpush3.bf16.msra.mxu0 %v1084_v7  ;;  %1076 = vmatpush3.bf16.msra.mxu1 %v1084_v7 }
  0x1c   :  { %996 = vmatprep.subr.bf16.mxu0 %v1085_v8  ;;  %1069 = vmatprep.subr.bf16.mxu1 %v1085_v8 }
  0x1f   :  { %997 = vmatpush3.bf16.msra.mxu0 %v1085_v8  ;;  %1077 = vmatpush3.bf16.msra.mxu1 %v1085_v8 }
  0x22   :  { %999 = vmatmul.mubr.bf16.vlgmr.msra.gmra.mrb[0].mxu0 %v1087_v10  ;;  %1031 = vmatmul.mubr.bf16.vlgmr.msra.gmra.mrb[0].mxu1 %v1103_v12 }
  0x23   :  { %1002 = vmatprep.mubr.bf16.mxu0 %v1088_v11  ;;  %1034 = vmatprep.mubr.bf16.mxu1 %v1104_v13 }
  0x2a   :  { %1003 = vmatmul.mubr.bf16.gmra.mrb[4].mxu0 %v1089_v14  ;;  %1035 = vmatmul.mubr.bf16.gmra.mrb[4].mxu1 %v1105_v16 }
  0x2b   :  { %1006 = vmatprep.mubr.bf16.mxu0 %v1090_v15  ;;  %1038 = vmatprep.mubr.bf16.mxu1 %v1106_v17 }
  0x32   :  { %1007 = vmatmul.mubr.bf16.gmra.mrb[8].mxu0 %v1091_v18  ;;  %1039 = vmatmul.mubr.bf16.gmra.mrb[8].mxu1 %v1107_v19 }
  0x33   :  { %1010 = vmatprep.mubr.bf16.mxu0 %v1092_v20  ;;  %1042 = vmatprep.mubr.bf16.mxu1 %v1108_v21 }
  0x3a   :  { %1011 = vmatmul.mubr.bf16.gmra.mrb[12].mxu0 %v1093_v22  ;;  %1043 = vmatmul.mubr.bf16.gmra.mrb[12].mxu1 %v1109_v23 }
  0x3b   :  { %1014 = vmatprep.mubr.bf16.mxu0 %v1094_v24  ;;  %1046 = vmatprep.mubr.bf16.mxu1 %v1110_v25 }
  0x42   :  { %1015 = vmatmul.mubr.bf16.gmra.mrb[16].mxu0 %v1095_v26  ;;  %1047 = vmatmul.mubr.bf16.gmra.mrb[16].mxu1 %v1111_v27 }
  0x43   :  { %1018 = vmatprep.mubr.bf16.mxu0 %v1096_v28  ;;  %1050 = vmatprep.mubr.bf16.mxu1 %v1112_v29 }
  0x4a   :  { %1019 = vmatmul.mubr.bf16.gmra.mrb[20].mxu0 %v1097_v30  ;;  %1051 = vmatmul.mubr.bf16.gmra.mrb[20].mxu1 %v1113_v31 }
  0x4b   :  { %1022 = vmatprep.mubr.bf16.mxu0 %v1098_v32  ;;  %1054 = vmatprep.mubr.bf16.mxu1 %v1114_v33 }
  0x52   :  { %1023 = vmatmul.mubr.bf16.gmra.mrb[24].mxu0 %v1099_v34  ;;  %1055 = vmatmul.mubr.bf16.gmra.mrb[24].mxu1 %v1115_v35 }
  0x53   :  { %1026 = vmatprep.mubr.bf16.mxu0 %v1100_v36  ;;  %1058 = vmatprep.mubr.bf16.mxu1 %v1116_v37 }
  0x5a   :  { %1027 = vmatmul.mubr.bf16.gmra.mrb[28].mxu0 %v1101_v38  ;;  %1059 = vmatmul.mubr.bf16.gmra.mrb[28].mxu1 %v1117_v39 }
  0xf5   :  { %v1000_v40 = vpop.f32.mrb[0].mxu0  ;;  %v1258_v41 = vpop.f32.mrb[0].mxu1 }
  0xf6   :  { %625 = vst [vmem:[%s1647_s2 + $0x10] sm:$0xff] %v1000_v40  ;;  %v368_v42 = vpop.f32.mrb[1].mxu0  ;;  %657 = vst [vmem:[%s1647_s2 + $0x110] sm:$0xff] %v1258_v41  ;;  %v1267_v43 = vpop.f32.mrb[1].mxu1  ;;  %v758_v51 = vmul.f32 %v1000_v40, %v1000_v40 }
  0xf7   :  { %623 = vst [vmem:[%s1647_s2] sm:$0xff] %v368_v42  ;;  %v1001_v44 = vpop.f32.mrb[2].mxu0  ;;  %655 = vst [vmem:[%s1647_s2 + $0x100] sm:$0xff] %v1267_v43  ;;  %v1276_v45 = vpop.f32.mrb[2].mxu1  ;;  %v756_v48 = vmul.f32 %v368_v42, %v368_v42 }
  0xf8   :  { %626 = vst [vmem:[%s1647_s2 + $0x18] sm:$0xff] %v1001_v44  ;;  %v371_v46 = vpop.f32.mrb[3].mxu0  ;;  %658 = vst [vmem:[%s1647_s2 + $0x118] sm:$0xff] %v1276_v45  ;;  %v1285_v47 = vpop.f32.mrb[3].mxu1  ;;  %v759_v54 = vmul.f32 %v1001_v44, %v1001_v44 }
  0xf9   :  { %624 = vst [vmem:[%s1647_s2 + $0x8] sm:$0xff] %v371_v46  ;;  %v687_v49 = vadd.f32 %v371_v46, %v368_v42  ;;  %v757_v50 = vmul.f32 %v371_v46, %v371_v46  ;;  %656 = vst [vmem:[%s1647_s2 + $0x108] sm:$0xff] %v1285_v47 }
  0xfb   :  { %v688_v52 = vadd.f32 %v1000_v40, %v687_v49  ;;  %v820_v53 = vadd.f32 %v757_v50, %v756_v48 }
  0xfd   :  { %v821_v55 = vadd.f32 %v820_v53, %v758_v51  ;;  %v1004_v56 = vpop.f32.mrb[4].mxu0  ;;  %v689_v57 = vadd.f32 %v1001_v44, %v688_v52  ;;  %v1294_v58 = vpop.f32.mrb[4].mxu1 }
  0xfe   :  { %629 = vst [vmem:[%s1647_s2 + $0x30] sm:$0xff] %v1004_v56  ;;  %v384_v59 = vpop.f32.mrb[5].mxu0  ;;  %661 = vst [vmem:[%s1647_s2 + $0x130] sm:$0xff] %v1294_v58  ;;  %v1303_v60 = vpop.f32.mrb[5].mxu1  ;;  %v762_v7 = vmul.f32 %v1004_v56, %v1004_v56 }
  0xff   :  { %627 = vst [vmem:[%s1647_s2 + $0x20] sm:$0xff] %v384_v59  ;;  %v690_v61 = vadd.f32 %v689_v57, %v384_v59  ;;  %v760_v62 = vmul.f32 %v384_v59, %v384_v59  ;;  %v822_v63 = vadd.f32 %v821_v55, %v759_v54  ;;  %v1005_v0 = vpop.f32.mrb[6].mxu0  ;;  %659 = vst [vmem:[%s1647_s2 + $0x120] sm:$0xff] %v1303_v60  ;;  %v1312_v1 = vpop.f32.mrb[6].mxu1 }
 0x100   :  { %630 = vst [vmem:[%s1647_s2 + $0x38] sm:$0xff] %v1005_v0  ;;  %v387_v2 = vpop.f32.mrb[7].mxu0  ;;  %662 = vst [vmem:[%s1647_s2 + $0x138] sm:$0xff] %v1312_v1  ;;  %v1321_v3 = vpop.f32.mrb[7].mxu1  ;;  %v763_v10 = vmul.f32 %v1005_v0, %v1005_v0 }
 0x101   :  { %v823_v4 = vadd.f32 %v822_v63, %v760_v62  ;;  %628 = vst [vmem:[%s1647_s2 + $0x28] sm:$0xff] %v387_v2  ;;  %v691_v5 = vadd.f32 %v690_v61, %v387_v2  ;;  %v761_v6 = vmul.f32 %v387_v2, %v387_v2  ;;  %660 = vst [vmem:[%s1647_s2 + $0x128] sm:$0xff] %v1321_v3 }
 0x103   :  { %v692_v8 = vadd.f32 %v1004_v56, %v691_v5  ;;  %v824_v9 = vadd.f32 %v823_v4, %v761_v6 }
 0x105   :  { %v825_v11 = vadd.f32 %v824_v9, %v762_v7  ;;  %v1008_v12 = vpop.f32.mrb[8].mxu0  ;;  %v693_v13 = vadd.f32 %v1005_v0, %v692_v8  ;;  %v1330_v14 = vpop.f32.mrb[8].mxu1 }
 0x106   :  { %633 = vst [vmem:[%s1647_s2 + $0x50] sm:$0xff] %v1008_v12  ;;  %v400_v15 = vpop.f32.mrb[9].mxu0  ;;  %665 = vst [vmem:[%s1647_s2 + $0x150] sm:$0xff] %v1330_v14  ;;  %v1339_v16 = vpop.f32.mrb[9].mxu1  ;;  %v766_v27 = vmul.f32 %v1008_v12, %v1008_v12 }
 0x107   :  { %631 = vst [vmem:[%s1647_s2 + $0x40] sm:$0xff] %v400_v15  ;;  %v694_v17 = vadd.f32 %v693_v13, %v400_v15  ;;  %v764_v18 = vmul.f32 %v400_v15, %v400_v15  ;;  %v826_v19 = vadd.f32 %v825_v11, %v763_v10  ;;  %v1009_v20 = vpop.f32.mrb[10].mxu0  ;;  %663 = vst [vmem:[%s1647_s2 + $0x140] sm:$0xff] %v1339_v16  ;;  %v1348_v21 = vpop.f32.mrb[10].mxu1 }
 0x108   :  { %634 = vst [vmem:[%s1647_s2 + $0x58] sm:$0xff] %v1009_v20  ;;  %v403_v22 = vpop.f32.mrb[11].mxu0  ;;  %666 = vst [vmem:[%s1647_s2 + $0x158] sm:$0xff] %v1348_v21  ;;  %v1357_v23 = vpop.f32.mrb[11].mxu1  ;;  %v767_v30 = vmul.f32 %v1009_v20, %v1009_v20 }
 0x109   :  { %v827_v24 = vadd.f32 %v826_v19, %v764_v18  ;;  %632 = vst [vmem:[%s1647_s2 + $0x48] sm:$0xff] %v403_v22  ;;  %v695_v25 = vadd.f32 %v694_v17, %v403_v22  ;;  %v765_v26 = vmul.f32 %v403_v22, %v403_v22  ;;  %664 = vst [vmem:[%s1647_s2 + $0x148] sm:$0xff] %v1357_v23 }
 0x10b   :  { %v696_v28 = vadd.f32 %v1008_v12, %v695_v25  ;;  %v828_v29 = vadd.f32 %v827_v24, %v765_v26 }
 0x10d   :  { %v829_v31 = vadd.f32 %v828_v29, %v766_v27  ;;  %v1012_v32 = vpop.f32.mrb[12].mxu0  ;;  %v697_v33 = vadd.f32 %v1009_v20, %v696_v28  ;;  %v1366_v34 = vpop.f32.mrb[12].mxu1 }
 0x10e   :  { %637 = vst [vmem:[%s1647_s2 + $0x70] sm:$0xff] %v1012_v32  ;;  %v416_v35 = vpop.f32.mrb[13].mxu0  ;;  %669 = vst [vmem:[%s1647_s2 + $0x170] sm:$0xff] %v1366_v34  ;;  %v1375_v36 = vpop.f32.mrb[13].mxu1  ;;  %v770_v51 = vmul.f32 %v1012_v32, %v1012_v32 }
 0x10f   :  { %635 = vst [vmem:[%s1647_s2 + $0x60] sm:$0xff] %v416_v35  ;;  %v698_v37 = vadd.f32 %v697_v33, %v416_v35  ;;  %v768_v38 = vmul.f32 %v416_v35, %v416_v35  ;;  %v830_v39 = vadd.f32 %v829_v31, %v767_v30  ;;  %v1013_v40 = vpop.f32.mrb[14].mxu0  ;;  %667 = vst [vmem:[%s1647_s2 + $0x160] sm:$0xff] %v1375_v36  ;;  %v1384_v42 = vpop.f32.mrb[14].mxu1 }
 0x110   :  { %638 = vst [vmem:[%s1647_s2 + $0x78] sm:$0xff] %v1013_v40  ;;  %v419_v44 = vpop.f32.mrb[15].mxu0  ;;  %670 = vst [vmem:[%s1647_s2 + $0x178] sm:$0xff] %v1384_v42  ;;  %v1393_v46 = vpop.f32.mrb[15].mxu1  ;;  %v771_v54 = vmul.f32 %v1013_v40, %v1013_v40 }
 0x111   :  { %v831_v48 = vadd.f32 %v830_v39, %v768_v38  ;;  %636 = vst [vmem:[%s1647_s2 + $0x68] sm:$0xff] %v419_v44  ;;  %v699_v49 = vadd.f32 %v698_v37, %v419_v44  ;;  %v769_v50 = vmul.f32 %v419_v44, %v419_v44  ;;  %668 = vst [vmem:[%s1647_s2 + $0x168] sm:$0xff] %v1393_v46 }
 0x113   :  { %v700_v52 = vadd.f32 %v1012_v32, %v699_v49  ;;  %v832_v53 = vadd.f32 %v831_v48, %v769_v50 }
 0x115   :  { %v833_v55 = vadd.f32 %v832_v53, %v770_v51  ;;  %v1016_v56 = vpop.f32.mrb[16].mxu0  ;;  %v701_v57 = vadd.f32 %v1013_v40, %v700_v52  ;;  %v1402_v59 = vpop.f32.mrb[16].mxu1 }
 0x116   :  { %641 = vst [vmem:[%s1647_s2 + $0x90] sm:$0xff] %v1016_v56  ;;  %v432_v61 = vpop.f32.mrb[17].mxu0  ;;  %673 = vst [vmem:[%s1647_s2 + $0x190] sm:$0xff] %v1402_v59  ;;  %v1411_v62 = vpop.f32.mrb[17].mxu1  ;;  %v774_v11 = vmul.f32 %v1016_v56, %v1016_v56 }
 0x117   :  { %639 = vst [vmem:[%s1647_s2 + $0x80] sm:$0xff] %v432_v61  ;;  %v702_v63 = vadd.f32 %v701_v57, %v432_v61  ;;  %v772_v0 = vmul.f32 %v432_v61, %v432_v61  ;;  %v834_v2 = vadd.f32 %v833_v55, %v771_v54  ;;  %v1017_v4 = vpop.f32.mrb[18].mxu0  ;;  %671 = vst [vmem:[%s1647_s2 + $0x180] sm:$0xff] %v1411_v62  ;;  %v1420_v5 = vpop.f32.mrb[18].mxu1 }
 0x118   :  { %642 = vst [vmem:[%s1647_s2 + $0x98] sm:$0xff] %v1017_v4  ;;  %v435_v6 = vpop.f32.mrb[19].mxu0  ;;  %674 = vst [vmem:[%s1647_s2 + $0x198] sm:$0xff] %v1420_v5  ;;  %v1429_v7 = vpop.f32.mrb[19].mxu1  ;;  %v775_v15 = vmul.f32 %v1017_v4, %v1017_v4 }
 0x119   :  { %v835_v8 = vadd.f32 %v834_v2, %v772_v0  ;;  %640 = vst [vmem:[%s1647_s2 + $0x88] sm:$0xff] %v435_v6  ;;  %v703_v9 = vadd.f32 %v702_v63, %v435_v6  ;;  %v773_v10 = vmul.f32 %v435_v6, %v435_v6  ;;  %672 = vst [vmem:[%s1647_s2 + $0x188] sm:$0xff] %v1429_v7 }
 0x11b   :  { %v704_v12 = vadd.f32 %v1016_v56, %v703_v9  ;;  %v836_v13 = vadd.f32 %v835_v8, %v773_v10 }
 0x11d   :  { %v837_v17 = vadd.f32 %v836_v13, %v774_v11  ;;  %v1020_v18 = vpop.f32.mrb[20].mxu0  ;;  %v705_v19 = vadd.f32 %v1017_v4, %v704_v12  ;;  %v1438_v20 = vpop.f32.mrb[20].mxu1 }
 0x11e   :  { %645 = vst [vmem:[%s1647_s2 + $0xb0] sm:$0xff] %v1020_v18  ;;  %v448_v22 = vpop.f32.mrb[21].mxu0  ;;  %677 = vst [vmem:[%s1647_s2 + $0x1b0] sm:$0xff] %v1438_v20  ;;  %v1447_v24 = vpop.f32.mrb[21].mxu1  ;;  %v778_v37 = vmul.f32 %v1020_v18, %v1020_v18 }
 0x11f   :  { %643 = vst [vmem:[%s1647_s2 + $0xa0] sm:$0xff] %v448_v22  ;;  %v706_v25 = vadd.f32 %v705_v19, %v448_v22  ;;  %v776_v26 = vmul.f32 %v448_v22, %v448_v22  ;;  %v838_v27 = vadd.f32 %v837_v17, %v775_v15  ;;  %v1021_v28 = vpop.f32.mrb[22].mxu0  ;;  %675 = vst [vmem:[%s1647_s2 + $0x1a0] sm:$0xff] %v1447_v24  ;;  %v1456_v29 = vpop.f32.mrb[22].mxu1 }
 0x120   :  { %646 = vst [vmem:[%s1647_s2 + $0xb8] sm:$0xff] %v1021_v28  ;;  %v451_v30 = vpop.f32.mrb[23].mxu0  ;;  %678 = vst [vmem:[%s1647_s2 + $0x1b8] sm:$0xff] %v1456_v29  ;;  %v1465_v31 = vpop.f32.mrb[23].mxu1  ;;  %v779_v40 = vmul.f32 %v1021_v28, %v1021_v28 }
 0x121   :  { %v839_v32 = vadd.f32 %v838_v27, %v776_v26  ;;  %644 = vst [vmem:[%s1647_s2 + $0xa8] sm:$0xff] %v451_v30  ;;  %v707_v33 = vadd.f32 %v706_v25, %v451_v30  ;;  %v777_v35 = vmul.f32 %v451_v30, %v451_v30  ;;  %676 = vst [vmem:[%s1647_s2 + $0x1a8] sm:$0xff] %v1465_v31 }
 0x123   :  { %v708_v38 = vadd.f32 %v1020_v18, %v707_v33  ;;  %v840_v39 = vadd.f32 %v839_v32, %v777_v35 }
 0x125   :  { %v841_v44 = vadd.f32 %v840_v39, %v778_v37  ;;  %v1024_v48 = vpop.f32.mrb[24].mxu0  ;;  %v709_v49 = vadd.f32 %v1021_v28, %v708_v38  ;;  %v1474_v50 = vpop.f32.mrb[24].mxu1 }
 0x126   :  { %649 = vst [vmem:[%s1647_s2 + $0xd0] sm:$0xff] %v1024_v48  ;;  %v464_v51 = vpop.f32.mrb[25].mxu0  ;;  %681 = vst [vmem:[%s1647_s2 + $0x1d0] sm:$0xff] %v1474_v50  ;;  %v1483_v52 = vpop.f32.mrb[25].mxu1  ;;  %v782_v6 = vmul.f32 %v1024_v48, %v1024_v48 }
 0x127   :  { %647 = vst [vmem:[%s1647_s2 + $0xc0] sm:$0xff] %v464_v51  ;;  %v710_v53 = vadd.f32 %v709_v49, %v464_v51  ;;  %v780_v54 = vmul.f32 %v464_v51, %v464_v51  ;;  %v842_v55 = vadd.f32 %v841_v44, %v779_v40  ;;  %v1025_v56 = vpop.f32.mrb[26].mxu0  ;;  %679 = vst [vmem:[%s1647_s2 + $0x1c0] sm:$0xff] %v1483_v52  ;;  %v1492_v57 = vpop.f32.mrb[26].mxu1 }
 0x128   :  { %650 = vst [vmem:[%s1647_s2 + $0xd8] sm:$0xff] %v1025_v56  ;;  %v467_v61 = vpop.f32.mrb[27].mxu0  ;;  %682 = vst [vmem:[%s1647_s2 + $0x1d8] sm:$0xff] %v1492_v57  ;;  %v1501_v63 = vpop.f32.mrb[27].mxu1  ;;  %v783_v10 = vmul.f32 %v1025_v56, %v1025_v56  ;;  %v788_v49 = vmul.f32 %v1267_v43, %v1267_v43 }
 0x129   :  { %v843_v0 = vadd.f32 %v842_v55, %v780_v54  ;;  %648 = vst [vmem:[%s1647_s2 + $0xc8] sm:$0xff] %v467_v61  ;;  %v711_v2 = vadd.f32 %v710_v53, %v467_v61  ;;  %v781_v4 = vmul.f32 %v467_v61, %v467_v61  ;;  %680 = vst [vmem:[%s1647_s2 + $0x1c8] sm:$0xff] %v1501_v63 }
 0x12a   :  { %v790_v61 = vmul.f32 %v1258_v41, %v1258_v41 }
 0x12b   :  { %v712_v8 = vadd.f32 %v1024_v48, %v711_v2  ;;  %v844_v9 = vadd.f32 %v843_v0, %v781_v4  ;;  %v791_v4 = vmul.f32 %v1276_v45, %v1276_v45 }
 0x12d   :  { %v845_v11 = vadd.f32 %v844_v9, %v782_v6  ;;  %v1028_v12 = vpop.f32.mrb[28].mxu0  ;;  %v713_v13 = vadd.f32 %v1025_v56, %v712_v8  ;;  %v1510_v15 = vpop.f32.mrb[28].mxu1  ;;  %v789_v56 = vmul.f32 %v1285_v47, %v1285_v47 }
 0x12e   :  { %653 = vst [vmem:[%s1647_s2 + $0xf0] sm:$0xff] %v1028_v12  ;;  %v480_v17 = vpop.f32.mrb[29].mxu0  ;;  %685 = vst [vmem:[%s1647_s2 + $0x1f0] sm:$0xff] %v1510_v15  ;;  %v1519_v18 = vpop.f32.mrb[29].mxu1  ;;  %v786_v37 = vmul.f32 %v1028_v12, %v1028_v12 }
 0x12f   :  { %651 = vst [vmem:[%s1647_s2 + $0xe0] sm:$0xff] %v480_v17  ;;  %v714_v19 = vadd.f32 %v713_v13, %v480_v17  ;;  %v784_v22 = vmul.f32 %v480_v17, %v480_v17  ;;  %v846_v25 = vadd.f32 %v845_v11, %v783_v10  ;;  %v1029_v26 = vpop.f32.mrb[30].mxu0  ;;  %683 = vst [vmem:[%s1647_s2 + $0x1e0] sm:$0xff] %v1519_v18  ;;  %v1528_v27 = vpop.f32.mrb[30].mxu1 }
 0x130   :  { %654 = vst [vmem:[%s1647_s2 + $0xf8] sm:$0xff] %v1029_v26  ;;  %v483_v28 = vpop.f32.mrb[31].mxu0  ;;  %686 = vst [vmem:[%s1647_s2 + $0x1f8] sm:$0xff] %v1528_v27  ;;  %v1537_v30 = vpop.f32.mrb[31].mxu1  ;;  %v787_v40 = vmul.f32 %v1029_v26, %v1029_v26 }
 0x131   :  { %v847_v32 = vadd.f32 %v846_v25, %v784_v22  ;;  %652 = vst [vmem:[%s1647_s2 + $0xe8] sm:$0xff] %v483_v28  ;;  %v715_v33 = vadd.f32 %v714_v19, %v483_v28  ;;  %v785_v35 = vmul.f32 %v483_v28, %v483_v28  ;;  %684 = vst [vmem:[%s1647_s2 + $0x1e8] sm:$0xff] %v1537_v30 }
 0x133   :  { %v716_v38 = vadd.f32 %v1028_v12, %v715_v33  ;;  %v848_v39 = vadd.f32 %v847_v32, %v785_v35  ;;  %v793_v12 = vmul.f32 %v1321_v3, %v1321_v3  ;;  %v797_v32 = vmul.f32 %v1357_v23, %v1357_v23 }
 0x135   :  { %v849_v44 = vadd.f32 %v848_v39, %v786_v37  ;;  %v717_v48 = vadd.f32 %v1029_v26, %v716_v38 }
 0x137   :  { %v718_v51 = vadd.f32 %v717_v48, %v1267_v43  ;;  %v850_v53 = vadd.f32 %v849_v44, %v787_v40  ;;  %v792_v43 = vmul.f32 %v1303_v60, %v1303_v60  ;;  %v801_v48 = vmul.f32 %v1393_v46, %v1393_v46 }
 0x139   :  { %v851_v54 = vadd.f32 %v850_v53, %v788_v49  ;;  %v719_v55 = vadd.f32 %v718_v51, %v1285_v47 }
 0x13b   :  { %v720_v0 = vadd.f32 %v1258_v41, %v719_v55  ;;  %v852_v2 = vadd.f32 %v851_v54, %v789_v56  ;;  %v794_v41 = vmul.f32 %v1294_v58, %v1294_v58 }
 0x13d   :  { %v853_v6 = vadd.f32 %v852_v2, %v790_v61  ;;  %v721_v8 = vadd.f32 %v1276_v45, %v720_v0  ;;  %v795_v45 = vmul.f32 %v1312_v1, %v1312_v1  ;;  %v805_v0 = vmul.f32 %v1429_v7, %v1429_v7 }
 0x13f   :  { %v722_v9 = vadd.f32 %v721_v8, %v1303_v60  ;;  %v854_v10 = vadd.f32 %v853_v6, %v791_v4  ;;  %v796_v60 = vmul.f32 %v1339_v16, %v1339_v16 }
 0x141   :  { %v855_v11 = vadd.f32 %v854_v10, %v792_v43  ;;  %v723_v47 = vadd.f32 %v722_v9, %v1321_v3 }
 0x143   :  { %v724_v13 = vadd.f32 %v1294_v58, %v723_v47  ;;  %v856_v17 = vadd.f32 %v855_v11, %v793_v12  ;;  %v798_v58 = vmul.f32 %v1330_v14, %v1330_v14  ;;  %v809_v11 = vmul.f32 %v1465_v31, %v1465_v31 }
 0x145   :  { %v857_v19 = vadd.f32 %v856_v17, %v794_v41  ;;  %v725_v22 = vadd.f32 %v1312_v1, %v724_v13  ;;  %v799_v1 = vmul.f32 %v1348_v21, %v1348_v21 }
 0x147   :  { %v726_v25 = vadd.f32 %v725_v22, %v1339_v16  ;;  %v858_v26 = vadd.f32 %v857_v19, %v795_v45  ;;  %v800_v16 = vmul.f32 %v1375_v36, %v1375_v36  ;;  %v813_v22 = vmul.f32 %v1501_v63, %v1501_v63 }
 0x149   :  { %v859_v28 = vadd.f32 %v858_v26, %v796_v60  ;;  %v727_v3 = vadd.f32 %v726_v25, %v1357_v23 }
 0x14b   :  { %v728_v33 = vadd.f32 %v1330_v14, %v727_v3  ;;  %v860_v35 = vadd.f32 %v859_v28, %v797_v32  ;;  %v802_v14 = vmul.f32 %v1366_v34, %v1366_v34 }
 0x14d   :  { %v861_v37 = vadd.f32 %v860_v35, %v798_v58  ;;  %v729_v38 = vadd.f32 %v1348_v21, %v728_v33  ;;  %v803_v21 = vmul.f32 %v1384_v42, %v1384_v42  ;;  %v817_v33 = vmul.f32 %v1537_v30, %v1537_v30 }
 0x14f   :  { %v730_v39 = vadd.f32 %v729_v38, %v1375_v36  ;;  %v862_v40 = vadd.f32 %v861_v37, %v799_v1  ;;  %v804_v36 = vmul.f32 %v1411_v62, %v1411_v62 }
 0x151   :  { %v863_v44 = vadd.f32 %v862_v40, %v800_v16  ;;  %v731_v23 = vadd.f32 %v730_v39, %v1393_v46 }
 0x153   :  { %v732_v49 = vadd.f32 %v1366_v34, %v731_v23  ;;  %v864_v51 = vadd.f32 %v863_v44, %v801_v48  ;;  %v806_v34 = vmul.f32 %v1402_v59, %v1402_v59 }
 0x155   :  { %v865_v53 = vadd.f32 %v864_v51, %v802_v14  ;;  %v733_v54 = vadd.f32 %v1384_v42, %v732_v49  ;;  %v807_v42 = vmul.f32 %v1420_v5, %v1420_v5 }
 0x157   :  { %v734_v55 = vadd.f32 %v733_v54, %v1411_v62  ;;  %v866_v56 = vadd.f32 %v865_v53, %v803_v21  ;;  %v808_v62 = vmul.f32 %v1447_v24, %v1447_v24 }
 0x159   :  { %v867_v61 = vadd.f32 %v866_v56, %v804_v36  ;;  %v735_v46 = vadd.f32 %v734_v55, %v1429_v7 }
 0x15b   :  { %v736_v2 = vadd.f32 %v1402_v59, %v735_v46  ;;  %v868_v4 = vadd.f32 %v867_v61, %v805_v0  ;;  %v810_v59 = vmul.f32 %v1438_v20, %v1438_v20 }
 0x15d   :  { %v869_v6 = vadd.f32 %v868_v4, %v806_v34  ;;  %v737_v8 = vadd.f32 %v1420_v5, %v736_v2  ;;  %v811_v5 = vmul.f32 %v1456_v29, %v1456_v29 }
 0x15f   :  { %v738_v43 = vadd.f32 %v737_v8, %v1447_v24  ;;  %v870_v9 = vadd.f32 %v869_v6, %v807_v42  ;;  %v812_v24 = vmul.f32 %v1483_v52, %v1483_v52 }
 0x161   :  { %v871_v10 = vadd.f32 %v870_v9, %v808_v62  ;;  %v739_v7 = vadd.f32 %v738_v43, %v1465_v31 }
 0x163   :  { %v740_v47 = vadd.f32 %v1438_v20, %v739_v7  ;;  %v872_v12 = vadd.f32 %v871_v10, %v809_v11  ;;  %v814_v20 = vmul.f32 %v1474_v50, %v1474_v50 }
 0x165   :  { %v873_v41 = vadd.f32 %v872_v12, %v810_v59  ;;  %v741_v13 = vadd.f32 %v1456_v29, %v740_v47  ;;  %v815_v29 = vmul.f32 %v1492_v57, %v1492_v57 }
 0x167   :  { %v742_v17 = vadd.f32 %v741_v13, %v1483_v52  ;;  %v874_v45 = vadd.f32 %v873_v41, %v811_v5  ;;  %v816_v52 = vmul.f32 %v1519_v18, %v1519_v18 }
 0x169   :  { %v875_v19 = vadd.f32 %v874_v45, %v812_v24  ;;  %v743_v31 = vadd.f32 %v742_v17, %v1501_v63 }
 0x16b   :  { %v744_v60 = vadd.f32 %v1474_v50, %v743_v31  ;;  %v876_v25 = vadd.f32 %v875_v19, %v813_v22  ;;  %v818_v50 = vmul.f32 %v1510_v15, %v1510_v15 }
 0x16d   :  { %v877_v26 = vadd.f32 %v876_v25, %v814_v20  ;;  %v745_v28 = vadd.f32 %v1492_v57, %v744_v60  ;;  %v819_v57 = vmul.f32 %v1528_v27, %v1528_v27 }
 0x16f   :  { %v746_v3 = vadd.f32 %v745_v28, %v1519_v18  ;;  %v878_v32 = vadd.f32 %v877_v26, %v815_v29 }
 0x171   :  { %v879_v58 = vadd.f32 %v878_v32, %v816_v52  ;;  %v747_v63 = vadd.f32 %v746_v3, %v1537_v30 }
 0x173   :  { %v748_v35 = vadd.f32 %v1510_v15, %v747_v63  ;;  %v880_v1 = vadd.f32 %v879_v58, %v817_v33 }
 0x175   :  { %v749_v37 = vadd.f32 %v1528_v27, %v748_v35  ;;  %v881_v38 = vadd.f32 %v880_v1, %v818_v50 }
 0x177   :  { %v750_v18 = vrot.slane %v749_v37, 4  ;;  %v882_v16 = vadd.f32 %v881_v38, %v819_v57 }
 0x179   :  { %v751_v39 = vadd.f32 %v750_v18, %v749_v37  ;;  %v883_v40 = vrot.slane %v882_v16, 4 }
 0x17b   :  { %v752_v44 = vrot.slane %v751_v39, 2  ;;  %v884_v23 = vadd.f32 %v883_v40, %v882_v16 }
 0x17d   :  { %v753_v48 = vadd.f32 %v752_v44, %v751_v39  ;;  %v885_v30 = vrot.slane %v884_v23, 2 }
 0x17f   :  { %v754_v14 = vrot.slane %v753_v48, 1  ;;  %v886_v49 = vadd.f32 %v885_v30, %v884_v23 }
 0x181   :  { %v887_v51 = vrot.slane %v886_v49, 1  ;;  %v755_v15 = vadd.f32 %v754_v14, %v753_v48 }
 0x183   :  { %v888_v21 = vadd.f32 %v887_v51, %v886_v49 }
 0x185   :  { %v890_v53 = vsel %vm889_vm0, %v755_v15, %v888_v21 }
 0x186   :  { %v892_v54 = vsel %vm891_vm1, %v890_v53, 0.0 }
 0x187   :  { %893 = vst [vmem:[%s1648_s3] sm:$0xff] %v892_v54 }

// kernel: basic_block_forward.7
= control target key start
LH: loop header
LB: loop body
LE: loop exit
PB: predicated region body
PF: predicated region fallthrough
CT: control target
= control target key end

     0   :  { %s1511_s0 = inlined_call_operand.vmem [shape: f32[512,128], index: 0, kind: input, shape index: {}]   ;;  %s1512_s1 = inlined_call_operand.vmem [shape: f32[512,128], index: 1, kind: input, shape index: {}]   ;;  %s1513_s2 = inlined_call_operand.vmem [shape: f32[1,128], index: 2, kind: input, shape index: {}]   ;;  %s1514_s3 = inlined_call_operand.vmem [shape: f32[1,128], index: 3, kind: input, shape index: {}]   ;;  %s1515_s4 = inlined_call_operand.vmem [shape: f32[1,128], index: 4, kind: input, shape index: {}]   ;;  %s1516_s5 = inlined_call_operand.vmem [shape: f32[1,128], index: 5, kind: input, shape index: {}]   ;;  %s1517_s6 = inlined_call_operand.vmem [shape: f32[512,128], index: 6, kind: output, shape index: {}]  }
   0x1   :  { %v23_v0 = vld [vmem:[%s1511_s0] sm:$0xff]  ;;  %v24_v8 = vld [vmem:[%s1511_s0 + $0x8] sm:$0xff]  ;;  %v25_v10 = vld [vmem:[%s1511_s0 + $0x10] sm:$0xff] }
   0x2   :  { %v680_v1 = vld [vmem:[%s1513_s2] ss:$0 sm:$0xff]  ;;  %v230_v9 = vld [vmem:[%s1512_s1 + $0x8] sm:$0xff]  ;;  %v231_v15 = vld [vmem:[%s1512_s1 + $0x10] sm:$0xff] }
   0x3   :  { %v685_v2 = vld [vmem:[%s1514_s3] ss:$0 sm:$0xff]  ;;  %v94_v3 = vmul.f32 %v680_v1, %v23_v0  ;;  %v95_v12 = vmul.f32 %v680_v1, %v24_v8  ;;  %v96_v14 = vmul.f32 %v680_v1, %v25_v10  ;;  %v26_v16 = vld [vmem:[%s1511_s0 + $0x18] sm:$0xff]  ;;  %v28_v24 = vld [vmem:[%s1511_s0 + $0x28] sm:$0xff] }
   0x4   :  { %v229_v4 = vld [vmem:[%s1512_s1] sm:$0xff]  ;;  %v232_v17 = vld [vmem:[%s1512_s1 + $0x18] sm:$0xff]  ;;  %v97_v20 = vmul.f32 %v680_v1, %v26_v16  ;;  %v234_v29 = vld [vmem:[%s1512_s1 + $0x28] sm:$0xff]  ;;  %v99_v38 = vmul.f32 %v680_v1, %v28_v24 }
   0x5   :  { %v694_v5 = vld [vmem:[%s1515_s4] ss:$0 sm:$0xff]  ;;  %v165_v11 = vadd.f32 %v685_v2, %v94_v3  ;;  %v166_v25 = vadd.f32 %v685_v2, %v95_v12  ;;  %v167_v27 = vadd.f32 %v685_v2, %v96_v14  ;;  %v29_v34 = vld [vmem:[%s1511_s0 + $0x30] sm:$0xff]  ;;  %v30_v44 = vld [vmem:[%s1511_s0 + $0x38] sm:$0xff] }
   0x6   :  { %v699_v6 = vld [vmem:[%s1516_s5] ss:$0 sm:$0xff]  ;;  %v300_v7 = vmul.f32 %v694_v5, %v229_v4  ;;  %v301_v13 = vmul.f32 %v694_v5, %v230_v9  ;;  %v302_v19 = vmul.f32 %v694_v5, %v231_v15  ;;  %v303_v21 = vmul.f32 %v694_v5, %v232_v17  ;;  %v235_v39 = vld [vmem:[%s1512_s1 + $0x30] sm:$0xff]  ;;  %v236_v45 = vld [vmem:[%s1512_s1 + $0x38] sm:$0xff] }
   0x7   :  { %v27_v22 = vld [vmem:[%s1511_s0 + $0x20] sm:$0xff]  ;;  %v168_v32 = vadd.f32 %v685_v2, %v97_v20  ;;  %v305_v43 = vmul.f32 %v694_v5, %v234_v29  ;;  %v170_v48 = vadd.f32 %v685_v2, %v99_v38  ;;  %v100_v49 = vmul.f32 %v680_v1, %v29_v34  ;;  %v32_v56 = vld [vmem:[%s1511_s0 + $0x48] sm:$0xff]  ;;  %v33_v4 = vld [vmem:[%s1511_s0 + $0x50] sm:$0xff] }
   0x8   :  { %v371_v18 = vadd.f32 %v699_v6, %v300_v7  ;;  %v233_v23 = vld [vmem:[%s1512_s1 + $0x20] sm:$0xff]  ;;  %v372_v26 = vadd.f32 %v699_v6, %v301_v13  ;;  %v98_v28 = vmul.f32 %v680_v1, %v27_v22  ;;  %v373_v31 = vadd.f32 %v699_v6, %v302_v19  ;;  %v238_v3 = vld [vmem:[%s1512_s1 + $0x48] sm:$0xff]  ;;  %v34_v12 = vld [vmem:[%s1511_s0 + $0x58] sm:$0xff] }
   0x9   :  { %v374_v33 = vadd.f32 %v699_v6, %v303_v21  ;;  %v304_v37 = vmul.f32 %v694_v5, %v233_v23  ;;  %v31_v50 = vld [vmem:[%s1511_s0 + $0x40] sm:$0xff]  ;;  %v376_v54 = vadd.f32 %v699_v6, %v305_v43  ;;  %v306_v55 = vmul.f32 %v694_v5, %v235_v39  ;;  %v240_v17 = vld [vmem:[%s1512_s1 + $0x58] sm:$0xff]  ;;  %v37_v34 = vld [vmem:[%s1511_s0 + $0x70] sm:$0xff] }
   0xa   :  { %v435_v30 = vadd.f32 %v371_v18, %v165_v11  ;;  %v436_v35 = vadd.f32 %v372_v26, %v166_v25  ;;  %v169_v36 = vadd.f32 %v685_v2, %v98_v28  ;;  %v437_v41 = vadd.f32 %v373_v31, %v167_v27  ;;  %v237_v51 = vld [vmem:[%s1512_s1 + $0x40] sm:$0xff]  ;;  %v239_v11 = vld [vmem:[%s1512_s1 + $0x50] sm:$0xff]  ;;  %v36_v28 = vld [vmem:[%s1511_s0 + $0x68] sm:$0xff] }
   0xb   :  { %v438_v42 = vadd.f32 %v374_v33, %v168_v32  ;;  %v375_v47 = vadd.f32 %v699_v6, %v304_v37  ;;  %v171_v58 = vadd.f32 %v685_v2, %v100_v49  ;;  %v101_v59 = vmul.f32 %v680_v1, %v30_v44  ;;  %v35_v22 = vld [vmem:[%s1511_s0 + $0x60] sm:$0xff]  ;;  %v242_v33 = vld [vmem:[%s1512_s1 + $0x68] sm:$0xff]  ;;  %v243_v43 = vld [vmem:[%s1512_s1 + $0x70] sm:$0xff] }
   0xc   :  { %v499_v40 = vmax.f32 %v435_v30, 0.0  ;;  %v500_v46 = vmax.f32 %v436_v35, 0.0  ;;  %v501_v52 = vmax.f32 %v437_v41, 0.0  ;;  %v307_v60 = vmul.f32 %v694_v5, %v236_v45  ;;  %v241_v27 = vld [vmem:[%s1512_s1 + $0x60] sm:$0xff]  ;;  %v244_v49 = vld [vmem:[%s1512_s1 + $0x78] sm:$0xff] }
   0xd   :  { %v502_v53 = vmax.f32 %v438_v42, 0.0  ;;  %v439_v57 = vadd.f32 %v375_v47, %v169_v36  ;;  %v440_v61 = vadd.f32 %v376_v54, %v170_v48  ;;  %v377_v62 = vadd.f32 %v699_v6, %v306_v55  ;;  %v38_v48 = vld [vmem:[%s1511_s0 + $0x78] sm:$0xff]  ;;  %v39_v54 = vld [vmem:[%s1511_s0 + $0x80] sm:$0xff] }
   0xe   :  { %563 = vst [vmem:[%s1517_s6] sm:$0xff] %v499_v40  ;;  %564 = vst [vmem:[%s1517_s6 + $0x8] sm:$0xff] %v500_v46  ;;  %v102_v63 = vmul.f32 %v680_v1, %v31_v50  ;;  %v308_v0 = vmul.f32 %v694_v5, %v237_v51  ;;  %v172_v8 = vadd.f32 %v685_v2, %v101_v59  ;;  %v245_v55 = vld [vmem:[%s1512_s1 + $0x80] sm:$0xff] }
   0xf   :  { %565 = vst [vmem:[%s1517_s6 + $0x10] sm:$0xff] %v501_v52  ;;  %566 = vst [vmem:[%s1517_s6 + $0x18] sm:$0xff] %v502_v53  ;;  %v503_v7 = vmax.f32 %v439_v57, 0.0  ;;  %v378_v9 = vadd.f32 %v699_v6, %v307_v60  ;;  %v103_v10 = vmul.f32 %v680_v1, %v32_v56  ;;  %v504_v13 = vmax.f32 %v440_v61, 0.0  ;;  %v40_v60 = vld [vmem:[%s1511_s0 + $0x88] sm:$0xff] }
  0x10   :  { %v441_v14 = vadd.f32 %v377_v62, %v171_v58  ;;  %v173_v15 = vadd.f32 %v685_v2, %v102_v63  ;;  %v379_v16 = vadd.f32 %v699_v6, %v308_v0  ;;  %v309_v20 = vmul.f32 %v694_v5, %v238_v3 }
  0x11   :  { %567 = vst [vmem:[%s1517_s6 + $0x20] sm:$0xff] %v503_v7  ;;  %v442_v18 = vadd.f32 %v378_v9, %v172_v8  ;;  %v174_v19 = vadd.f32 %v685_v2, %v103_v10  ;;  %v104_v21 = vmul.f32 %v680_v1, %v33_v4  ;;  %568 = vst [vmem:[%s1517_s6 + $0x28] sm:$0xff] %v504_v13  ;;  %v246_v9 = vld [vmem:[%s1512_s1 + $0x88] sm:$0xff]  ;;  %v41_v10 = vld [vmem:[%s1511_s0 + $0x90] sm:$0xff] }
  0x12   :  { %v505_v23 = vmax.f32 %v441_v14, 0.0  ;;  %v443_v24 = vadd.f32 %v379_v16, %v173_v15  ;;  %v310_v25 = vmul.f32 %v694_v5, %v239_v11  ;;  %v105_v26 = vmul.f32 %v680_v1, %v34_v12  ;;  %v247_v15 = vld [vmem:[%s1512_s1 + $0x90] sm:$0xff]  ;;  %v42_v16 = vld [vmem:[%s1511_s0 + $0x98] sm:$0xff] }
  0x13   :  { %v506_v29 = vmax.f32 %v442_v18, 0.0  ;;  %v380_v30 = vadd.f32 %v699_v6, %v309_v20  ;;  %v175_v31 = vadd.f32 %v685_v2, %v104_v21  ;;  %v311_v32 = vmul.f32 %v694_v5, %v240_v17  ;;  %v248_v21 = vld [vmem:[%s1512_s1 + $0x98] sm:$0xff] }
  0x14   :  { %569 = vst [vmem:[%s1517_s6 + $0x30] sm:$0xff] %v505_v23  ;;  %v507_v35 = vmax.f32 %v443_v24, 0.0  ;;  %v381_v36 = vadd.f32 %v699_v6, %v310_v25  ;;  %v176_v37 = vadd.f32 %v685_v2, %v105_v26  ;;  %v106_v38 = vmul.f32 %v680_v1, %v35_v22  ;;  %v43_v26 = vld [vmem:[%s1511_s0 + $0xa0] sm:$0xff] }
  0x15   :  { %570 = vst [vmem:[%s1517_s6 + $0x38] sm:$0xff] %v506_v29  ;;  %v444_v39 = vadd.f32 %v380_v30, %v174_v19  ;;  %v382_v40 = vadd.f32 %v699_v6, %v311_v32  ;;  %v312_v41 = vmul.f32 %v694_v5, %v241_v27  ;;  %v107_v42 = vmul.f32 %v680_v1, %v36_v28  ;;  %v44_v32 = vld [vmem:[%s1511_s0 + $0xa8] sm:$0xff] }
  0x16   :  { %571 = vst [vmem:[%s1517_s6 + $0x40] sm:$0xff] %v507_v35  ;;  %v445_v44 = vadd.f32 %v381_v36, %v175_v31  ;;  %v177_v45 = vadd.f32 %v685_v2, %v106_v38  ;;  %v313_v46 = vmul.f32 %v694_v5, %v242_v33  ;;  %v108_v47 = vmul.f32 %v680_v1, %v37_v34  ;;  %v249_v31 = vld [vmem:[%s1512_s1 + $0xa0] sm:$0xff]  ;;  %v45_v38 = vld [vmem:[%s1511_s0 + $0xb0] sm:$0xff] }
  0x17   :  { %v508_v50 = vmax.f32 %v444_v39, 0.0  ;;  %v446_v51 = vadd.f32 %v382_v40, %v176_v37  ;;  %v383_v52 = vadd.f32 %v699_v6, %v312_v41  ;;  %v178_v53 = vadd.f32 %v685_v2, %v107_v42  ;;  %v250_v37 = vld [vmem:[%s1512_s1 + $0xa8] sm:$0xff] }
  0x18   :  { %v509_v56 = vmax.f32 %v445_v44, 0.0  ;;  %v384_v57 = vadd.f32 %v699_v6, %v313_v46  ;;  %v179_v58 = vadd.f32 %v685_v2, %v108_v47  ;;  %v314_v59 = vmul.f32 %v694_v5, %v243_v43  ;;  %v251_v47 = vld [vmem:[%s1512_s1 + $0xb0] sm:$0xff] }
  0x19   :  { %572 = vst [vmem:[%s1517_s6 + $0x48] sm:$0xff] %v508_v50  ;;  %v510_v61 = vmax.f32 %v446_v51, 0.0  ;;  %v447_v62 = vadd.f32 %v383_v52, %v177_v45  ;;  %v109_v63 = vmul.f32 %v680_v1, %v38_v48  ;;  %v315_v0 = vmul.f32 %v694_v5, %v244_v49  ;;  %v46_v52 = vld [vmem:[%s1511_s0 + $0xb8] sm:$0xff] }
  0x1a   :  { %573 = vst [vmem:[%s1517_s6 + $0x50] sm:$0xff] %v509_v56  ;;  %v448_v3 = vadd.f32 %v384_v57, %v178_v53  ;;  %v385_v4 = vadd.f32 %v699_v6, %v314_v59  ;;  %v110_v7 = vmul.f32 %v680_v1, %v39_v54  ;;  %v316_v8 = vmul.f32 %v694_v5, %v245_v55  ;;  %v252_v53 = vld [vmem:[%s1512_s1 + $0xb8] sm:$0xff]  ;;  %v253_v59 = vld [vmem:[%s1512_s1 + $0xc0] sm:$0xff] }
  0x1b   :  { %574 = vst [vmem:[%s1517_s6 + $0x58] sm:$0xff] %v510_v61  ;;  %v511_v11 = vmax.f32 %v447_v62, 0.0  ;;  %v180_v12 = vadd.f32 %v685_v2, %v109_v63  ;;  %v386_v13 = vadd.f32 %v699_v6, %v315_v0  ;;  %v111_v14 = vmul.f32 %v680_v1, %v40_v60  ;;  %v48_v0 = vld [vmem:[%s1511_s0 + $0xc8] sm:$0xff] }
  0x1c   :  { %v512_v17 = vmax.f32 %v448_v3, 0.0  ;;  %v449_v18 = vadd.f32 %v385_v4, %v179_v58  ;;  %v181_v19 = vadd.f32 %v685_v2, %v110_v7  ;;  %v387_v20 = vadd.f32 %v699_v6, %v316_v8  ;;  %v47_v58 = vld [vmem:[%s1511_s0 + $0xc0] sm:$0xff] }
  0x1d   :  { %575 = vst [vmem:[%s1517_s6 + $0x60] sm:$0xff] %v511_v11  ;;  %v450_v22 = vadd.f32 %v386_v13, %v180_v12  ;;  %v182_v23 = vadd.f32 %v685_v2, %v111_v14  ;;  %v317_v24 = vmul.f32 %v694_v5, %v246_v9  ;;  %v112_v25 = vmul.f32 %v680_v1, %v41_v10  ;;  %v254_v13 = vld [vmem:[%s1512_s1 + $0xc8] sm:$0xff]  ;;  %v49_v14 = vld [vmem:[%s1511_s0 + $0xd0] sm:$0xff] }
  0x1e   :  { %576 = vst [vmem:[%s1517_s6 + $0x68] sm:$0xff] %v512_v17  ;;  %v513_v27 = vmax.f32 %v449_v18, 0.0  ;;  %v451_v28 = vadd.f32 %v387_v20, %v181_v19  ;;  %v318_v29 = vmul.f32 %v694_v5, %v247_v15  ;;  %v113_v30 = vmul.f32 %v680_v1, %v42_v16  ;;  %v255_v19 = vld [vmem:[%s1512_s1 + $0xd0] sm:$0xff]  ;;  %v50_v20 = vld [vmem:[%s1511_s0 + $0xd8] sm:$0xff] }
  0x1f   :  { %v514_v33 = vmax.f32 %v450_v22, 0.0  ;;  %v388_v34 = vadd.f32 %v699_v6, %v317_v24  ;;  %v183_v35 = vadd.f32 %v685_v2, %v112_v25  ;;  %v319_v36 = vmul.f32 %v694_v5, %v248_v21  ;;  %v256_v25 = vld [vmem:[%s1512_s1 + $0xd8] sm:$0xff] }
  0x20   :  { %577 = vst [vmem:[%s1517_s6 + $0x70] sm:$0xff] %v513_v27  ;;  %v515_v39 = vmax.f32 %v451_v28, 0.0  ;;  %v389_v40 = vadd.f32 %v699_v6, %v318_v29  ;;  %v184_v41 = vadd.f32 %v685_v2, %v113_v30  ;;  %v114_v42 = vmul.f32 %v680_v1, %v43_v26  ;;  %v51_v30 = vld [vmem:[%s1511_s0 + $0xe0] sm:$0xff] }
  0x21   :  { %578 = vst [vmem:[%s1517_s6 + $0x78] sm:$0xff] %v514_v33  ;;  %v452_v43 = vadd.f32 %v388_v34, %v182_v23  ;;  %v390_v44 = vadd.f32 %v699_v6, %v319_v36  ;;  %v320_v45 = vmul.f32 %v694_v5, %v249_v31  ;;  %v115_v46 = vmul.f32 %v680_v1, %v44_v32  ;;  %v52_v36 = vld [vmem:[%s1511_s0 + $0xe8] sm:$0xff] }
  0x22   :  { %579 = vst [vmem:[%s1517_s6 + $0x80] sm:$0xff] %v515_v39  ;;  %v453_v48 = vadd.f32 %v389_v40, %v183_v35  ;;  %v185_v49 = vadd.f32 %v685_v2, %v114_v42  ;;  %v321_v50 = vmul.f32 %v694_v5, %v250_v37  ;;  %v116_v51 = vmul.f32 %v680_v1, %v45_v38  ;;  %v257_v35 = vld [vmem:[%s1512_s1 + $0xe0] sm:$0xff]  ;;  %v53_v42 = vld [vmem:[%s1511_s0 + $0xf0] sm:$0xff] }
  0x23   :  { %v516_v54 = vmax.f32 %v452_v43, 0.0  ;;  %v454_v55 = vadd.f32 %v390_v44, %v184_v41  ;;  %v391_v56 = vadd.f32 %v699_v6, %v320_v45  ;;  %v186_v57 = vadd.f32 %v685_v2, %v115_v46  ;;  %v258_v41 = vld [vmem:[%s1512_s1 + $0xe8] sm:$0xff] }
  0x24   :  { %v517_v60 = vmax.f32 %v453_v48, 0.0  ;;  %v392_v61 = vadd.f32 %v699_v6, %v321_v50  ;;  %v187_v62 = vadd.f32 %v685_v2, %v116_v51  ;;  %v322_v63 = vmul.f32 %v694_v5, %v251_v47  ;;  %v259_v51 = vld [vmem:[%s1512_s1 + $0xf0] sm:$0xff] }
  0x25   :  { %580 = vst [vmem:[%s1517_s6 + $0x88] sm:$0xff] %v516_v54  ;;  %v518_v3 = vmax.f32 %v454_v55, 0.0  ;;  %v455_v4 = vadd.f32 %v391_v56, %v185_v49  ;;  %v117_v7 = vmul.f32 %v680_v1, %v46_v52  ;;  %v323_v8 = vmul.f32 %v694_v5, %v252_v53  ;;  %v54_v56 = vld [vmem:[%s1511_s0 + $0xf8] sm:$0xff] }
  0x26   :  { %581 = vst [vmem:[%s1517_s6 + $0x90] sm:$0xff] %v517_v60  ;;  %v456_v9 = vadd.f32 %v392_v61, %v186_v57  ;;  %v393_v10 = vadd.f32 %v699_v6, %v322_v63  ;;  %v118_v11 = vmul.f32 %v680_v1, %v47_v58  ;;  %v324_v12 = vmul.f32 %v694_v5, %v253_v59  ;;  %v260_v57 = vld [vmem:[%s1512_s1 + $0xf8] sm:$0xff]  ;;  %v261_v63 = vld [vmem:[%s1512_s1 + $0x100] sm:$0xff] }
  0x27   :  { %582 = vst [vmem:[%s1517_s6 + $0x98] sm:$0xff] %v518_v3  ;;  %v519_v15 = vmax.f32 %v455_v4, 0.0  ;;  %v188_v16 = vadd.f32 %v685_v2, %v117_v7  ;;  %v394_v17 = vadd.f32 %v699_v6, %v323_v8  ;;  %v119_v18 = vmul.f32 %v680_v1, %v48_v0  ;;  %v56_v8 = vld [vmem:[%s1511_s0 + $0x108] sm:$0xff] }
  0x28   :  { %v520_v21 = vmax.f32 %v456_v9, 0.0  ;;  %v457_v22 = vadd.f32 %v393_v10, %v187_v62  ;;  %v189_v23 = vadd.f32 %v685_v2, %v118_v11  ;;  %v395_v24 = vadd.f32 %v699_v6, %v324_v12  ;;  %v55_v62 = vld [vmem:[%s1511_s0 + $0x100] sm:$0xff] }
  0x29   :  { %583 = vst [vmem:[%s1517_s6 + $0xa0] sm:$0xff] %v519_v15  ;;  %v458_v26 = vadd.f32 %v394_v17, %v188_v16  ;;  %v190_v27 = vadd.f32 %v685_v2, %v119_v18  ;;  %v325_v28 = vmul.f32 %v694_v5, %v254_v13  ;;  %v120_v29 = vmul.f32 %v680_v1, %v49_v14  ;;  %v262_v17 = vld [vmem:[%s1512_s1 + $0x108] sm:$0xff]  ;;  %v57_v18 = vld [vmem:[%s1511_s0 + $0x110] sm:$0xff] }
  0x2a   :  { %584 = vst [vmem:[%s1517_s6 + $0xa8] sm:$0xff] %v520_v21  ;;  %v521_v31 = vmax.f32 %v457_v22, 0.0  ;;  %v459_v32 = vadd.f32 %v395_v24, %v189_v23  ;;  %v326_v33 = vmul.f32 %v694_v5, %v255_v19  ;;  %v121_v34 = vmul.f32 %v680_v1, %v50_v20  ;;  %v263_v23 = vld [vmem:[%s1512_s1 + $0x110] sm:$0xff]  ;;  %v58_v24 = vld [vmem:[%s1511_s0 + $0x118] sm:$0xff] }
  0x2b   :  { %v522_v37 = vmax.f32 %v458_v26, 0.0  ;;  %v396_v38 = vadd.f32 %v699_v6, %v325_v28  ;;  %v191_v39 = vadd.f32 %v685_v2, %v120_v29  ;;  %v327_v40 = vmul.f32 %v694_v5, %v256_v25  ;;  %v264_v29 = vld [vmem:[%s1512_s1 + $0x118] sm:$0xff] }
  0x2c   :  { %585 = vst [vmem:[%s1517_s6 + $0xb0] sm:$0xff] %v521_v31  ;;  %v523_v43 = vmax.f32 %v459_v32, 0.0  ;;  %v397_v44 = vadd.f32 %v699_v6, %v326_v33  ;;  %v192_v45 = vadd.f32 %v685_v2, %v121_v34  ;;  %v122_v46 = vmul.f32 %v680_v1, %v51_v30  ;;  %v59_v34 = vld [vmem:[%s1511_s0 + $0x120] sm:$0xff] }
  0x2d   :  { %586 = vst [vmem:[%s1517_s6 + $0xb8] sm:$0xff] %v522_v37  ;;  %v460_v47 = vadd.f32 %v396_v38, %v190_v27  ;;  %v398_v48 = vadd.f32 %v699_v6, %v327_v40  ;;  %v328_v49 = vmul.f32 %v694_v5, %v257_v35  ;;  %v123_v50 = vmul.f32 %v680_v1, %v52_v36  ;;  %v60_v40 = vld [vmem:[%s1511_s0 + $0x128] sm:$0xff] }
  0x2e   :  { %587 = vst [vmem:[%s1517_s6 + $0xc0] sm:$0xff] %v523_v43  ;;  %v461_v52 = vadd.f32 %v397_v44, %v191_v39  ;;  %v193_v53 = vadd.f32 %v685_v2, %v122_v46  ;;  %v329_v54 = vmul.f32 %v694_v5, %v258_v41  ;;  %v124_v55 = vmul.f32 %v680_v1, %v53_v42  ;;  %v265_v39 = vld [vmem:[%s1512_s1 + $0x120] sm:$0xff]  ;;  %v61_v46 = vld [vmem:[%s1511_s0 + $0x130] sm:$0xff] }
  0x2f   :  { %v524_v58 = vmax.f32 %v460_v47, 0.0  ;;  %v462_v59 = vadd.f32 %v398_v48, %v192_v45  ;;  %v399_v60 = vadd.f32 %v699_v6, %v328_v49  ;;  %v194_v61 = vadd.f32 %v685_v2, %v123_v50  ;;  %v266_v45 = vld [vmem:[%s1512_s1 + $0x128] sm:$0xff] }
  0x30   :  { %v525_v0 = vmax.f32 %v461_v52, 0.0  ;;  %v400_v3 = vadd.f32 %v699_v6, %v329_v54  ;;  %v195_v4 = vadd.f32 %v685_v2, %v124_v55  ;;  %v330_v7 = vmul.f32 %v694_v5, %v259_v51  ;;  %v267_v55 = vld [vmem:[%s1512_s1 + $0x130] sm:$0xff] }
  0x31   :  { %588 = vst [vmem:[%s1517_s6 + $0xc8] sm:$0xff] %v524_v58  ;;  %v526_v9 = vmax.f32 %v462_v59, 0.0  ;;  %v463_v10 = vadd.f32 %v399_v60, %v193_v53  ;;  %v125_v11 = vmul.f32 %v680_v1, %v54_v56  ;;  %v331_v12 = vmul.f32 %v694_v5, %v260_v57  ;;  %v62_v60 = vld [vmem:[%s1511_s0 + $0x138] sm:$0xff] }
  0x32   :  { %589 = vst [vmem:[%s1517_s6 + $0xd0] sm:$0xff] %v525_v0  ;;  %v464_v13 = vadd.f32 %v400_v3, %v194_v61  ;;  %v401_v14 = vadd.f32 %v699_v6, %v330_v7  ;;  %v126_v15 = vmul.f32 %v680_v1, %v55_v62  ;;  %v332_v16 = vmul.f32 %v694_v5, %v261_v63  ;;  %v268_v61 = vld [vmem:[%s1512_s1 + $0x138] sm:$0xff]  ;;  %v269_v7 = vld [vmem:[%s1512_s1 + $0x140] sm:$0xff] }
  0x33   :  { %590 = vst [vmem:[%s1517_s6 + $0xd8] sm:$0xff] %v526_v9  ;;  %v527_v19 = vmax.f32 %v463_v10, 0.0  ;;  %v196_v20 = vadd.f32 %v685_v2, %v125_v11  ;;  %v402_v21 = vadd.f32 %v699_v6, %v331_v12  ;;  %v127_v22 = vmul.f32 %v680_v1, %v56_v8  ;;  %v64_v12 = vld [vmem:[%s1511_s0 + $0x148] sm:$0xff] }
  0x34   :  { %v528_v25 = vmax.f32 %v464_v13, 0.0  ;;  %v465_v26 = vadd.f32 %v401_v14, %v195_v4  ;;  %v197_v27 = vadd.f32 %v685_v2, %v126_v15  ;;  %v403_v28 = vadd.f32 %v699_v6, %v332_v16  ;;  %v63_v4 = vld [vmem:[%s1511_s0 + $0x140] sm:$0xff] }
  0x35   :  { %591 = vst [vmem:[%s1517_s6 + $0xe0] sm:$0xff] %v527_v19  ;;  %v466_v30 = vadd.f32 %v402_v21, %v196_v20  ;;  %v198_v31 = vadd.f32 %v685_v2, %v127_v22  ;;  %v333_v32 = vmul.f32 %v694_v5, %v262_v17  ;;  %v128_v33 = vmul.f32 %v680_v1, %v57_v18  ;;  %v270_v21 = vld [vmem:[%s1512_s1 + $0x148] sm:$0xff]  ;;  %v65_v22 = vld [vmem:[%s1511_s0 + $0x150] sm:$0xff] }
  0x36   :  { %592 = vst [vmem:[%s1517_s6 + $0xe8] sm:$0xff] %v528_v25  ;;  %v529_v35 = vmax.f32 %v465_v26, 0.0  ;;  %v467_v36 = vadd.f32 %v403_v28, %v197_v27  ;;  %v334_v37 = vmul.f32 %v694_v5, %v263_v23  ;;  %v129_v38 = vmul.f32 %v680_v1, %v58_v24  ;;  %v271_v27 = vld [vmem:[%s1512_s1 + $0x150] sm:$0xff]  ;;  %v66_v28 = vld [vmem:[%s1511_s0 + $0x158] sm:$0xff] }
  0x37   :  { %v530_v41 = vmax.f32 %v466_v30, 0.0  ;;  %v404_v42 = vadd.f32 %v699_v6, %v333_v32  ;;  %v199_v43 = vadd.f32 %v685_v2, %v128_v33  ;;  %v335_v44 = vmul.f32 %v694_v5, %v264_v29  ;;  %v272_v33 = vld [vmem:[%s1512_s1 + $0x158] sm:$0xff] }
  0x38   :  { %593 = vst [vmem:[%s1517_s6 + $0xf0] sm:$0xff] %v529_v35  ;;  %v531_v47 = vmax.f32 %v467_v36, 0.0  ;;  %v405_v48 = vadd.f32 %v699_v6, %v334_v37  ;;  %v200_v49 = vadd.f32 %v685_v2, %v129_v38  ;;  %v130_v50 = vmul.f32 %v680_v1, %v59_v34  ;;  %v67_v38 = vld [vmem:[%s1511_s0 + $0x160] sm:$0xff] }
  0x39   :  { %594 = vst [vmem:[%s1517_s6 + $0xf8] sm:$0xff] %v530_v41  ;;  %v468_v51 = vadd.f32 %v404_v42, %v198_v31  ;;  %v406_v52 = vadd.f32 %v699_v6, %v335_v44  ;;  %v336_v53 = vmul.f32 %v694_v5, %v265_v39  ;;  %v131_v54 = vmul.f32 %v680_v1, %v60_v40  ;;  %v68_v44 = vld [vmem:[%s1511_s0 + $0x168] sm:$0xff] }
  0x3a   :  { %595 = vst [vmem:[%s1517_s6 + $0x100] sm:$0xff] %v531_v47  ;;  %v469_v56 = vadd.f32 %v405_v48, %v199_v43  ;;  %v201_v57 = vadd.f32 %v685_v2, %v130_v50  ;;  %v337_v58 = vmul.f32 %v694_v5, %v266_v45  ;;  %v132_v59 = vmul.f32 %v680_v1, %v61_v46  ;;  %v273_v43 = vld [vmem:[%s1512_s1 + $0x160] sm:$0xff]  ;;  %v69_v50 = vld [vmem:[%s1511_s0 + $0x170] sm:$0xff] }
  0x3b   :  { %v532_v62 = vmax.f32 %v468_v51, 0.0  ;;  %v470_v63 = vadd.f32 %v406_v52, %v200_v49  ;;  %v407_v0 = vadd.f32 %v699_v6, %v336_v53  ;;  %v202_v3 = vadd.f32 %v685_v2, %v131_v54  ;;  %v274_v49 = vld [vmem:[%s1512_s1 + $0x168] sm:$0xff] }
  0x3c   :  { %v533_v8 = vmax.f32 %v469_v56, 0.0  ;;  %v408_v9 = vadd.f32 %v699_v6, %v337_v58  ;;  %v203_v10 = vadd.f32 %v685_v2, %v132_v59  ;;  %v338_v11 = vmul.f32 %v694_v5, %v267_v55  ;;  %v275_v59 = vld [vmem:[%s1512_s1 + $0x170] sm:$0xff] }
  0x3d   :  { %596 = vst [vmem:[%s1517_s6 + $0x108] sm:$0xff] %v532_v62  ;;  %v534_v13 = vmax.f32 %v470_v63, 0.0  ;;  %v471_v14 = vadd.f32 %v407_v0, %v201_v57  ;;  %v133_v15 = vmul.f32 %v680_v1, %v62_v60  ;;  %v339_v16 = vmul.f32 %v694_v5, %v268_v61  ;;  %v70_v0 = vld [vmem:[%s1511_s0 + $0x178] sm:$0xff] }
  0x3e   :  { %597 = vst [vmem:[%s1517_s6 + $0x110] sm:$0xff] %v533_v8  ;;  %v472_v17 = vadd.f32 %v408_v9, %v202_v3  ;;  %v409_v18 = vadd.f32 %v699_v6, %v338_v11  ;;  %v134_v19 = vmul.f32 %v680_v1, %v63_v4  ;;  %v340_v20 = vmul.f32 %v694_v5, %v269_v7  ;;  %v276_v3 = vld [vmem:[%s1512_s1 + $0x178] sm:$0xff]  ;;  %v277_v11 = vld [vmem:[%s1512_s1 + $0x180] sm:$0xff] }
  0x3f   :  { %598 = vst [vmem:[%s1517_s6 + $0x118] sm:$0xff] %v534_v13  ;;  %v535_v23 = vmax.f32 %v471_v14, 0.0  ;;  %v204_v24 = vadd.f32 %v685_v2, %v133_v15  ;;  %v410_v25 = vadd.f32 %v699_v6, %v339_v16  ;;  %v135_v26 = vmul.f32 %v680_v1, %v64_v12  ;;  %v72_v16 = vld [vmem:[%s1511_s0 + $0x188] sm:$0xff] }
  0x40   :  { %v536_v29 = vmax.f32 %v472_v17, 0.0  ;;  %v473_v30 = vadd.f32 %v409_v18, %v203_v10  ;;  %v205_v31 = vadd.f32 %v685_v2, %v134_v19  ;;  %v411_v32 = vadd.f32 %v699_v6, %v340_v20  ;;  %v71_v10 = vld [vmem:[%s1511_s0 + $0x180] sm:$0xff] }
  0x41   :  { %599 = vst [vmem:[%s1517_s6 + $0x120] sm:$0xff] %v535_v23  ;;  %v474_v34 = vadd.f32 %v410_v25, %v204_v24  ;;  %v206_v35 = vadd.f32 %v685_v2, %v135_v26  ;;  %v341_v36 = vmul.f32 %v694_v5, %v270_v21  ;;  %v136_v37 = vmul.f32 %v680_v1, %v65_v22  ;;  %v278_v25 = vld [vmem:[%s1512_s1 + $0x188] sm:$0xff]  ;;  %v73_v26 = vld [vmem:[%s1511_s0 + $0x190] sm:$0xff] }
  0x42   :  { %600 = vst [vmem:[%s1517_s6 + $0x128] sm:$0xff] %v536_v29  ;;  %v537_v39 = vmax.f32 %v473_v30, 0.0  ;;  %v475_v40 = vadd.f32 %v411_v32, %v205_v31  ;;  %v342_v41 = vmul.f32 %v694_v5, %v271_v27  ;;  %v137_v42 = vmul.f32 %v680_v1, %v66_v28  ;;  %v279_v31 = vld [vmem:[%s1512_s1 + $0x190] sm:$0xff]  ;;  %v74_v32 = vld [vmem:[%s1511_s0 + $0x198] sm:$0xff] }
  0x43   :  { %v538_v45 = vmax.f32 %v474_v34, 0.0  ;;  %v412_v46 = vadd.f32 %v699_v6, %v341_v36  ;;  %v207_v47 = vadd.f32 %v685_v2, %v136_v37  ;;  %v343_v48 = vmul.f32 %v694_v5, %v272_v33  ;;  %v280_v37 = vld [vmem:[%s1512_s1 + $0x198] sm:$0xff] }
  0x44   :  { %601 = vst [vmem:[%s1517_s6 + $0x130] sm:$0xff] %v537_v39  ;;  %v539_v51 = vmax.f32 %v475_v40, 0.0  ;;  %v413_v52 = vadd.f32 %v699_v6, %v342_v41  ;;  %v208_v53 = vadd.f32 %v685_v2, %v137_v42  ;;  %v138_v54 = vmul.f32 %v680_v1, %v67_v38  ;;  %v75_v42 = vld [vmem:[%s1511_s0 + $0x1a0] sm:$0xff] }
  0x45   :  { %602 = vst [vmem:[%s1517_s6 + $0x138] sm:$0xff] %v538_v45  ;;  %v476_v55 = vadd.f32 %v412_v46, %v206_v35  ;;  %v414_v56 = vadd.f32 %v699_v6, %v343_v48  ;;  %v344_v57 = vmul.f32 %v694_v5, %v273_v43  ;;  %v139_v58 = vmul.f32 %v680_v1, %v68_v44  ;;  %v76_v48 = vld [vmem:[%s1511_s0 + $0x1a8] sm:$0xff] }
  0x46   :  { %603 = vst [vmem:[%s1517_s6 + $0x140] sm:$0xff] %v539_v51  ;;  %v477_v60 = vadd.f32 %v413_v52, %v207_v47  ;;  %v209_v61 = vadd.f32 %v685_v2, %v138_v54  ;;  %v345_v62 = vmul.f32 %v694_v5, %v274_v49  ;;  %v140_v63 = vmul.f32 %v680_v1, %v69_v50  ;;  %v281_v47 = vld [vmem:[%s1512_s1 + $0x1a0] sm:$0xff]  ;;  %v77_v54 = vld [vmem:[%s1511_s0 + $0x1b0] sm:$0xff] }
  0x47   :  { %v540_v4 = vmax.f32 %v476_v55, 0.0  ;;  %v478_v7 = vadd.f32 %v414_v56, %v208_v53  ;;  %v415_v8 = vadd.f32 %v699_v6, %v344_v57  ;;  %v210_v9 = vadd.f32 %v685_v2, %v139_v58  ;;  %v282_v53 = vld [vmem:[%s1512_s1 + $0x1a8] sm:$0xff] }
  0x48   :  { %v541_v12 = vmax.f32 %v477_v60, 0.0  ;;  %v416_v13 = vadd.f32 %v699_v6, %v345_v62  ;;  %v211_v14 = vadd.f32 %v685_v2, %v140_v63  ;;  %v346_v15 = vmul.f32 %v694_v5, %v275_v59  ;;  %v283_v63 = vld [vmem:[%s1512_s1 + $0x1b0] sm:$0xff] }
  0x49   :  { %604 = vst [vmem:[%s1517_s6 + $0x148] sm:$0xff] %v540_v4  ;;  %v542_v17 = vmax.f32 %v478_v7, 0.0  ;;  %v479_v18 = vadd.f32 %v415_v8, %v209_v61  ;;  %v141_v19 = vmul.f32 %v680_v1, %v70_v0  ;;  %v347_v20 = vmul.f32 %v694_v5, %v276_v3  ;;  %v78_v8 = vld [vmem:[%s1511_s0 + $0x1b8] sm:$0xff] }
  0x4a   :  { %605 = vst [vmem:[%s1517_s6 + $0x150] sm:$0xff] %v541_v12  ;;  %v480_v21 = vadd.f32 %v416_v13, %v210_v9  ;;  %v417_v22 = vadd.f32 %v699_v6, %v346_v15  ;;  %v142_v23 = vmul.f32 %v680_v1, %v71_v10  ;;  %v348_v24 = vmul.f32 %v694_v5, %v277_v11  ;;  %v284_v9 = vld [vmem:[%s1512_s1 + $0x1b8] sm:$0xff]  ;;  %v285_v15 = vld [vmem:[%s1512_s1 + $0x1c0] sm:$0xff] }
  0x4b   :  { %606 = vst [vmem:[%s1517_s6 + $0x158] sm:$0xff] %v542_v17  ;;  %v543_v27 = vmax.f32 %v479_v18, 0.0  ;;  %v212_v28 = vadd.f32 %v685_v2, %v141_v19  ;;  %v418_v29 = vadd.f32 %v699_v6, %v347_v20  ;;  %v143_v30 = vmul.f32 %v680_v1, %v72_v16  ;;  %v80_v20 = vld [vmem:[%s1511_s0 + $0x1c8] sm:$0xff] }
  0x4c   :  { %v544_v33 = vmax.f32 %v480_v21, 0.0  ;;  %v481_v34 = vadd.f32 %v417_v22, %v211_v14  ;;  %v213_v35 = vadd.f32 %v685_v2, %v142_v23  ;;  %v419_v36 = vadd.f32 %v699_v6, %v348_v24  ;;  %v79_v14 = vld [vmem:[%s1511_s0 + $0x1c0] sm:$0xff] }
  0x4d   :  { %607 = vst [vmem:[%s1517_s6 + $0x160] sm:$0xff] %v543_v27  ;;  %v482_v38 = vadd.f32 %v418_v29, %v212_v28  ;;  %v214_v39 = vadd.f32 %v685_v2, %v143_v30  ;;  %v349_v40 = vmul.f32 %v694_v5, %v278_v25  ;;  %v144_v41 = vmul.f32 %v680_v1, %v73_v26  ;;  %v286_v29 = vld [vmem:[%s1512_s1 + $0x1c8] sm:$0xff]  ;;  %v81_v30 = vld [vmem:[%s1511_s0 + $0x1d0] sm:$0xff] }
  0x4e   :  { %608 = vst [vmem:[%s1517_s6 + $0x168] sm:$0xff] %v544_v33  ;;  %v545_v43 = vmax.f32 %v481_v34, 0.0  ;;  %v483_v44 = vadd.f32 %v419_v36, %v213_v35  ;;  %v350_v45 = vmul.f32 %v694_v5, %v279_v31  ;;  %v145_v46 = vmul.f32 %v680_v1, %v74_v32  ;;  %v82_v35 = vld [vmem:[%s1511_s0 + $0x1d8] sm:$0xff] }
  0x4f   :  { %v546_v49 = vmax.f32 %v482_v38, 0.0  ;;  %v420_v50 = vadd.f32 %v699_v6, %v349_v40  ;;  %v215_v51 = vadd.f32 %v685_v2, %v144_v41  ;;  %v351_v52 = vmul.f32 %v694_v5, %v280_v37  ;;  %v288_v40 = vld [vmem:[%s1512_s1 + $0x1d8] sm:$0xff]  ;;  %v635_v41 = vld [vmem:[%s1514_s3] ss:$0 sm:$0xff] }
  0x50   :  { %609 = vst [vmem:[%s1517_s6 + $0x170] sm:$0xff] %v545_v43  ;;  %v547_v55 = vmax.f32 %v483_v44, 0.0  ;;  %v421_v56 = vadd.f32 %v699_v6, %v350_v45  ;;  %v216_v57 = vadd.f32 %v685_v2, %v145_v46  ;;  %v146_v58 = vmul.f32 %v680_v1, %v75_v42  ;;  %v83_v45 = vld [vmem:[%s1511_s0 + $0x1e0] sm:$0xff] }
  0x51   :  { %610 = vst [vmem:[%s1517_s6 + $0x178] sm:$0xff] %v546_v49  ;;  %v484_v59 = vadd.f32 %v420_v50, %v214_v39  ;;  %v422_v60 = vadd.f32 %v699_v6, %v351_v52  ;;  %v352_v61 = vmul.f32 %v694_v5, %v281_v47  ;;  %v147_v62 = vmul.f32 %v680_v1, %v76_v48  ;;  %v289_v50 = vld [vmem:[%s1512_s1 + $0x1e0] sm:$0xff] }
  0x52   :  { %611 = vst [vmem:[%s1517_s6 + $0x180] sm:$0xff] %v547_v55  ;;  %v485_v0 = vadd.f32 %v421_v56, %v215_v51  ;;  %v217_v3 = vadd.f32 %v685_v2, %v146_v58  ;;  %v353_v4 = vmul.f32 %v694_v5, %v282_v53  ;;  %v148_v7 = vmul.f32 %v680_v1, %v77_v54  ;;  %v84_v51 = vld [vmem:[%s1511_s0 + $0x1e8] sm:$0xff]  ;;  %v638_v53 = vld [vmem:[%s1516_s5] ss:$0 sm:$0xff]  ;;  %v85_v58 = vld [vmem:[%s1511_s0 + $0x1f0] sm:$0xff] }
  0x53   :  { %v548_v10 = vmax.f32 %v484_v59, 0.0  ;;  %v486_v11 = vadd.f32 %v422_v60, %v216_v57  ;;  %v423_v12 = vadd.f32 %v699_v6, %v352_v61  ;;  %v218_v13 = vadd.f32 %v685_v2, %v147_v62  ;;  %v290_v57 = vld [vmem:[%s1512_s1 + $0x1e8] sm:$0xff] }
  0x54   :  { %v549_v16 = vmax.f32 %v485_v0, 0.0  ;;  %v424_v17 = vadd.f32 %v699_v6, %v353_v4  ;;  %v219_v18 = vadd.f32 %v685_v2, %v148_v7  ;;  %v354_v19 = vmul.f32 %v694_v5, %v283_v63  ;;  %v291_v7 = vld [vmem:[%s1512_s1 + $0x1f0] sm:$0xff] }
  0x55   :  { %612 = vst [vmem:[%s1517_s6 + $0x188] sm:$0xff] %v548_v10  ;;  %v550_v21 = vmax.f32 %v486_v11, 0.0  ;;  %v487_v22 = vadd.f32 %v423_v12, %v217_v3  ;;  %v149_v23 = vmul.f32 %v680_v1, %v78_v8  ;;  %v355_v24 = vmul.f32 %v694_v5, %v284_v9  ;;  %v86_v12 = vld [vmem:[%s1511_s0 + $0x1f8] sm:$0xff] }
  0x56   :  { %613 = vst [vmem:[%s1517_s6 + $0x190] sm:$0xff] %v549_v16  ;;  %v488_v25 = vadd.f32 %v424_v17, %v218_v13  ;;  %v425_v26 = vadd.f32 %v699_v6, %v354_v19  ;;  %v150_v27 = vmul.f32 %v680_v1, %v79_v14  ;;  %v356_v28 = vmul.f32 %v694_v5, %v285_v15  ;;  %v287_v5 = vld [vmem:[%s1512_s1 + $0x1d0] sm:$0xff]  ;;  %v292_v13 = vld [vmem:[%s1512_s1 + $0x1f8] sm:$0xff] }
  0x57   :  { %614 = vst [vmem:[%s1517_s6 + $0x198] sm:$0xff] %v550_v21  ;;  %v551_v31 = vmax.f32 %v487_v22, 0.0  ;;  %v220_v32 = vadd.f32 %v685_v2, %v149_v23  ;;  %v426_v33 = vadd.f32 %v699_v6, %v355_v24  ;;  %v151_v34 = vmul.f32 %v680_v1, %v80_v20 }
  0x58   :  { %v552_v36 = vmax.f32 %v488_v25, 0.0  ;;  %v489_v37 = vadd.f32 %v425_v26, %v219_v18  ;;  %v221_v38 = vadd.f32 %v685_v2, %v150_v27  ;;  %v427_v39 = vadd.f32 %v699_v6, %v356_v28  ;;  %v636_v2 = vld [vmem:[%s1515_s4] ss:$0 sm:$0xff] }
  0x59   :  { %615 = vst [vmem:[%s1517_s6 + $0x1a0] sm:$0xff] %v551_v31  ;;  %v490_v1 = vadd.f32 %v426_v33, %v220_v32  ;;  %v222_v42 = vadd.f32 %v635_v41, %v151_v34  ;;  %v357_v43 = vmul.f32 %v636_v2, %v286_v29  ;;  %v637_v6 = vld [vmem:[%s1513_s2] ss:$0 sm:$0xff]  ;;  %v358_v48 = vmul.f32 %v636_v2, %v287_v5 }
  0x5a   :  { %v152_v44 = vmul.f32 %v637_v6, %v81_v30  ;;  %616 = vst [vmem:[%s1517_s6 + $0x1a8] sm:$0xff] %v552_v36  ;;  %v553_v46 = vmax.f32 %v489_v37, 0.0  ;;  %v491_v47 = vadd.f32 %v427_v39, %v221_v38  ;;  %v153_v49 = vmul.f32 %v637_v6, %v82_v35 }
  0x5b   :  { %v554_v52 = vmax.f32 %v490_v1, 0.0  ;;  %v428_v54 = vadd.f32 %v638_v53, %v357_v43  ;;  %v359_v56 = vmul.f32 %v636_v2, %v288_v40  ;;  %v429_v60 = vadd.f32 %v638_v53, %v358_v48 }
  0x5c   :  { %v223_v55 = vadd.f32 %v635_v41, %v152_v44  ;;  %617 = vst [vmem:[%s1517_s6 + $0x1b0] sm:$0xff] %v553_v46  ;;  %v555_v59 = vmax.f32 %v491_v47, 0.0  ;;  %v224_v61 = vadd.f32 %v635_v41, %v153_v49  ;;  %v154_v62 = vmul.f32 %v637_v6, %v83_v45 }
  0x5d   :  { %618 = vst [vmem:[%s1517_s6 + $0x1b8] sm:$0xff] %v554_v52  ;;  %v492_v63 = vadd.f32 %v428_v54, %v222_v42  ;;  %v430_v0 = vadd.f32 %v638_v53, %v359_v56  ;;  %v360_v3 = vmul.f32 %v636_v2, %v289_v50  ;;  %v155_v4 = vmul.f32 %v637_v6, %v84_v51 }
  0x5e   :  { %619 = vst [vmem:[%s1517_s6 + $0x1c0] sm:$0xff] %v555_v59  ;;  %v493_v8 = vadd.f32 %v429_v60, %v223_v55  ;;  %v225_v9 = vadd.f32 %v635_v41, %v154_v62  ;;  %v361_v10 = vmul.f32 %v636_v2, %v290_v57  ;;  %v156_v11 = vmul.f32 %v637_v6, %v85_v58 }
  0x5f   :  { %v556_v14 = vmax.f32 %v492_v63, 0.0  ;;  %v494_v15 = vadd.f32 %v430_v0, %v224_v61  ;;  %v431_v16 = vadd.f32 %v638_v53, %v360_v3  ;;  %v226_v17 = vadd.f32 %v635_v41, %v155_v4 }
  0x60   :  { %v557_v18 = vmax.f32 %v493_v8, 0.0  ;;  %v432_v19 = vadd.f32 %v638_v53, %v361_v10  ;;  %v227_v20 = vadd.f32 %v635_v41, %v156_v11  ;;  %v362_v21 = vmul.f32 %v636_v2, %v291_v7 }
  0x61   :  { %620 = vst [vmem:[%s1517_s6 + $0x1c8] sm:$0xff] %v556_v14  ;;  %v558_v22 = vmax.f32 %v494_v15, 0.0  ;;  %v495_v23 = vadd.f32 %v431_v16, %v225_v9  ;;  %v157_v24 = vmul.f32 %v637_v6, %v86_v12  ;;  %v363_v25 = vmul.f32 %v636_v2, %v292_v13 }
  0x62   :  { %621 = vst [vmem:[%s1517_s6 + $0x1d0] sm:$0xff] %v557_v18  ;;  %v496_v26 = vadd.f32 %v432_v19, %v226_v17  ;;  %v433_v27 = vadd.f32 %v638_v53, %v362_v21 }
  0x63   :  { %622 = vst [vmem:[%s1517_s6 + $0x1d8] sm:$0xff] %v558_v22  ;;  %v559_v28 = vmax.f32 %v495_v23, 0.0  ;;  %v228_v29 = vadd.f32 %v635_v41, %v157_v24  ;;  %v434_v30 = vadd.f32 %v638_v53, %v363_v25 }
  0x64   :  { %v560_v31 = vmax.f32 %v496_v26, 0.0  ;;  %v497_v32 = vadd.f32 %v433_v27, %v227_v20 }
  0x65   :  { %623 = vst [vmem:[%s1517_s6 + $0x1e0] sm:$0xff] %v559_v28  ;;  %v498_v33 = vadd.f32 %v434_v30, %v228_v29 }
  0x66   :  { %624 = vst [vmem:[%s1517_s6 + $0x1e8] sm:$0xff] %v560_v31  ;;  %v561_v34 = vmax.f32 %v497_v32, 0.0 }
  0x67   :  { %v562_v5 = vmax.f32 %v498_v33, 0.0 }
  0x68   :  { %625 = vst [vmem:[%s1517_s6 + $0x1f0] sm:$0xff] %v561_v34 }
  0x69   :  { %626 = vst [vmem:[%s1517_s6 + $0x1f8] sm:$0xff] %v562_v5 }

// kernel: basic_block_forward.6
= control target key start
LH: loop header
LB: loop body
LE: loop exit
PB: predicated region body
PF: predicated region fallthrough
CT: control target
= control target key end

     0   :  { %v5427_v0 = vmov 0   ;;  %vm4093_vm0 = vcmask 1040384   ;;  %vm4095_vm1 = vcmask 1041408   ;;  %s7225_s1 = inlined_call_operand.vmem [shape: bf16[1152,128], index: 1, kind: input, shape index: {}]   ;;  %s7226_s0 = inlined_call_operand.vmem [shape: bf16[512,1152], index: 0, kind: input, shape index: {}]   ;;  %s7227_s2 = inlined_call_operand.vmem [shape: f32[512,128], index: 2, kind: output, shape index: {0}]   ;;  %s7228_s3 = inlined_call_operand.vmem [shape: f32[8,128], index: 3, kind: output, shape index: {1}]  }
   0x1   :  { %2382 = vmatprep.subr.bf16.mxu1 %v5427_v0  ;;  %2671 = vmatprep.subr.bf16.mxu0 %v5427_v0  ;;  %v4939_v1 = vld [vmem:[%s7225_s1] sm:$0xff]   ;;  %v4941_v3 = vld [vmem:[%s7225_s1 + $0x8] sm:$0xff]   ;;  %v4943_v5 = vld [vmem:[%s7225_s1 + $0x10] sm:$0xff]  }
   0x2   :  { %v5456_v2 = vld [vmem:[%s7225_s1 + $0x80] sm:$0xff]   ;;  %2383 = vmatpush1.bf16.msra.mxu1 %v4939_v1  ;;  %v5466_v4 = vld [vmem:[%s7225_s1 + $0x88] sm:$0xff]   ;;  %v5477_v6 = vld [vmem:[%s7225_s1 + $0x90] sm:$0xff]  }
   0x3   :  { %2672 = vmatpush1.bf16.msra.mxu0 %v5456_v2  ;;  %2384 = vmatprep.subr.bf16.mxu1 %v5427_v0  ;;  %v4945_v7 = vld [vmem:[%s7225_s1 + $0x18] sm:$0xff]   ;;  %v4947_v9 = vld [vmem:[%s7225_s1 + $0x20] sm:$0xff]   ;;  %v4949_v11 = vld [vmem:[%s7225_s1 + $0x28] sm:$0xff]  }
   0x4   :  { %2673 = vmatprep.subr.bf16.mxu0 %v5427_v0  ;;  %v5488_v8 = vld [vmem:[%s7225_s1 + $0x98] sm:$0xff]   ;;  %v5499_v10 = vld [vmem:[%s7225_s1 + $0xa0] sm:$0xff]   ;;  %v5510_v12 = vld [vmem:[%s7225_s1 + $0xa8] sm:$0xff]  }
   0x5   :  { %v4951_v13 = vld [vmem:[%s7225_s1 + $0x30] sm:$0xff]   ;;  %v4953_v15 = vld [vmem:[%s7225_s1 + $0x38] sm:$0xff]   ;;  %v4955_v17 = vld [vmem:[%s7225_s1 + $0x40] sm:$0xff]  }
   0x6   :  { %2385 = vmatpush1.bf16.msra.mxu1 %v4941_v3  ;;  %v5521_v14 = vld [vmem:[%s7225_s1 + $0xb0] sm:$0xff]   ;;  %v5532_v16 = vld [vmem:[%s7225_s1 + $0xb8] sm:$0xff]   ;;  %v5543_v18 = vld [vmem:[%s7225_s1 + $0xc0] sm:$0xff]  }
   0x7   :  { %2674 = vmatpush1.bf16.msra.mxu0 %v5466_v4  ;;  %2386 = vmatprep.subr.bf16.mxu1 %v5427_v0  ;;  %v4973_v19 = vld [vmem:[%s7226_s0 + $0x4] ss:$36 sps:$4 sm:$0xff]   ;;  %v4976_v21 = vld [vmem:[%s7226_s0 + $0xc] ss:$36 sps:$4 sm:$0xff]   ;;  %v4961_v25 = vld [vmem:[%s7225_s1 + $0x58] sm:$0xff]  }
   0x8   :  { %2675 = vmatprep.subr.bf16.mxu0 %v5427_v0  ;;  %v4957_v20 = vld [vmem:[%s7225_s1 + $0x48] sm:$0xff]   ;;  %2414 = vmatprep.mubr.bf16.mxu1 %v4973_v19  ;;  %v4959_v23 = vld [vmem:[%s7225_s1 + $0x50] sm:$0xff]   ;;  %v5582_v26 = vld [vmem:[%s7225_s1 + $0xd8] sm:$0xff]  }
   0x9   :  { %v5560_v22 = vld [vmem:[%s7225_s1 + $0xc8] sm:$0xff]   ;;  %2703 = vmatprep.mubr.bf16.mxu0 %v4976_v21  ;;  %v5571_v24 = vld [vmem:[%s7225_s1 + $0xd0] sm:$0xff]   ;;  %v4963_v27 = vld [vmem:[%s7225_s1 + $0x60] sm:$0xff]  }
   0xa   :  { %2387 = vmatpush1.bf16.msra.mxu1 %v4943_v5  ;;  %v5593_v28 = vld [vmem:[%s7225_s1 + $0xe0] sm:$0xff]   ;;  %v4965_v29 = vld [vmem:[%s7225_s1 + $0x68] sm:$0xff]   ;;  %v4967_v31 = vld [vmem:[%s7225_s1 + $0x70] sm:$0xff]  }
   0xb   :  { %2676 = vmatpush1.bf16.msra.mxu0 %v5477_v6  ;;  %2388 = vmatprep.subr.bf16.mxu1 %v5427_v0  ;;  %v5604_v30 = vld [vmem:[%s7225_s1 + $0xe8] sm:$0xff]   ;;  %v5615_v32 = vld [vmem:[%s7225_s1 + $0xf0] sm:$0xff]   ;;  %v4969_v33 = vld [vmem:[%s7225_s1 + $0x78] sm:$0xff]  }
   0xc   :  { %2677 = vmatprep.subr.bf16.mxu0 %v5427_v0  ;;  %v5626_v34 = vld [vmem:[%s7225_s1 + $0xf8] sm:$0xff]   ;;  %v4971_v35 = vld [vmem:[%s7226_s0] ss:$36 sps:$4 sm:$0xff]   ;;  %v4974_v36 = vld [vmem:[%s7226_s0 + $0x8] ss:$36 sps:$4 sm:$0xff]  }
   0xd   :  { %v4977_v37 = vld [vmem:[%s7225_s1 + $0x100] sm:$0xff]   ;;  %v4979_v38 = vld [vmem:[%s7226_s0 + $0x4c] ss:$36 sps:$4 sm:$0xff]   ;;  %v4981_v39 = vld [vmem:[%s7226_s0 + $0x54] ss:$36 sps:$4 sm:$0xff]  }
   0xe   :  { %2389 = vmatpush1.bf16.msra.mxu1 %v4945_v7  ;;  %v4978_v40 = vld [vmem:[%s7225_s1 + $0x108] sm:$0xff]   ;;  %v4984_v42 = vld [vmem:[%s7226_s0 + $0x50] ss:$36 sps:$4 sm:$0xff]   ;;  %v4989_v45 = vld [vmem:[%s7226_s0 + $0x9c] ss:$36 sps:$4 sm:$0xff]  }
   0xf   :  { %2678 = vmatpush1.bf16.msra.mxu0 %v5488_v8  ;;  %2390 = vmatprep.subr.bf16.mxu1 %v5427_v0  ;;  %v4983_v41 = vld [vmem:[%s7226_s0 + $0x48] ss:$36 sps:$4 sm:$0xff]   ;;  %v4987_v43 = vld [vmem:[%s7226_s0 + $0x94] ss:$36 sps:$4 sm:$0xff]   ;;  %v4993_v49 = vld [vmem:[%s7225_s1 + $0x120] sm:$0xff]  }
  0x10   :  { %2679 = vmatprep.subr.bf16.mxu0 %v5427_v0  ;;  %v4985_v44 = vld [vmem:[%s7225_s1 + $0x110] sm:$0xff]   ;;  %v4986_v46 = vld [vmem:[%s7225_s1 + $0x118] sm:$0xff]   ;;  %v4997_v51 = vld [vmem:[%s7226_s0 + $0xe4] ss:$36 sps:$4 sm:$0xff]  }
  0x11   :  { %v4991_v47 = vld [vmem:[%s7226_s0 + $0x90] ss:$36 sps:$4 sm:$0xff]   ;;  %v4992_v48 = vld [vmem:[%s7226_s0 + $0x98] ss:$36 sps:$4 sm:$0xff]   ;;  %v4994_v52 = vld [vmem:[%s7225_s1 + $0x128] sm:$0xff]  }
  0x12   :  { %2391 = vmatpush1.bf16.msra.mxu1 %v4947_v9  ;;  %v4995_v50 = vld [vmem:[%s7226_s0 + $0xdc] ss:$36 sps:$4 sm:$0xff]   ;;  %v5003_v55 = vld [vmem:[%s7226_s0 + $0x124] ss:$36 sps:$4 sm:$0xff]   ;;  %v5001_v56 = vld [vmem:[%s7225_s1 + $0x130] sm:$0xff]  }
  0x13   :  { %2680 = vmatpush1.bf16.msra.mxu0 %v5499_v10  ;;  %2392 = vmatprep.subr.bf16.mxu1 %v5427_v0  ;;  %v4999_v53 = vld [vmem:[%s7226_s0 + $0xd8] ss:$36 sps:$4 sm:$0xff]   ;;  %v5000_v54 = vld [vmem:[%s7226_s0 + $0xe0] ss:$36 sps:$4 sm:$0xff]   ;;  %v5005_v57 = vld [vmem:[%s7226_s0 + $0x12c] ss:$36 sps:$4 sm:$0xff]  }
  0x14   :  { %2681 = vmatprep.subr.bf16.mxu0 %v5427_v0  ;;  %v5002_v58 = vld [vmem:[%s7225_s1 + $0x138] sm:$0xff]   ;;  %v5007_v59 = vld [vmem:[%s7226_s0 + $0x120] ss:$36 sps:$4 sm:$0xff]   ;;  %v5008_v60 = vld [vmem:[%s7226_s0 + $0x128] ss:$36 sps:$4 sm:$0xff]  }
  0x15   :  { %v5009_v61 = vld [vmem:[%s7225_s1 + $0x140] sm:$0xff]   ;;  %v5011_v62 = vld [vmem:[%s7226_s0 + $0x16c] ss:$36 sps:$4 sm:$0xff]   ;;  %v5013_v63 = vld [vmem:[%s7226_s0 + $0x174] ss:$36 sps:$4 sm:$0xff]  }
  0x16   :  { %2393 = vmatpush1.bf16.msra.mxu1 %v4949_v11  ;;  %v5010_v1 = vld [vmem:[%s7225_s1 + $0x148] sm:$0xff]   ;;  %v5016_v3 = vld [vmem:[%s7226_s0 + $0x170] ss:$36 sps:$4 sm:$0xff]   ;;  %v5018_v7 = vld [vmem:[%s7225_s1 + $0x158] sm:$0xff]  }
  0x17   :  { %2682 = vmatpush1.bf16.msra.mxu0 %v5510_v12  ;;  %2394 = vmatprep.subr.bf16.mxu1 %v5427_v0  ;;  %v5017_v5 = vld [vmem:[%s7225_s1 + $0x150] sm:$0xff]   ;;  %v5024_v9 = vld [vmem:[%s7226_s0 + $0x1b8] ss:$36 sps:$4 sm:$0xff]  }
  0x18   :  { %2683 = vmatprep.subr.bf16.mxu0 %v5427_v0  ;;  %v5027_v11 = vld [vmem:[%s7226_s0 + $0x1fc] ss:$36 sps:$4 sm:$0xff]   ;;  %v5037_v21 = vld [vmem:[%s7226_s0 + $0x10] ss:$36 sps:$4 sm:$0xff]  }
  0x19   :  { %v5034_v19 = vld [vmem:[%s7225_s1 + $0x178] sm:$0xff]  }
  0x1a   :  { %2395 = vmatpush1.bf16.msra.mxu1 %v4951_v13  ;;  %v5026_v13 = vld [vmem:[%s7225_s1 + $0x168] sm:$0xff]  }
  0x1b   :  { %2684 = vmatpush1.bf16.msra.mxu0 %v5521_v14  ;;  %2396 = vmatprep.subr.bf16.mxu1 %v5427_v0 }
  0x1c   :  { %2685 = vmatprep.subr.bf16.mxu0 %v5427_v0 }
  0x1e   :  { %2397 = vmatpush1.bf16.msra.mxu1 %v4953_v15  ;;  %v5032_v15 = vld [vmem:[%s7226_s0 + $0x200] ss:$36 sps:$4 sm:$0xff]  }
  0x1f   :  { %2686 = vmatpush1.bf16.msra.mxu0 %v5532_v16  ;;  %2398 = vmatprep.subr.bf16.mxu1 %v5427_v0 }
  0x20   :  { %2687 = vmatprep.subr.bf16.mxu0 %v5427_v0 }
  0x22   :  { %2399 = vmatpush1.bf16.msra.mxu1 %v4955_v17  ;;  %v5033_v17 = vld [vmem:[%s7225_s1 + $0x170] sm:$0xff]  }
  0x23   :  { %2688 = vmatpush1.bf16.msra.mxu0 %v5543_v18  ;;  %2400 = vmatprep.subr.bf16.mxu1 %v5427_v0 }
  0x24   :  { %2689 = vmatprep.subr.bf16.mxu0 %v5427_v0 }
  0x26   :  { %2401 = vmatpush1.bf16.msra.mxu1 %v4957_v20  ;;  %v5040_v20 = vld [vmem:[%s7226_s0 + $0x240] ss:$36 sps:$4 sm:$0xff]  }
  0x27   :  { %2690 = vmatpush1.bf16.msra.mxu0 %v5560_v22  ;;  %2402 = vmatprep.subr.bf16.mxu1 %v5427_v0 }
  0x28   :  { %2691 = vmatprep.subr.bf16.mxu0 %v5427_v0 }
  0x2a   :  { %2403 = vmatpush1.bf16.msra.mxu1 %v4959_v23  ;;  %v5041_v23 = vld [vmem:[%s7225_s1 + $0x180] sm:$0xff]  }
  0x2b   :  { %2692 = vmatpush1.bf16.msra.mxu0 %v5571_v24  ;;  %2404 = vmatprep.subr.bf16.mxu1 %v5427_v0 }
  0x2c   :  { %2693 = vmatprep.subr.bf16.mxu0 %v5427_v0 }
  0x2e   :  { %2405 = vmatpush1.bf16.msra.mxu1 %v4961_v25  ;;  %v5046_v25 = vld [vmem:[%s7226_s0 + $0x288] ss:$36 sps:$4 sm:$0xff]  }
  0x2f   :  { %2694 = vmatpush1.bf16.msra.mxu0 %v5582_v26  ;;  %2406 = vmatprep.subr.bf16.mxu1 %v5427_v0 }
  0x30   :  { %2695 = vmatprep.subr.bf16.mxu0 %v5427_v0 }
  0x32   :  { %2407 = vmatpush1.bf16.msra.mxu1 %v4963_v27  ;;  %v5047_v27 = vld [vmem:[%s7226_s0 + $0x58] ss:$36 sps:$4 sm:$0xff]  }
  0x33   :  { %2696 = vmatpush1.bf16.msra.mxu0 %v5593_v28  ;;  %2408 = vmatprep.subr.bf16.mxu1 %v5427_v0 }
  0x34   :  { %2697 = vmatprep.subr.bf16.mxu0 %v5427_v0 }
  0x36   :  { %2409 = vmatpush1.bf16.msra.mxu1 %v4965_v29  ;;  %v5050_v29 = vld [vmem:[%s7226_s0 + $0xa4] ss:$36 sps:$4 sm:$0xff]  }
  0x37   :  { %2698 = vmatpush1.bf16.msra.mxu0 %v5604_v30  ;;  %2410 = vmatprep.subr.bf16.mxu1 %v5427_v0 }
  0x38   :  { %2699 = vmatprep.subr.bf16.mxu0 %v5427_v0 }
  0x3a   :  { %2411 = vmatpush1.bf16.msra.mxu1 %v4967_v31  ;;  %v5052_v31 = vld [vmem:[%s7226_s0 + $0x2d0] ss:$36 sps:$4 sm:$0xff]  }
  0x3b   :  { %2700 = vmatpush1.bf16.msra.mxu0 %v5615_v32  ;;  %2412 = vmatprep.subr.bf16.mxu1 %v5427_v0 }
  0x3c   :  { %2701 = vmatprep.subr.bf16.mxu0 %v5427_v0 }
  0x3e   :  { %2413 = vmatpush1.bf16.msra.mxu1 %v4969_v33  ;;  %v5053_v33 = vld [vmem:[%s7226_s0 + $0xa0] ss:$36 sps:$4 sm:$0xff]  }
  0x3f   :  { %2702 = vmatpush1.bf16.msra.mxu0 %v5626_v34  ;;  %4586 = vmatprep.subr.bf16.mxu1 %v5427_v0 }
  0x40   :  { %2960 = vmatprep.subr.bf16.mxu0 %v5427_v0 }
  0x41   :  { %2415 = vmatmul.mubr.bf16.vlgmr.msra.gmra.mrb[0].mxu1 %v4971_v35  ;;  %v5057_v35 = vld [vmem:[%s7226_s0 + $0xec] ss:$36 sps:$4 sm:$0xff]  }
  0x42   :  { %2704 = vmatmul.mubr.bf16.vlgmr.msra.gmra.mrb[0].mxu0 %v4974_v36  ;;  %4602 = vmatpush1.bf16.msra.mxu1 %v5456_v2  ;;  %v5015_v2 = vld [vmem:[%s7226_s0 + $0x168] ss:$36 sps:$4 sm:$0xff]   ;;  %v5093_v36 = vld [vmem:[%s7225_s1 + $0x1a0] sm:$0xff]  }
  0x43   :  { %2961 = vmatpush1.bf16.msra.mxu0 %v4977_v37  ;;  %2422 = vmatprep.mubr.bf16.mxu1 %v4979_v38  ;;  %v5106_v37 = vld [vmem:[%s7225_s1 + $0x1a8] sm:$0xff]   ;;  %v5059_v38 = vld [vmem:[%s7226_s0 + $0x318] ss:$36 sps:$4 sm:$0xff]  }
  0x44   :  { %2962 = vmatprep.subr.bf16.mxu0 %v5427_v0  ;;  %2711 = vmatprep.mubr.bf16.mxu0 %v4981_v39  ;;  %v5060_v39 = vld [vmem:[%s7226_s0 + $0xe8] ss:$36 sps:$4 sm:$0xff]  }
  0x45   :  { %4587 = vmatprep.subr.bf16.mxu1 %v5427_v0 }
  0x46   :  { %4603 = vmatpush1.bf16.msra.mxu1 %v5466_v4  ;;  %v5019_v4 = vld [vmem:[%s7226_s0 + $0x1b4] ss:$36 sps:$4 sm:$0xff]  }
  0x47   :  { %2963 = vmatpush1.bf16.msra.mxu0 %v4978_v40  ;;  %4588 = vmatprep.subr.bf16.mxu1 %v5427_v0  ;;  %v5061_v40 = vld [vmem:[%s7226_s0 + $0x364] ss:$36 sps:$4 sm:$0xff]  }
  0x48   :  { %2964 = vmatprep.subr.bf16.mxu0 %v5427_v0 }
  0x49   :  { %2423 = vmatmul.mubr.bf16.gmra.mrb[4].mxu1 %v4983_v41  ;;  %v5063_v41 = vld [vmem:[%s7226_s0 + $0x134] ss:$36 sps:$4 sm:$0xff]  }
  0x4a   :  { %2712 = vmatmul.mubr.bf16.gmra.mrb[4].mxu0 %v4984_v42  ;;  %2430 = vmatprep.mubr.bf16.mxu1 %v4987_v43  ;;  %v5119_v42 = vld [vmem:[%s7225_s1 + $0x1b0] sm:$0xff]   ;;  %v5132_v43 = vld [vmem:[%s7225_s1 + $0x1b8] sm:$0xff]  }
  0x4b   :  { %2965 = vmatpush1.bf16.msra.mxu0 %v4985_v44  ;;  %2719 = vmatprep.mubr.bf16.mxu0 %v4989_v45  ;;  %v5065_v44 = vld [vmem:[%s7226_s0 + $0x360] ss:$36 sps:$4 sm:$0xff]   ;;  %v5066_v45 = vld [vmem:[%s7226_s0 + $0x130] ss:$36 sps:$4 sm:$0xff]  }
  0x4c   :  { %2966 = vmatprep.subr.bf16.mxu0 %v5427_v0  ;;  %4604 = vmatpush1.bf16.msra.mxu1 %v5477_v6  ;;  %v5021_v6 = vld [vmem:[%s7226_s0 + $0x1bc] ss:$36 sps:$4 sm:$0xff]  }
  0x4d   :  { %4589 = vmatprep.subr.bf16.mxu1 %v5427_v0 }
  0x4f   :  { %2967 = vmatpush1.bf16.msra.mxu0 %v4986_v46  ;;  %v5068_v46 = vld [vmem:[%s7226_s0 + $0x3ac] ss:$36 sps:$4 sm:$0xff]  }
  0x50   :  { %2968 = vmatprep.subr.bf16.mxu0 %v5427_v0  ;;  %4605 = vmatpush1.bf16.msra.mxu1 %v5488_v8  ;;  %v5023_v8 = vld [vmem:[%s7226_s0 + $0x1b0] ss:$36 sps:$4 sm:$0xff]  }
  0x51   :  { %2431 = vmatmul.mubr.bf16.gmra.mrb[8].mxu1 %v4991_v47  ;;  %4590 = vmatprep.subr.bf16.mxu1 %v5427_v0  ;;  %v5070_v47 = vld [vmem:[%s7226_s0 + $0x17c] ss:$36 sps:$4 sm:$0xff]  }
  0x52   :  { %2720 = vmatmul.mubr.bf16.gmra.mrb[8].mxu0 %v4992_v48  ;;  %2438 = vmatprep.mubr.bf16.mxu1 %v4995_v50  ;;  %v5145_v48 = vld [vmem:[%s7225_s1 + $0x1c0] sm:$0xff]   ;;  %v5072_v50 = vld [vmem:[%s7226_s0 + $0x3a8] ss:$36 sps:$4 sm:$0xff]  }
  0x53   :  { %2969 = vmatpush1.bf16.msra.mxu0 %v4993_v49  ;;  %2727 = vmatprep.mubr.bf16.mxu0 %v4997_v51  ;;  %v5158_v49 = vld [vmem:[%s7225_s1 + $0x1c8] sm:$0xff]   ;;  %v5073_v51 = vld [vmem:[%s7226_s0 + $0x178] ss:$36 sps:$4 sm:$0xff]  }
  0x54   :  { %2970 = vmatprep.subr.bf16.mxu0 %v5427_v0  ;;  %4606 = vmatpush1.bf16.msra.mxu1 %v5499_v10  ;;  %v5025_v10 = vld [vmem:[%s7225_s1 + $0x160] sm:$0xff]  }
  0x55   :  { %4591 = vmatprep.subr.bf16.mxu1 %v5427_v0 }
  0x57   :  { %2971 = vmatpush1.bf16.msra.mxu0 %v4994_v52  ;;  %v5074_v52 = vld [vmem:[%s7226_s0 + $0x3f4] ss:$36 sps:$4 sm:$0xff]  }
  0x58   :  { %2972 = vmatprep.subr.bf16.mxu0 %v5427_v0  ;;  %4607 = vmatpush1.bf16.msra.mxu1 %v5510_v12  ;;  %v5029_v12 = vld [vmem:[%s7226_s0 + $0x204] ss:$36 sps:$4 sm:$0xff]  }
  0x59   :  { %2439 = vmatmul.mubr.bf16.gmra.mrb[12].mxu1 %v4999_v53  ;;  %4592 = vmatprep.subr.bf16.mxu1 %v5427_v0  ;;  %v5076_v53 = vld [vmem:[%s7226_s0 + $0x1c4] ss:$36 sps:$4 sm:$0xff]  }
  0x5a   :  { %2728 = vmatmul.mubr.bf16.gmra.mrb[12].mxu0 %v5000_v54  ;;  %2446 = vmatprep.mubr.bf16.mxu1 %v5003_v55  ;;  %v5171_v54 = vld [vmem:[%s7225_s1 + $0x1d0] sm:$0xff]  }
  0x5b   :  { %2973 = vmatpush1.bf16.msra.mxu0 %v5001_v56  ;;  %2735 = vmatprep.mubr.bf16.mxu0 %v5005_v57  ;;  %v5078_v55 = vld [vmem:[%s7226_s0 + $0x3f0] ss:$36 sps:$4 sm:$0xff]   ;;  %v5079_v56 = vld [vmem:[%s7226_s0 + $0x1c0] ss:$36 sps:$4 sm:$0xff]  }
  0x5c   :  { %2974 = vmatprep.subr.bf16.mxu0 %v5427_v0  ;;  %4608 = vmatpush1.bf16.msra.mxu1 %v5521_v14  ;;  %v5031_v14 = vld [vmem:[%s7226_s0 + $0x1f8] ss:$36 sps:$4 sm:$0xff]  }
  0x5d   :  { %4593 = vmatprep.subr.bf16.mxu1 %v5427_v0  ;;  %v5081_v57 = vld [vmem:[%s7226_s0 + $0x43c] ss:$36 sps:$4 sm:$0xff]  }
  0x5f   :  { %2975 = vmatpush1.bf16.msra.mxu0 %v5002_v58  ;;  %v5083_v58 = vld [vmem:[%s7226_s0 + $0x20c] ss:$36 sps:$4 sm:$0xff]  }
  0x60   :  { %2976 = vmatprep.subr.bf16.mxu0 %v5427_v0  ;;  %4609 = vmatpush1.bf16.msra.mxu1 %v5532_v16  ;;  %v5035_v16 = vld [vmem:[%s7226_s0 + $0x244] ss:$36 sps:$4 sm:$0xff]  }
  0x61   :  { %2447 = vmatmul.mubr.bf16.gmra.mrb[16].mxu1 %v5007_v59  ;;  %4594 = vmatprep.subr.bf16.mxu1 %v5427_v0  ;;  %v5085_v59 = vld [vmem:[%s7226_s0 + $0x438] ss:$36 sps:$4 sm:$0xff]  }
  0x62   :  { %2736 = vmatmul.mubr.bf16.gmra.mrb[16].mxu0 %v5008_v60  ;;  %2454 = vmatprep.mubr.bf16.mxu1 %v5011_v62  ;;  %v5086_v60 = vld [vmem:[%s7226_s0 + $0x208] ss:$36 sps:$4 sm:$0xff]   ;;  %v5184_v62 = vld [vmem:[%s7225_s1 + $0x1d8] sm:$0xff]  }
  0x63   :  { %2977 = vmatpush1.bf16.msra.mxu0 %v5009_v61  ;;  %2743 = vmatprep.mubr.bf16.mxu0 %v5013_v63  ;;  %v5087_v61 = vld [vmem:[%s7226_s0 + $0x484] ss:$36 sps:$4 sm:$0xff]   ;;  %v5089_v63 = vld [vmem:[%s7226_s0 + $0x254] ss:$36 sps:$4 sm:$0xff]  }
  0x64   :  { %2978 = vmatprep.subr.bf16.mxu0 %v5427_v0  ;;  %4610 = vmatpush1.bf16.msra.mxu1 %v5543_v18  ;;  %v5039_v18 = vld [vmem:[%s7226_s0 + $0x14] ss:$36 sps:$4 sm:$0xff]  }
  0x65   :  { %4595 = vmatprep.subr.bf16.mxu1 %v5427_v0 }
  0x67   :  { %2979 = vmatpush1.bf16.msra.mxu0 %v5010_v1  ;;  %v5091_v1 = vld [vmem:[%s7226_s0 + $0x480] ss:$36 sps:$4 sm:$0xff]  }
  0x68   :  { %2980 = vmatprep.subr.bf16.mxu0 %v5427_v0  ;;  %4611 = vmatpush1.bf16.msra.mxu1 %v5560_v22  ;;  %v5042_v22 = vld [vmem:[%s7226_s0 + $0x28c] ss:$36 sps:$4 sm:$0xff]  }
  0x69   :  { %2455 = vmatmul.mubr.bf16.gmra.mrb[20].mxu1 %v5015_v2  ;;  %4596 = vmatprep.subr.bf16.mxu1 %v5427_v0  ;;  %v5092_v2 = vld [vmem:[%s7226_s0 + $0x250] ss:$36 sps:$4 sm:$0xff]  }
  0x6a   :  { %2744 = vmatmul.mubr.bf16.gmra.mrb[20].mxu0 %v5016_v3  ;;  %2462 = vmatprep.mubr.bf16.mxu1 %v5019_v4  ;;  %v5094_v3 = vld [vmem:[%s7226_s0 + $0x4cc] ss:$36 sps:$4 sm:$0xff]   ;;  %v5096_v4 = vld [vmem:[%s7226_s0 + $0x29c] ss:$36 sps:$4 sm:$0xff]  }
  0x6b   :  { %2981 = vmatpush1.bf16.msra.mxu0 %v5017_v5  ;;  %2751 = vmatprep.mubr.bf16.mxu0 %v5021_v6  ;;  %v5982_v5 = vld [vmem:[%s7225_s1 + $0x200] sm:$0xff]   ;;  %v5098_v6 = vld [vmem:[%s7226_s0 + $0x4c8] ss:$36 sps:$4 sm:$0xff]  }
  0x6c   :  { %2982 = vmatprep.subr.bf16.mxu0 %v5427_v0  ;;  %4612 = vmatpush1.bf16.msra.mxu1 %v5571_v24  ;;  %v5044_v24 = vld [vmem:[%s7226_s0 + $0x5c] ss:$36 sps:$4 sm:$0xff]  }
  0x6d   :  { %4597 = vmatprep.subr.bf16.mxu1 %v5427_v0 }
  0x6f   :  { %2983 = vmatpush1.bf16.msra.mxu0 %v5018_v7  ;;  %v5099_v7 = vld [vmem:[%s7226_s0 + $0x298] ss:$36 sps:$4 sm:$0xff]  }
  0x70   :  { %2984 = vmatprep.subr.bf16.mxu0 %v5427_v0  ;;  %4613 = vmatpush1.bf16.msra.mxu1 %v5582_v26  ;;  %v5054_v26 = vld [vmem:[%s7225_s1 + $0x188] sm:$0xff]  }
  0x71   :  { %2463 = vmatmul.mubr.bf16.gmra.mrb[24].mxu1 %v5023_v8  ;;  %4598 = vmatprep.subr.bf16.mxu1 %v5427_v0  ;;  %v5100_v8 = vld [vmem:[%s7226_s0 + $0x514] ss:$36 sps:$4 sm:$0xff]  }
  0x72   :  { %2752 = vmatmul.mubr.bf16.gmra.mrb[24].mxu0 %v5024_v9  ;;  %2470 = vmatprep.mubr.bf16.mxu1 %v5027_v11  ;;  %v5198_v9 = vld [vmem:[%s7225_s1 + $0x1e0] sm:$0xff]   ;;  %v5104_v11 = vld [vmem:[%s7226_s0 + $0x510] ss:$36 sps:$4 sm:$0xff]  }
  0x73   :  { %2985 = vmatpush1.bf16.msra.mxu0 %v5025_v10  ;;  %2759 = vmatprep.mubr.bf16.mxu0 %v5029_v12  ;;  %v5102_v10 = vld [vmem:[%s7226_s0 + $0x2e4] ss:$36 sps:$4 sm:$0xff]  }
  0x74   :  { %2986 = vmatprep.subr.bf16.mxu0 %v5427_v0  ;;  %4614 = vmatpush1.bf16.msra.mxu1 %v5593_v28  ;;  %v5048_v28 = vld [vmem:[%s7226_s0 + $0x2d4] ss:$36 sps:$4 sm:$0xff]   ;;  %v5105_v12 = vld [vmem:[%s7226_s0 + $0x2e0] ss:$36 sps:$4 sm:$0xff]  }
  0x75   :  { %4599 = vmatprep.subr.bf16.mxu1 %v5427_v0 }
  0x77   :  { %2987 = vmatpush1.bf16.msra.mxu0 %v5026_v13  ;;  %v5107_v13 = vld [vmem:[%s7226_s0 + $0x55c] ss:$36 sps:$4 sm:$0xff]  }
  0x78   :  { %2988 = vmatprep.subr.bf16.mxu0 %v5427_v0  ;;  %4615 = vmatpush1.bf16.msra.mxu1 %v5604_v30  ;;  %v5067_v30 = vld [vmem:[%s7225_s1 + $0x190] sm:$0xff]  }
  0x79   :  { %2471 = vmatmul.mubr.bf16.gmra.mrb[28].mxu1 %v5031_v14  ;;  %4600 = vmatprep.subr.bf16.mxu1 %v5427_v0  ;;  %v5109_v14 = vld [vmem:[%s7226_s0 + $0x32c] ss:$36 sps:$4 sm:$0xff]  }
  0x7a   :  { %2760 = vmatmul.mubr.bf16.gmra.mrb[28].mxu0 %v5032_v15  ;;  %2478 = vmatprep.mubr.bf16.mxu1 %v5035_v16  ;;  %v5211_v15 = vld [vmem:[%s7225_s1 + $0x1e8] sm:$0xff]   ;;  %v5111_v16 = vld [vmem:[%s7226_s0 + $0x558] ss:$36 sps:$4 sm:$0xff]  }
  0x7b   :  { %2989 = vmatpush1.bf16.msra.mxu0 %v5033_v17  ;;  %2992 = vmatprep.mubr.bf16.mxu0 %v5039_v18  ;;  %v5112_v17 = vld [vmem:[%s7226_s0 + $0x328] ss:$36 sps:$4 sm:$0xff]  }
  0x7c   :  { %2990 = vmatprep.subr.bf16.mxu0 %v5427_v0  ;;  %4616 = vmatpush1.bf16.msra.mxu1 %v5615_v32  ;;  %v5080_v32 = vld [vmem:[%s7225_s1 + $0x198] sm:$0xff]   ;;  %v5113_v18 = vld [vmem:[%s7226_s0 + $0x5a4] ss:$36 sps:$4 sm:$0xff]  }
  0x7d   :  { %4601 = vmatprep.subr.bf16.mxu1 %v5427_v0 }
  0x7f   :  { %2991 = vmatpush1.bf16.msra.mxu0 %v5034_v19  ;;  %v5115_v19 = vld [vmem:[%s7226_s0 + $0x374] ss:$36 sps:$4 sm:$0xff]  }
  0x80   :  { %3249 = vmatprep.subr.bf16.mxu0 %v5427_v0  ;;  %4617 = vmatpush1.bf16.msra.mxu1 %v5626_v34  ;;  %v5055_v34 = vld [vmem:[%s7226_s0 + $0x31c] ss:$36 sps:$4 sm:$0xff]  }
  0x81   :  { %2479 = vmatmul.mubr.bf16.gmra.mrb[32].mxu1 %v5040_v20  ;;  %4506 = vmatprep.subr.bf16.mxu1 %v5982_v5  ;;  %v5117_v20 = vld [vmem:[%s7226_s0 + $0x5a0] ss:$36 sps:$4 sm:$0xff]  }
  0x82   :  { %2993 = vmatmul.mubr.bf16.vlgmr.msra.gmra.mrb[0].mxu0 %v5037_v21  ;;  %2486 = vmatprep.mubr.bf16.mxu1 %v5042_v22  ;;  %v5118_v21 = vld [vmem:[%s7226_s0 + $0x370] ss:$36 sps:$4 sm:$0xff]  }
  0x83   :  { %3250 = vmatpush1.bf16.msra.mxu0 %v5041_v23  ;;  %3000 = vmatprep.mubr.bf16.mxu0 %v5044_v24  ;;  %v5120_v22 = vld [vmem:[%s7226_s0 + $0x5ec] ss:$36 sps:$4 sm:$0xff]   ;;  %v5122_v23 = vld [vmem:[%s7226_s0 + $0x3bc] ss:$36 sps:$4 sm:$0xff]  }
  0x84   :  { %3251 = vmatprep.subr.bf16.mxu0 %v5427_v0  ;;  %v5225_v24 = vld [vmem:[%s7225_s1 + $0x1f0] sm:$0xff]  }
  0x87   :  { %3252 = vmatpush1.bf16.msra.mxu0 %v5054_v26  ;;  %v5125_v26 = vld [vmem:[%s7226_s0 + $0x3b8] ss:$36 sps:$4 sm:$0xff]  }
  0x88   :  { %3253 = vmatprep.subr.bf16.mxu0 %v5427_v0 }
  0x89   :  { %2487 = vmatmul.mubr.bf16.gmra.mrb[36].mxu1 %v5046_v25  ;;  %v5124_v25 = vld [vmem:[%s7226_s0 + $0x5e8] ss:$36 sps:$4 sm:$0xff]  }
  0x8a   :  { %3001 = vmatmul.mubr.bf16.gmra.mrb[4].mxu0 %v5047_v27  ;;  %2494 = vmatprep.mubr.bf16.mxu1 %v5048_v28  ;;  %v5126_v27 = vld [vmem:[%s7226_s0 + $0x634] ss:$36 sps:$4 sm:$0xff]   ;;  %v5128_v28 = vld [vmem:[%s7226_s0 + $0x404] ss:$36 sps:$4 sm:$0xff]  }
  0x8b   :  { %3008 = vmatprep.mubr.bf16.mxu0 %v5050_v29  ;;  %3254 = vmatpush1.bf16.msra.mxu0 %v5067_v30  ;;  %v5131_v29 = vld [vmem:[%s7226_s0 + $0x400] ss:$36 sps:$4 sm:$0xff]  }
  0x8c   :  { %3255 = vmatprep.subr.bf16.mxu0 %v5427_v0  ;;  %v5133_v30 = vld [vmem:[%s7226_s0 + $0x67c] ss:$36 sps:$4 sm:$0xff]  }
  0x8f   :  { %3256 = vmatpush1.bf16.msra.mxu0 %v5080_v32  ;;  %v5239_v32 = vld [vmem:[%s7225_s1 + $0x1f8] sm:$0xff]  }
  0x90   :  { %3257 = vmatprep.subr.bf16.mxu0 %v5427_v0 }
  0x91   :  { %2495 = vmatmul.mubr.bf16.gmra.mrb[40].mxu1 %v5052_v31  ;;  %v5135_v31 = vld [vmem:[%s7226_s0 + $0x44c] ss:$36 sps:$4 sm:$0xff]  }
  0x92   :  { %3009 = vmatmul.mubr.bf16.gmra.mrb[8].mxu0 %v5053_v33  ;;  %2502 = vmatprep.mubr.bf16.mxu1 %v5055_v34  ;;  %v5137_v33 = vld [vmem:[%s7226_s0 + $0x678] ss:$36 sps:$4 sm:$0xff]   ;;  %v5138_v34 = vld [vmem:[%s7226_s0 + $0x448] ss:$36 sps:$4 sm:$0xff]  }
  0x93   :  { %3016 = vmatprep.mubr.bf16.mxu0 %v5057_v35  ;;  %3258 = vmatpush1.bf16.msra.mxu0 %v5093_v36  ;;  %v5139_v35 = vld [vmem:[%s7226_s0 + $0x6c4] ss:$36 sps:$4 sm:$0xff]   ;;  %v5141_v36 = vld [vmem:[%s7226_s0 + $0x494] ss:$36 sps:$4 sm:$0xff]  }
  0x94   :  { %3259 = vmatprep.subr.bf16.mxu0 %v5427_v0 }
  0x97   :  { %3260 = vmatpush1.bf16.msra.mxu0 %v5106_v37  ;;  %v5143_v37 = vld [vmem:[%s7226_s0 + $0x6c0] ss:$36 sps:$4 sm:$0xff]  }
  0x98   :  { %3261 = vmatprep.subr.bf16.mxu0 %v5427_v0 }
  0x99   :  { %2503 = vmatmul.mubr.bf16.gmra.mrb[44].mxu1 %v5059_v38  ;;  %v5144_v38 = vld [vmem:[%s7226_s0 + $0x490] ss:$36 sps:$4 sm:$0xff]  }
  0x9a   :  { %3017 = vmatmul.mubr.bf16.gmra.mrb[12].mxu0 %v5060_v39  ;;  %2510 = vmatprep.mubr.bf16.mxu1 %v5061_v40  ;;  %v5146_v39 = vld [vmem:[%s7226_s0 + $0x70c] ss:$36 sps:$4 sm:$0xff]   ;;  %v5148_v40 = vld [vmem:[%s7226_s0 + $0x4dc] ss:$36 sps:$4 sm:$0xff]  }
  0x9b   :  { %3024 = vmatprep.mubr.bf16.mxu0 %v5063_v41  ;;  %3262 = vmatpush1.bf16.msra.mxu0 %v5119_v42  ;;  %v5150_v41 = vld [vmem:[%s7226_s0 + $0x708] ss:$36 sps:$4 sm:$0xff]   ;;  %v5151_v42 = vld [vmem:[%s7226_s0 + $0x4d8] ss:$36 sps:$4 sm:$0xff]  }
  0x9c   :  { %3263 = vmatprep.subr.bf16.mxu0 %v5427_v0 }
  0x9f   :  { %3264 = vmatpush1.bf16.msra.mxu0 %v5132_v43  ;;  %v5152_v43 = vld [vmem:[%s7226_s0 + $0x754] ss:$36 sps:$4 sm:$0xff]  }
  0xa0   :  { %3265 = vmatprep.subr.bf16.mxu0 %v5427_v0 }
  0xa1   :  { %2511 = vmatmul.mubr.bf16.gmra.mrb[48].mxu1 %v5065_v44  ;;  %v5154_v44 = vld [vmem:[%s7226_s0 + $0x524] ss:$36 sps:$4 sm:$0xff]  }
  0xa2   :  { %3025 = vmatmul.mubr.bf16.gmra.mrb[16].mxu0 %v5066_v45  ;;  %2518 = vmatprep.mubr.bf16.mxu1 %v5068_v46  ;;  %v5156_v45 = vld [vmem:[%s7226_s0 + $0x750] ss:$36 sps:$4 sm:$0xff]   ;;  %v5157_v46 = vld [vmem:[%s7226_s0 + $0x520] ss:$36 sps:$4 sm:$0xff]  }
  0xa3   :  { %3032 = vmatprep.mubr.bf16.mxu0 %v5070_v47  ;;  %3266 = vmatpush1.bf16.msra.mxu0 %v5145_v48  ;;  %v5159_v47 = vld [vmem:[%s7226_s0 + $0x79c] ss:$36 sps:$4 sm:$0xff]   ;;  %v5161_v48 = vld [vmem:[%s7226_s0 + $0x56c] ss:$36 sps:$4 sm:$0xff]  }
  0xa4   :  { %3267 = vmatprep.subr.bf16.mxu0 %v5427_v0 }
  0xa7   :  { %3268 = vmatpush1.bf16.msra.mxu0 %v5158_v49 }
  0xa8   :  { %3269 = vmatprep.subr.bf16.mxu0 %v5427_v0 }
  0xa9   :  { %2519 = vmatmul.mubr.bf16.gmra.mrb[52].mxu1 %v5072_v50 }
  0xaa   :  { %3033 = vmatmul.mubr.bf16.gmra.mrb[20].mxu0 %v5073_v51  ;;  %2526 = vmatprep.mubr.bf16.mxu1 %v5074_v52  ;;  %v5163_v51 = vld [vmem:[%s7226_s0 + $0x798] ss:$36 sps:$4 sm:$0xff]  }
  0xab   :  { %3040 = vmatprep.mubr.bf16.mxu0 %v5076_v53  ;;  %3270 = vmatpush1.bf16.msra.mxu0 %v5171_v54  ;;  %v5164_v53 = vld [vmem:[%s7226_s0 + $0x568] ss:$36 sps:$4 sm:$0xff]  }
  0xac   :  { %3271 = vmatprep.subr.bf16.mxu0 %v5427_v0  ;;  %v5165_v54 = vld [vmem:[%s7226_s0 + $0x7e4] ss:$36 sps:$4 sm:$0xff]  }
  0xaf   :  { %3272 = vmatpush1.bf16.msra.mxu0 %v5184_v62  ;;  %v5172_v62 = vld [vmem:[%s7226_s0 + $0x82c] ss:$36 sps:$4 sm:$0xff]  }
  0xb0   :  { %3273 = vmatprep.subr.bf16.mxu0 %v5427_v0 }
  0xb1   :  { %2527 = vmatmul.mubr.bf16.gmra.mrb[56].mxu1 %v5078_v55 }
  0xb2   :  { %3041 = vmatmul.mubr.bf16.gmra.mrb[24].mxu0 %v5079_v56  ;;  %2534 = vmatprep.mubr.bf16.mxu1 %v5081_v57  ;;  %v5167_v56 = vld [vmem:[%s7226_s0 + $0x5b4] ss:$36 sps:$4 sm:$0xff]  }
  0xb3   :  { %3048 = vmatprep.mubr.bf16.mxu0 %v5083_v58  ;;  %3274 = vmatpush1.bf16.msra.mxu0 %v5198_v9 }
  0xb4   :  { %3275 = vmatprep.subr.bf16.mxu0 %v5427_v0 }
  0xb7   :  { %3276 = vmatpush1.bf16.msra.mxu0 %v5211_v15  ;;  %v5183_v15 = vld [vmem:[%s7226_s0 + $0x640] ss:$36 sps:$4 sm:$0xff]  }
  0xb8   :  { %3277 = vmatprep.subr.bf16.mxu0 %v5427_v0 }
  0xb9   :  { %2535 = vmatmul.mubr.bf16.gmra.mrb[60].mxu1 %v5085_v59  ;;  %v5169_v59 = vld [vmem:[%s7226_s0 + $0x7e0] ss:$36 sps:$4 sm:$0xff]  }
  0xba   :  { %3049 = vmatmul.mubr.bf16.gmra.mrb[28].mxu0 %v5086_v60  ;;  %2542 = vmatprep.mubr.bf16.mxu1 %v5087_v61  ;;  %v5170_v61 = vld [vmem:[%s7226_s0 + $0x5b0] ss:$36 sps:$4 sm:$0xff]  }
  0xbb   :  { %3056 = vmatprep.mubr.bf16.mxu0 %v5089_v63  ;;  %3278 = vmatpush1.bf16.msra.mxu0 %v5225_v24  ;;  %v5193_v24 = vld [vmem:[%s7226_s0 + $0x24c] ss:$36 sps:$4 sm:$0xff]  }
  0xbc   :  { %3279 = vmatprep.subr.bf16.mxu0 %v5427_v0  ;;  %v5130_v0 = vld [vmem:[%s7226_s0 + $0x630] ss:$36 sps:$4 sm:$0xff]  }
  0xbf   :  { %3280 = vmatpush1.bf16.msra.mxu0 %v5239_v32  ;;  %v5199_v32 = vld [vmem:[%s7226_s0 + $0x294] ss:$36 sps:$4 sm:$0xff]  }
  0xc1   :  { %2543 = vmatmul.mubr.bf16.gmra.mrb[64].mxu1 %v5091_v1  ;;  %v5174_v1 = vld [vmem:[%s7226_s0 + $0x5fc] ss:$36 sps:$4 sm:$0xff]  }
  0xc2   :  { %3057 = vmatmul.mubr.bf16.gmra.mrb[32].mxu0 %v5092_v2  ;;  %2550 = vmatprep.mubr.bf16.mxu1 %v5094_v3 }
  0xc3   :  { %3064 = vmatprep.mubr.bf16.mxu0 %v5096_v4  ;;  %v5176_v4 = vld [vmem:[%s7226_s0 + $0x828] ss:$36 sps:$4 sm:$0xff]  }
  0xc9   :  { %2551 = vmatmul.mubr.bf16.gmra.mrb[68].mxu1 %v5098_v6 }
  0xca   :  { %3065 = vmatmul.mubr.bf16.gmra.mrb[36].mxu0 %v5099_v7  ;;  %2558 = vmatprep.mubr.bf16.mxu1 %v5100_v8  ;;  %v5177_v7 = vld [vmem:[%s7226_s0 + $0x5f8] ss:$36 sps:$4 sm:$0xff]  }
  0xcb   :  { %3072 = vmatprep.mubr.bf16.mxu0 %v5102_v10  ;;  %v5178_v8 = vld [vmem:[%s7226_s0 + $0x874] ss:$36 sps:$4 sm:$0xff]   ;;  %v5180_v10 = vld [vmem:[%s7226_s0 + $0x644] ss:$36 sps:$4 sm:$0xff]  }
  0xd1   :  { %2559 = vmatmul.mubr.bf16.gmra.mrb[72].mxu1 %v5104_v11 }
  0xd2   :  { %3073 = vmatmul.mubr.bf16.gmra.mrb[40].mxu0 %v5105_v12  ;;  %2566 = vmatprep.mubr.bf16.mxu1 %v5107_v13  ;;  %v5182_v13 = vld [vmem:[%s7226_s0 + $0x870] ss:$36 sps:$4 sm:$0xff]  }
  0xd3   :  { %3080 = vmatprep.mubr.bf16.mxu0 %v5109_v14 }
  0xd9   :  { %2567 = vmatmul.mubr.bf16.gmra.mrb[76].mxu1 %v5111_v16  ;;  %v5185_v16 = vld [vmem:[%s7226_s0 + $0x8bc] ss:$36 sps:$4 sm:$0xff]  }
  0xda   :  { %3081 = vmatmul.mubr.bf16.gmra.mrb[44].mxu0 %v5112_v17  ;;  %2574 = vmatprep.mubr.bf16.mxu1 %v5113_v18  ;;  %v5187_v18 = vld [vmem:[%s7226_s0 + $0x68c] ss:$36 sps:$4 sm:$0xff]  }
  0xdb   :  { %3088 = vmatprep.mubr.bf16.mxu0 %v5115_v19 }
  0xe1   :  { %2575 = vmatmul.mubr.bf16.gmra.mrb[80].mxu1 %v5117_v20 }
  0xe2   :  { %3089 = vmatmul.mubr.bf16.gmra.mrb[48].mxu0 %v5118_v21  ;;  %2582 = vmatprep.mubr.bf16.mxu1 %v5120_v22  ;;  %v5189_v21 = vld [vmem:[%s7226_s0 + $0x8b8] ss:$36 sps:$4 sm:$0xff]  }
  0xe3   :  { %3096 = vmatprep.mubr.bf16.mxu0 %v5122_v23  ;;  %v5190_v23 = vld [vmem:[%s7226_s0 + $0x688] ss:$36 sps:$4 sm:$0xff]  }
  0xe9   :  { %2583 = vmatmul.mubr.bf16.gmra.mrb[84].mxu1 %v5124_v25 }
  0xea   :  { %3097 = vmatmul.mubr.bf16.gmra.mrb[52].mxu0 %v5125_v26  ;;  %2590 = vmatprep.mubr.bf16.mxu1 %v5126_v27  ;;  %v5194_v26 = vld [vmem:[%s7226_s0 + $0x6d4] ss:$36 sps:$4 sm:$0xff]  }
  0xeb   :  { %3104 = vmatprep.mubr.bf16.mxu0 %v5128_v28 }
  0xf1   :  { %2591 = vmatmul.mubr.bf16.gmra.mrb[88].mxu1 %v5130_v0  ;;  %v5191_v0 = vld [vmem:[%s7226_s0 + $0x248] ss:$36 sps:$4 sm:$0xff]  }
  0xf2   :  { %3105 = vmatmul.mubr.bf16.gmra.mrb[56].mxu0 %v5131_v29  ;;  %2598 = vmatprep.mubr.bf16.mxu1 %v5133_v30  ;;  %v5196_v30 = vld [vmem:[%s7226_s0 + $0x6d0] ss:$36 sps:$4 sm:$0xff]  }
  0xf3   :  { %3112 = vmatprep.mubr.bf16.mxu0 %v5135_v31 }
  0xf9   :  { %2599 = vmatmul.mubr.bf16.gmra.mrb[92].mxu1 %v5137_v33  ;;  %v5201_v33 = vld [vmem:[%s7226_s0 + $0x71c] ss:$36 sps:$4 sm:$0xff]  }
  0xfa   :  { %3113 = vmatmul.mubr.bf16.gmra.mrb[60].mxu0 %v5138_v34  ;;  %2606 = vmatprep.mubr.bf16.mxu1 %v5139_v35  ;;  %v5218_v34 = vld [vmem:[%s7225_s1 + $0x208] sm:$0xff]   ;;  %v5238_v35 = vld [vmem:[%s7225_s1 + $0x210] sm:$0xff]  }
  0xfb   :  { %3120 = vmatprep.mubr.bf16.mxu0 %v5141_v36 }
 0x101   :  { %2607 = vmatmul.mubr.bf16.gmra.mrb[96].mxu1 %v5143_v37 }
 0x102   :  { %3121 = vmatmul.mubr.bf16.gmra.mrb[64].mxu0 %v5144_v38  ;;  %2614 = vmatprep.mubr.bf16.mxu1 %v5146_v39  ;;  %v5203_v38 = vld [vmem:[%s7226_s0 + $0x290] ss:$36 sps:$4 sm:$0xff]  }
 0x103   :  { %3128 = vmatprep.mubr.bf16.mxu0 %v5148_v40  ;;  %v5205_v40 = vld [vmem:[%s7226_s0 + $0x2dc] ss:$36 sps:$4 sm:$0xff]  }
 0x109   :  { %2615 = vmatmul.mubr.bf16.gmra.mrb[100].mxu1 %v5150_v41 }
 0x10a   :  { %3129 = vmatmul.mubr.bf16.gmra.mrb[68].mxu0 %v5151_v42  ;;  %2622 = vmatprep.mubr.bf16.mxu1 %v5152_v43  ;;  %v5207_v42 = vld [vmem:[%s7226_s0 + $0x764] ss:$36 sps:$4 sm:$0xff]   ;;  %v5258_v43 = vld [vmem:[%s7225_s1 + $0x218] sm:$0xff]  }
 0x10b   :  { %3136 = vmatprep.mubr.bf16.mxu0 %v5154_v44 }
 0x111   :  { %2623 = vmatmul.mubr.bf16.gmra.mrb[104].mxu1 %v5156_v45  ;;  %v5277_v45 = vld [vmem:[%s7225_s1 + $0x220] sm:$0xff]  }
 0x112   :  { %3137 = vmatmul.mubr.bf16.gmra.mrb[72].mxu0 %v5157_v46  ;;  %2630 = vmatprep.mubr.bf16.mxu1 %v5159_v47  ;;  %v5209_v47 = vld [vmem:[%s7226_s0 + $0x2d8] ss:$36 sps:$4 sm:$0xff]  }
 0x113   :  { %3144 = vmatprep.mubr.bf16.mxu0 %v5161_v48 }
 0x114   :  { %v6120_v49 = vpop.f32.mrb[0].mxu1 }
 0x115   :  { %v2418_v50 = vpop.f32.mrb[1].mxu1 }
 0x116   :  { %v6125_v52 = vpop.f32.mrb[2].mxu1  ;;  %v5210_v50 = vld [vmem:[%s7226_s0 + $0x760] ss:$36 sps:$4 sm:$0xff]  }
 0x117   :  { %v2421_v55 = vpop.f32.mrb[3].mxu1 }
 0x118   :  { %v5296_v55 = vld [vmem:[%s7225_s1 + $0x228] sm:$0xff]  }
 0x119   :  { %2631 = vmatmul.mubr.bf16.gmra.mrb[108].mxu1 %v5163_v51  ;;  %v5212_v51 = vld [vmem:[%s7226_s0 + $0x324] ss:$36 sps:$4 sm:$0xff]  }
 0x11a   :  { %3145 = vmatmul.mubr.bf16.gmra.mrb[76].mxu0 %v5164_v53  ;;  %2638 = vmatprep.mubr.bf16.mxu1 %v5165_v54  ;;  %v5214_v54 = vld [vmem:[%s7226_s0 + $0x7ac] ss:$36 sps:$4 sm:$0xff]  }
 0x11b   :  { %3152 = vmatprep.mubr.bf16.mxu0 %v5167_v56  ;;  %v5315_v56 = vld [vmem:[%s7225_s1 + $0x230] sm:$0xff]  }
 0x11c   :  { %v6136_v57 = vpop.f32.mrb[4].mxu1 }
 0x11d   :  { %v2426_v58 = vpop.f32.mrb[5].mxu1 }
 0x11e   :  { %v6141_v60 = vpop.f32.mrb[6].mxu1  ;;  %v5216_v58 = vld [vmem:[%s7226_s0 + $0x320] ss:$36 sps:$4 sm:$0xff]  }
 0x11f   :  { %v2429_v63 = vpop.f32.mrb[7].mxu1 }
 0x120   :  { %v5223_v63 = vld [vmem:[%s7226_s0 + $0x368] ss:$36 sps:$4 sm:$0xff]  }
 0x121   :  { %2639 = vmatmul.mubr.bf16.gmra.mrb[112].mxu1 %v5169_v59  ;;  %v5217_v59 = vld [vmem:[%s7226_s0 + $0x7a8] ss:$36 sps:$4 sm:$0xff]  }
 0x122   :  { %3153 = vmatmul.mubr.bf16.gmra.mrb[80].mxu0 %v5170_v61  ;;  %2646 = vmatprep.mubr.bf16.mxu1 %v5172_v62  ;;  %v5219_v61 = vld [vmem:[%s7226_s0 + $0x36c] ss:$36 sps:$4 sm:$0xff]   ;;  %v5221_v62 = vld [vmem:[%s7226_s0 + $0x7f4] ss:$36 sps:$4 sm:$0xff]  }
 0x123   :  { %3160 = vmatprep.mubr.bf16.mxu0 %v5174_v1  ;;  %v5224_v1 = vld [vmem:[%s7226_s0 + $0x7f0] ss:$36 sps:$4 sm:$0xff]  }
 0x124   :  { %v6152_v2 = vpop.f32.mrb[8].mxu1 }
 0x125   :  { %v2434_v3 = vpop.f32.mrb[9].mxu1 }
 0x126   :  { %v6157_v6 = vpop.f32.mrb[10].mxu1  ;;  %v5226_v3 = vld [vmem:[%s7226_s0 + $0x3b4] ss:$36 sps:$4 sm:$0xff]  }
 0x127   :  { %v2437_v9 = vpop.f32.mrb[11].mxu1 }
 0x128   :  { %v5232_v9 = vld [vmem:[%s7226_s0 + $0x3fc] ss:$36 sps:$4 sm:$0xff]  }
 0x129   :  { %2647 = vmatmul.mubr.bf16.gmra.mrb[116].mxu1 %v5176_v4  ;;  %v5228_v4 = vld [vmem:[%s7226_s0 + $0x83c] ss:$36 sps:$4 sm:$0xff]  }
 0x12a   :  { %3161 = vmatmul.mubr.bf16.gmra.mrb[84].mxu0 %v5177_v7  ;;  %2654 = vmatprep.mubr.bf16.mxu1 %v5178_v8  ;;  %v5230_v7 = vld [vmem:[%s7226_s0 + $0x3b0] ss:$36 sps:$4 sm:$0xff]   ;;  %v5231_v8 = vld [vmem:[%s7226_s0 + $0x838] ss:$36 sps:$4 sm:$0xff]  }
 0x12b   :  { %3168 = vmatprep.mubr.bf16.mxu0 %v5180_v10  ;;  %v5234_v10 = vld [vmem:[%s7226_s0 + $0x884] ss:$36 sps:$4 sm:$0xff]  }
 0x12c   :  { %v6168_v11 = vpop.f32.mrb[12].mxu1 }
 0x12d   :  { %v2442_v12 = vpop.f32.mrb[13].mxu1 }
 0x12e   :  { %v6173_v14 = vpop.f32.mrb[14].mxu1  ;;  %v5334_v12 = vld [vmem:[%s7225_s1 + $0x238] sm:$0xff]  }
 0x12f   :  { %v2445_v17 = vpop.f32.mrb[15].mxu1 }
 0x130   :  { %v5242_v17 = vld [vmem:[%s7226_s0 + $0x8cc] ss:$36 sps:$4 sm:$0xff]  }
 0x131   :  { %2655 = vmatmul.mubr.bf16.gmra.mrb[120].mxu1 %v5182_v13  ;;  %v5236_v13 = vld [vmem:[%s7226_s0 + $0x3f8] ss:$36 sps:$4 sm:$0xff]  }
 0x132   :  { %3169 = vmatmul.mubr.bf16.gmra.mrb[88].mxu0 %v5183_v15  ;;  %2662 = vmatprep.mubr.bf16.mxu1 %v5185_v16  ;;  %v5237_v15 = vld [vmem:[%s7226_s0 + $0x880] ss:$36 sps:$4 sm:$0xff]  }
 0x133   :  { %3176 = vmatprep.mubr.bf16.mxu0 %v5187_v18  ;;  %v5240_v16 = vld [vmem:[%s7226_s0 + $0x444] ss:$36 sps:$4 sm:$0xff]  }
 0x134   :  { %v6184_v19 = vpop.f32.mrb[16].mxu1  ;;  %v5244_v18 = vld [vmem:[%s7226_s0 + $0x440] ss:$36 sps:$4 sm:$0xff]  }
 0x135   :  { %v2450_v20 = vpop.f32.mrb[17].mxu1 }
 0x136   :  { %v6189_v22 = vpop.f32.mrb[18].mxu1  ;;  %v5245_v20 = vld [vmem:[%s7226_s0 + $0x8c8] ss:$36 sps:$4 sm:$0xff]  }
 0x137   :  { %v2453_v25 = vpop.f32.mrb[19].mxu1 }
 0x138   :  { %v5248_v25 = vld [vmem:[%s7226_s0 + $0x18] ss:$36 sps:$4 sm:$0xff]  }
 0x139   :  { %2663 = vmatmul.mubr.bf16.gmra.mrb[124].mxu1 %v5189_v21  ;;  %v5246_v21 = vld [vmem:[%s7226_s0 + $0x48c] ss:$36 sps:$4 sm:$0xff]  }
 0x13a   :  { %3177 = vmatmul.mubr.bf16.gmra.mrb[92].mxu0 %v5190_v23  ;;  %2767 = vmatprep.mubr.bf16.mxu1 %v5193_v24  ;;  %v5250_v23 = vld [vmem:[%s7226_s0 + $0x1c] ss:$36 sps:$4 sm:$0xff]   ;;  %v5251_v24 = vld [vmem:[%s7226_s0 + $0x488] ss:$36 sps:$4 sm:$0xff]  }
 0x13b   :  { %3184 = vmatprep.mubr.bf16.mxu0 %v5194_v26  ;;  %v5252_v26 = vld [vmem:[%s7226_s0 + $0x4d4] ss:$36 sps:$4 sm:$0xff]  }
 0x13c   :  { %v6200_v27 = vpop.f32.mrb[20].mxu1 }
 0x13d   :  { %v2458_v28 = vpop.f32.mrb[21].mxu1 }
 0x13e   :  { %v6205_v29 = vpop.f32.mrb[22].mxu1  ;;  %v5254_v28 = vld [vmem:[%s7226_s0 + $0x64] ss:$36 sps:$4 sm:$0xff]  }
 0x13f   :  { %v2461_v31 = vpop.f32.mrb[23].mxu1 }
 0x140   :  { %v5259_v31 = vld [vmem:[%s7226_s0 + $0x51c] ss:$36 sps:$4 sm:$0xff]  }
 0x141   :  { %2768 = vmatmul.mubr.bf16.vlgmr.msra.gmra.mrb[32].mxu1 %v5191_v0  ;;  %v5256_v0 = vld [vmem:[%s7226_s0 + $0x4d0] ss:$36 sps:$4 sm:$0xff]  }
 0x142   :  { %3185 = vmatmul.mubr.bf16.gmra.mrb[96].mxu0 %v5196_v30  ;;  %4507 = vmatpush3.bf16.msra.mxu1 %v5982_v5  ;;  %v5204_v5 = vld [vmem:[%s7226_s0 + $0x718] ss:$36 sps:$4 sm:$0xff]   ;;  %v5257_v30 = vld [vmem:[%s7226_s0 + $0x60] ss:$36 sps:$4 sm:$0xff]  }
 0x143   :  { %2775 = vmatprep.mubr.bf16.mxu1 %v5199_v32  ;;  %3192 = vmatprep.mubr.bf16.mxu0 %v5201_v33  ;;  %v5261_v32 = vld [vmem:[%s7226_s0 + $0xac] ss:$36 sps:$4 sm:$0xff]   ;;  %v5263_v33 = vld [vmem:[%s7226_s0 + $0x518] ss:$36 sps:$4 sm:$0xff]  }
 0x144   :  { %v6223_v36 = vpop.f32.mrb[24].mxu1  ;;  %4508 = vmatprep.subr.bf16.mxu1 %v5218_v34 }
 0x145   :  { %v2466_v37 = vpop.f32.mrb[25].mxu1 }
 0x146   :  { %v6228_v39 = vpop.f32.mrb[26].mxu1  ;;  %4509 = vmatpush3.bf16.msra.mxu1 %v5218_v34  ;;  %v5264_v34 = vld [vmem:[%s7226_s0 + $0xa8] ss:$36 sps:$4 sm:$0xff]   ;;  %v5267_v37 = vld [vmem:[%s7226_s0 + $0xf4] ss:$36 sps:$4 sm:$0xff]  }
 0x147   :  { %v2469_v41 = vpop.f32.mrb[27].mxu1  ;;  %4510 = vmatprep.subr.bf16.mxu1 %v5238_v35 }
 0x148   :  { %v5273_v41 = vld [vmem:[%s7226_s0 + $0x13c] ss:$36 sps:$4 sm:$0xff]  }
 0x149   :  { %2776 = vmatmul.mubr.bf16.gmra.mrb[36].mxu1 %v5203_v38  ;;  %v5269_v38 = vld [vmem:[%s7226_s0 + $0x560] ss:$36 sps:$4 sm:$0xff]  }
 0x14a   :  { %3193 = vmatmul.mubr.bf16.gmra.mrb[100].mxu0 %v5204_v5  ;;  %2783 = vmatprep.mubr.bf16.mxu1 %v5205_v40  ;;  %v5270_v5 = vld [vmem:[%s7226_s0 + $0xf0] ss:$36 sps:$4 sm:$0xff]  }
 0x14b   :  { %3200 = vmatprep.mubr.bf16.mxu0 %v5207_v42  ;;  %4511 = vmatpush3.bf16.msra.mxu1 %v5238_v35  ;;  %v5265_v35 = vld [vmem:[%s7226_s0 + $0x564] ss:$36 sps:$4 sm:$0xff]   ;;  %v5271_v40 = vld [vmem:[%s7226_s0 + $0x5ac] ss:$36 sps:$4 sm:$0xff]  }
 0x14c   :  { %v6242_v44 = vpop.f32.mrb[28].mxu1  ;;  %4512 = vmatprep.subr.bf16.mxu1 %v5258_v43  ;;  %v5275_v42 = vld [vmem:[%s7226_s0 + $0x5a8] ss:$36 sps:$4 sm:$0xff]  }
 0x14d   :  { %v2474_v46 = vpop.f32.mrb[29].mxu1 }
 0x14e   :  { %v6250_v48 = vpop.f32.mrb[30].mxu1  ;;  %v5280_v46 = vld [vmem:[%s7226_s0 + $0x184] ss:$36 sps:$4 sm:$0xff]  }
 0x14f   :  { %v2477_v53 = vpop.f32.mrb[31].mxu1  ;;  %4513 = vmatpush3.bf16.msra.mxu1 %v5258_v43  ;;  %v5276_v43 = vld [vmem:[%s7226_s0 + $0x138] ss:$36 sps:$4 sm:$0xff]  }
 0x150   :  { %4514 = vmatprep.subr.bf16.mxu1 %v5277_v45  ;;  %v5286_v53 = vld [vmem:[%s7226_s0 + $0x1cc] ss:$36 sps:$4 sm:$0xff]  }
 0x151   :  { %2784 = vmatmul.mubr.bf16.gmra.mrb[40].mxu1 %v5209_v47  ;;  %v5282_v47 = vld [vmem:[%s7226_s0 + $0x5f0] ss:$36 sps:$4 sm:$0xff]  }
 0x152   :  { %3201 = vmatmul.mubr.bf16.gmra.mrb[104].mxu0 %v5210_v50  ;;  %2791 = vmatprep.mubr.bf16.mxu1 %v5212_v51  ;;  %v5283_v50 = vld [vmem:[%s7226_s0 + $0x180] ss:$36 sps:$4 sm:$0xff]  }
 0x153   :  { %3208 = vmatprep.mubr.bf16.mxu0 %v5214_v54  ;;  %4515 = vmatpush3.bf16.msra.mxu1 %v5277_v45  ;;  %v5278_v45 = vld [vmem:[%s7226_s0 + $0x5f4] ss:$36 sps:$4 sm:$0xff]   ;;  %v5284_v51 = vld [vmem:[%s7226_s0 + $0x63c] ss:$36 sps:$4 sm:$0xff]  }
 0x154   :  { %4516 = vmatprep.subr.bf16.mxu1 %v5296_v55  ;;  %v5288_v54 = vld [vmem:[%s7226_s0 + $0x638] ss:$36 sps:$4 sm:$0xff]  }
 0x157   :  { %4517 = vmatpush3.bf16.msra.mxu1 %v5296_v55  ;;  %v5289_v55 = vld [vmem:[%s7226_s0 + $0x1c8] ss:$36 sps:$4 sm:$0xff]  }
 0x158   :  { %4518 = vmatprep.subr.bf16.mxu1 %v5315_v56 }
 0x159   :  { %2792 = vmatmul.mubr.bf16.gmra.mrb[44].mxu1 %v5216_v58  ;;  %v5292_v58 = vld [vmem:[%s7226_s0 + $0x214] ss:$36 sps:$4 sm:$0xff]  }
 0x15a   :  { %3209 = vmatmul.mubr.bf16.gmra.mrb[108].mxu0 %v5217_v59  ;;  %2799 = vmatprep.mubr.bf16.mxu1 %v5219_v61  ;;  %v5294_v59 = vld [vmem:[%s7226_s0 + $0x680] ss:$36 sps:$4 sm:$0xff]   ;;  %v5295_v61 = vld [vmem:[%s7226_s0 + $0x210] ss:$36 sps:$4 sm:$0xff]  }
 0x15b   :  { %3216 = vmatprep.mubr.bf16.mxu0 %v5221_v62  ;;  %4519 = vmatpush3.bf16.msra.mxu1 %v5315_v56  ;;  %v5290_v56 = vld [vmem:[%s7226_s0 + $0x684] ss:$36 sps:$4 sm:$0xff]   ;;  %v5297_v62 = vld [vmem:[%s7226_s0 + $0x6cc] ss:$36 sps:$4 sm:$0xff]  }
 0x15c   :  { %4520 = vmatprep.subr.bf16.mxu1 %v5334_v12 }
 0x15f   :  { %4521 = vmatpush3.bf16.msra.mxu1 %v5334_v12  ;;  %v5311_v12 = vld [vmem:[%s7226_s0 + $0x2ec] ss:$36 sps:$4 sm:$0xff]  }
 0x161   :  { %2800 = vmatmul.mubr.bf16.gmra.mrb[48].mxu1 %v5223_v63  ;;  %v5299_v63 = vld [vmem:[%s7226_s0 + $0x25c] ss:$36 sps:$4 sm:$0xff]  }
 0x162   :  { %3217 = vmatmul.mubr.bf16.gmra.mrb[112].mxu0 %v5224_v1  ;;  %2807 = vmatprep.mubr.bf16.mxu1 %v5226_v3  ;;  %v5301_v1 = vld [vmem:[%s7226_s0 + $0x6c8] ss:$36 sps:$4 sm:$0xff]   ;;  %v5302_v3 = vld [vmem:[%s7226_s0 + $0x258] ss:$36 sps:$4 sm:$0xff]  }
 0x163   :  { %3224 = vmatprep.mubr.bf16.mxu0 %v5228_v4  ;;  %v5303_v4 = vld [vmem:[%s7226_s0 + $0x714] ss:$36 sps:$4 sm:$0xff]  }
 0x169   :  { %2808 = vmatmul.mubr.bf16.gmra.mrb[52].mxu1 %v5230_v7  ;;  %v5305_v7 = vld [vmem:[%s7226_s0 + $0x2a4] ss:$36 sps:$4 sm:$0xff]  }
 0x16a   :  { %3225 = vmatmul.mubr.bf16.gmra.mrb[116].mxu0 %v5231_v8  ;;  %2815 = vmatprep.mubr.bf16.mxu1 %v5232_v9  ;;  %v5307_v8 = vld [vmem:[%s7226_s0 + $0x710] ss:$36 sps:$4 sm:$0xff]   ;;  %v5308_v9 = vld [vmem:[%s7226_s0 + $0x2a0] ss:$36 sps:$4 sm:$0xff]  }
 0x16b   :  { %3232 = vmatprep.mubr.bf16.mxu0 %v5234_v10  ;;  %v5309_v10 = vld [vmem:[%s7226_s0 + $0x75c] ss:$36 sps:$4 sm:$0xff]  }
 0x171   :  { %2816 = vmatmul.mubr.bf16.gmra.mrb[56].mxu1 %v5236_v13  ;;  %v5313_v13 = vld [vmem:[%s7226_s0 + $0x758] ss:$36 sps:$4 sm:$0xff]  }
 0x172   :  { %3233 = vmatmul.mubr.bf16.gmra.mrb[120].mxu0 %v5237_v15  ;;  %2823 = vmatprep.mubr.bf16.mxu1 %v5240_v16  ;;  %v5314_v15 = vld [vmem:[%s7226_s0 + $0x2e8] ss:$36 sps:$4 sm:$0xff]  }
 0x173   :  { %3240 = vmatprep.mubr.bf16.mxu0 %v5242_v17  ;;  %v5316_v16 = vld [vmem:[%s7226_s0 + $0x7a4] ss:$36 sps:$4 sm:$0xff]   ;;  %v5318_v17 = vld [vmem:[%s7226_s0 + $0x334] ss:$36 sps:$4 sm:$0xff]  }
 0x179   :  { %2824 = vmatmul.mubr.bf16.gmra.mrb[60].mxu1 %v5244_v18  ;;  %v5320_v18 = vld [vmem:[%s7226_s0 + $0x7a0] ss:$36 sps:$4 sm:$0xff]  }
 0x17a   :  { %3241 = vmatmul.mubr.bf16.gmra.mrb[124].mxu0 %v5245_v20  ;;  %2831 = vmatprep.mubr.bf16.mxu1 %v5246_v21  ;;  %v5321_v20 = vld [vmem:[%s7226_s0 + $0x330] ss:$36 sps:$4 sm:$0xff]  }
 0x17b   :  { %3281 = vmatprep.mubr.bf16.mxu0 %v5250_v23  ;;  %v5322_v21 = vld [vmem:[%s7226_s0 + $0x7ec] ss:$36 sps:$4 sm:$0xff]   ;;  %v5324_v23 = vld [vmem:[%s7226_s0 + $0x37c] ss:$36 sps:$4 sm:$0xff]  }
 0x181   :  { %2832 = vmatmul.mubr.bf16.gmra.mrb[64].mxu1 %v5251_v24  ;;  %v5326_v24 = vld [vmem:[%s7226_s0 + $0x7e8] ss:$36 sps:$4 sm:$0xff]  }
 0x182   :  { %3282 = vmatmul.mubr.bf16.vlgmr.msra.gmra.mrb[0].mxu0 %v5248_v25  ;;  %2839 = vmatprep.mubr.bf16.mxu1 %v5252_v26  ;;  %v5327_v25 = vld [vmem:[%s7226_s0 + $0x378] ss:$36 sps:$4 sm:$0xff]  }
 0x183   :  { %3289 = vmatprep.mubr.bf16.mxu0 %v5254_v28  ;;  %v5328_v26 = vld [vmem:[%s7226_s0 + $0x834] ss:$36 sps:$4 sm:$0xff]   ;;  %v5330_v28 = vld [vmem:[%s7226_s0 + $0x3c4] ss:$36 sps:$4 sm:$0xff]  }
 0x189   :  { %2840 = vmatmul.mubr.bf16.gmra.mrb[68].mxu1 %v5256_v0  ;;  %v5332_v0 = vld [vmem:[%s7226_s0 + $0x830] ss:$36 sps:$4 sm:$0xff]  }
 0x18a   :  { %3290 = vmatmul.mubr.bf16.gmra.mrb[4].mxu0 %v5257_v30  ;;  %2847 = vmatprep.mubr.bf16.mxu1 %v5259_v31  ;;  %v5333_v30 = vld [vmem:[%s7226_s0 + $0x3c0] ss:$36 sps:$4 sm:$0xff]  }
 0x18b   :  { %3297 = vmatprep.mubr.bf16.mxu0 %v5261_v32  ;;  %v5335_v31 = vld [vmem:[%s7226_s0 + $0x87c] ss:$36 sps:$4 sm:$0xff]   ;;  %v5337_v32 = vld [vmem:[%s7226_s0 + $0x40c] ss:$36 sps:$4 sm:$0xff]  }
 0x191   :  { %2848 = vmatmul.mubr.bf16.gmra.mrb[72].mxu1 %v5263_v33  ;;  %v5339_v33 = vld [vmem:[%s7226_s0 + $0x878] ss:$36 sps:$4 sm:$0xff]  }
 0x192   :  { %3298 = vmatmul.mubr.bf16.gmra.mrb[8].mxu0 %v5264_v34  ;;  %2855 = vmatprep.mubr.bf16.mxu1 %v5265_v35  ;;  %v5340_v34 = vld [vmem:[%s7226_s0 + $0x408] ss:$36 sps:$4 sm:$0xff]  }
 0x193   :  { %3305 = vmatprep.mubr.bf16.mxu0 %v5267_v37  ;;  %v5341_v35 = vld [vmem:[%s7226_s0 + $0x8c4] ss:$36 sps:$4 sm:$0xff]   ;;  %v5343_v37 = vld [vmem:[%s7226_s0 + $0x454] ss:$36 sps:$4 sm:$0xff]  }
 0x199   :  { %2856 = vmatmul.mubr.bf16.gmra.mrb[76].mxu1 %v5269_v38  ;;  %v5345_v38 = vld [vmem:[%s7226_s0 + $0x8c0] ss:$36 sps:$4 sm:$0xff]  }
 0x19a   :  { %3306 = vmatmul.mubr.bf16.gmra.mrb[12].mxu0 %v5270_v5  ;;  %2863 = vmatprep.mubr.bf16.mxu1 %v5271_v40  ;;  %v5346_v5 = vld [vmem:[%s7226_s0 + $0x450] ss:$36 sps:$4 sm:$0xff]   ;;  %v5349_v40 = vld [vmem:[%s7226_s0 + $0x20] ss:$36 sps:$4 sm:$0xff]  }
 0x19b   :  { %3313 = vmatprep.mubr.bf16.mxu0 %v5273_v41  ;;  %v5347_v41 = vld [vmem:[%s7226_s0 + $0x49c] ss:$36 sps:$4 sm:$0xff]  }
 0x1a1   :  { %2864 = vmatmul.mubr.bf16.gmra.mrb[80].mxu1 %v5275_v42  ;;  %v5351_v42 = vld [vmem:[%s7226_s0 + $0x68] ss:$36 sps:$4 sm:$0xff]  }
 0x1a2   :  { %3314 = vmatmul.mubr.bf16.gmra.mrb[16].mxu0 %v5276_v43  ;;  %2871 = vmatprep.mubr.bf16.mxu1 %v5278_v45  ;;  %v5350_v43 = vld [vmem:[%s7226_s0 + $0x498] ss:$36 sps:$4 sm:$0xff]   ;;  %v5354_v45 = vld [vmem:[%s7226_s0 + $0xb0] ss:$36 sps:$4 sm:$0xff]  }
 0x1a3   :  { %3321 = vmatprep.mubr.bf16.mxu0 %v5280_v46  ;;  %v5352_v46 = vld [vmem:[%s7226_s0 + $0x4e4] ss:$36 sps:$4 sm:$0xff]  }
 0x1a9   :  { %2872 = vmatmul.mubr.bf16.gmra.mrb[84].mxu1 %v5282_v47  ;;  %v5356_v47 = vld [vmem:[%s7226_s0 + $0xf8] ss:$36 sps:$4 sm:$0xff]  }
 0x1aa   :  { %3322 = vmatmul.mubr.bf16.gmra.mrb[20].mxu0 %v5283_v50  ;;  %2879 = vmatprep.mubr.bf16.mxu1 %v5284_v51  ;;  %v5355_v50 = vld [vmem:[%s7226_s0 + $0x4e0] ss:$36 sps:$4 sm:$0xff]  }
 0x1ab   :  { %3329 = vmatprep.mubr.bf16.mxu0 %v5286_v53  ;;  %v5359_v51 = vld [vmem:[%s7226_s0 + $0x140] ss:$36 sps:$4 sm:$0xff]   ;;  %v5357_v53 = vld [vmem:[%s7226_s0 + $0x52c] ss:$36 sps:$4 sm:$0xff]  }
 0x1b1   :  { %2880 = vmatmul.mubr.bf16.gmra.mrb[88].mxu1 %v5288_v54  ;;  %v5361_v54 = vld [vmem:[%s7226_s0 + $0x188] ss:$36 sps:$4 sm:$0xff]  }
 0x1b2   :  { %3330 = vmatmul.mubr.bf16.gmra.mrb[24].mxu0 %v5289_v55  ;;  %2887 = vmatprep.mubr.bf16.mxu1 %v5290_v56  ;;  %v5360_v55 = vld [vmem:[%s7226_s0 + $0x528] ss:$36 sps:$4 sm:$0xff]   ;;  %v5364_v56 = vld [vmem:[%s7226_s0 + $0x1d0] ss:$36 sps:$4 sm:$0xff]  }
 0x1b3   :  { %3337 = vmatprep.mubr.bf16.mxu0 %v5292_v58  ;;  %v5362_v58 = vld [vmem:[%s7226_s0 + $0x574] ss:$36 sps:$4 sm:$0xff]  }
 0x1b9   :  { %2888 = vmatmul.mubr.bf16.gmra.mrb[92].mxu1 %v5294_v59 }
 0x1ba   :  { %3338 = vmatmul.mubr.bf16.gmra.mrb[28].mxu0 %v5295_v61  ;;  %2895 = vmatprep.mubr.bf16.mxu1 %v5297_v62  ;;  %v5366_v62 = vld [vmem:[%s7226_s0 + $0x218] ss:$36 sps:$4 sm:$0xff]  }
 0x1bb   :  { %3345 = vmatprep.mubr.bf16.mxu0 %v5299_v63 }
 0x1c1   :  { %2896 = vmatmul.mubr.bf16.gmra.mrb[96].mxu1 %v5301_v1  ;;  %v5365_v1 = vld [vmem:[%s7226_s0 + $0x570] ss:$36 sps:$4 sm:$0xff]  }
 0x1c2   :  { %3346 = vmatmul.mubr.bf16.gmra.mrb[32].mxu0 %v5302_v3  ;;  %2903 = vmatprep.mubr.bf16.mxu1 %v5303_v4  ;;  %v5369_v3 = vld [vmem:[%s7226_s0 + $0x260] ss:$36 sps:$4 sm:$0xff]  }
 0x1c3   :  { %3353 = vmatprep.mubr.bf16.mxu0 %v5305_v7  ;;  %v5367_v7 = vld [vmem:[%s7226_s0 + $0x5bc] ss:$36 sps:$4 sm:$0xff]  }
 0x1c9   :  { %2904 = vmatmul.mubr.bf16.gmra.mrb[100].mxu1 %v5307_v8 }
 0x1ca   :  { %3354 = vmatmul.mubr.bf16.gmra.mrb[36].mxu0 %v5308_v9  ;;  %2911 = vmatprep.mubr.bf16.mxu1 %v5309_v10  ;;  %v5371_v10 = vld [vmem:[%s7226_s0 + $0x2a8] ss:$36 sps:$4 sm:$0xff]  }
 0x1cb   :  { %3361 = vmatprep.mubr.bf16.mxu0 %v5311_v12 }
 0x1d1   :  { %2912 = vmatmul.mubr.bf16.gmra.mrb[104].mxu1 %v5313_v13  ;;  %v5370_v13 = vld [vmem:[%s7226_s0 + $0x5b8] ss:$36 sps:$4 sm:$0xff]  }
 0x1d2   :  { %3362 = vmatmul.mubr.bf16.gmra.mrb[40].mxu0 %v5314_v15  ;;  %2919 = vmatprep.mubr.bf16.mxu1 %v5316_v16  ;;  %v5374_v15 = vld [vmem:[%s7226_s0 + $0x2f0] ss:$36 sps:$4 sm:$0xff]  }
 0x1d3   :  { %3369 = vmatprep.mubr.bf16.mxu0 %v5318_v17  ;;  %v5372_v17 = vld [vmem:[%s7226_s0 + $0x604] ss:$36 sps:$4 sm:$0xff]  }
 0x1d9   :  { %2920 = vmatmul.mubr.bf16.gmra.mrb[108].mxu1 %v5320_v18 }
 0x1da   :  { %3370 = vmatmul.mubr.bf16.gmra.mrb[44].mxu0 %v5321_v20  ;;  %2927 = vmatprep.mubr.bf16.mxu1 %v5322_v21  ;;  %v5376_v21 = vld [vmem:[%s7226_s0 + $0x338] ss:$36 sps:$4 sm:$0xff]  }
 0x1db   :  { %3377 = vmatprep.mubr.bf16.mxu0 %v5324_v23 }
 0x1e1   :  { %2928 = vmatmul.mubr.bf16.gmra.mrb[112].mxu1 %v5326_v24  ;;  %v5375_v24 = vld [vmem:[%s7226_s0 + $0x600] ss:$36 sps:$4 sm:$0xff]  }
 0x1e2   :  { %3378 = vmatmul.mubr.bf16.gmra.mrb[48].mxu0 %v5327_v25  ;;  %2935 = vmatprep.mubr.bf16.mxu1 %v5328_v26  ;;  %v5379_v25 = vld [vmem:[%s7226_s0 + $0x380] ss:$36 sps:$4 sm:$0xff]  }
 0x1e3   :  { %3385 = vmatprep.mubr.bf16.mxu0 %v5330_v28  ;;  %v5377_v28 = vld [vmem:[%s7226_s0 + $0x64c] ss:$36 sps:$4 sm:$0xff]  }
 0x1e9   :  { %2936 = vmatmul.mubr.bf16.gmra.mrb[116].mxu1 %v5332_v0 }
 0x1ea   :  { %3386 = vmatmul.mubr.bf16.gmra.mrb[52].mxu0 %v5333_v30  ;;  %2943 = vmatprep.mubr.bf16.mxu1 %v5335_v31  ;;  %v5381_v31 = vld [vmem:[%s7226_s0 + $0x3c8] ss:$36 sps:$4 sm:$0xff]  }
 0x1eb   :  { %3393 = vmatprep.mubr.bf16.mxu0 %v5337_v32 }
 0x1f1   :  { %2944 = vmatmul.mubr.bf16.gmra.mrb[120].mxu1 %v5339_v33  ;;  %v5380_v33 = vld [vmem:[%s7226_s0 + $0x648] ss:$36 sps:$4 sm:$0xff]  }
 0x1f2   :  { %3394 = vmatmul.mubr.bf16.gmra.mrb[56].mxu0 %v5340_v34  ;;  %2951 = vmatprep.mubr.bf16.mxu1 %v5341_v35  ;;  %v5384_v34 = vld [vmem:[%s7226_s0 + $0x410] ss:$36 sps:$4 sm:$0xff]  }
 0x1f3   :  { %3401 = vmatprep.mubr.bf16.mxu0 %v5343_v37  ;;  %v5382_v37 = vld [vmem:[%s7226_s0 + $0x694] ss:$36 sps:$4 sm:$0xff]  }
 0x1f9   :  { %2952 = vmatmul.mubr.bf16.gmra.mrb[124].mxu1 %v5345_v38 }
 0x1fa   :  { %3402 = vmatmul.mubr.bf16.gmra.mrb[60].mxu0 %v5346_v5  ;;  %4522 = vmatprep.mubr.bf16.mxu1 %v5349_v40  ;;  %v5386_v40 = vld [vmem:[%s7226_s0 + $0x458] ss:$36 sps:$4 sm:$0xff]  }
 0x1fb   :  { %3409 = vmatprep.mubr.bf16.mxu0 %v5347_v41 }
 0x201   :  { %4523 = vmatmul.mubr.bf16.vlgmr.msra.gmra.mrb[128].mxu1 %v5351_v42  ;;  %v5385_v42 = vld [vmem:[%s7226_s0 + $0x690] ss:$36 sps:$4 sm:$0xff]  }
 0x202   :  { %3410 = vmatmul.mubr.bf16.gmra.mrb[64].mxu0 %v5350_v43  ;;  %4526 = vmatprep.mubr.bf16.mxu1 %v5354_v45  ;;  %v5389_v43 = vld [vmem:[%s7226_s0 + $0x4a0] ss:$36 sps:$4 sm:$0xff]  }
 0x203   :  { %3417 = vmatprep.mubr.bf16.mxu0 %v5352_v46  ;;  %v5387_v46 = vld [vmem:[%s7226_s0 + $0x6dc] ss:$36 sps:$4 sm:$0xff]  }
 0x209   :  { %4527 = vmatmul.mubr.bf16.gmra.mrb[132].mxu1 %v5356_v47 }
 0x20a   :  { %3418 = vmatmul.mubr.bf16.gmra.mrb[68].mxu0 %v5355_v50  ;;  %4530 = vmatprep.mubr.bf16.mxu1 %v5359_v51  ;;  %v5391_v51 = vld [vmem:[%s7226_s0 + $0x4e8] ss:$36 sps:$4 sm:$0xff]  }
 0x20b   :  { %3425 = vmatprep.mubr.bf16.mxu0 %v5357_v53 }
 0x211   :  { %4531 = vmatmul.mubr.bf16.gmra.mrb[136].mxu1 %v5361_v54  ;;  %v5390_v54 = vld [vmem:[%s7226_s0 + $0x6d8] ss:$36 sps:$4 sm:$0xff]  }
 0x212   :  { %3426 = vmatmul.mubr.bf16.gmra.mrb[72].mxu0 %v5360_v55  ;;  %4534 = vmatprep.mubr.bf16.mxu1 %v5364_v56  ;;  %v5394_v55 = vld [vmem:[%s7226_s0 + $0x530] ss:$36 sps:$4 sm:$0xff]  }
 0x213   :  { %3433 = vmatprep.mubr.bf16.mxu0 %v5362_v58  ;;  %v5392_v58 = vld [vmem:[%s7226_s0 + $0x724] ss:$36 sps:$4 sm:$0xff]  }
 0x214   :  { %v6558_v59 = vpop.f32.mrb[32].mxu1 }
 0x215   :  { %v2771_v61 = vpop.f32.mrb[33].mxu1 }
 0x216   :  { %v6563_v63 = vpop.f32.mrb[34].mxu1 }
 0x217   :  { %v2774_v4 = vpop.f32.mrb[35].mxu1 }
 0x218   :  { %v5395_v4 = vld [vmem:[%s7226_s0 + $0x720] ss:$36 sps:$4 sm:$0xff]  }
 0x219   :  { %4535 = vmatmul.mubr.bf16.gmra.mrb[140].mxu1 %v5366_v62 }
 0x21a   :  { %3434 = vmatmul.mubr.bf16.gmra.mrb[76].mxu0 %v5365_v1  ;;  %4538 = vmatprep.mubr.bf16.mxu1 %v5369_v3  ;;  %v5396_v1 = vld [vmem:[%s7226_s0 + $0x578] ss:$36 sps:$4 sm:$0xff]  }
 0x21b   :  { %3441 = vmatprep.mubr.bf16.mxu0 %v5367_v7  ;;  %v5399_v7 = vld [vmem:[%s7226_s0 + $0x5c0] ss:$36 sps:$4 sm:$0xff]  }
 0x21c   :  { %v6574_v8 = vpop.f32.mrb[36].mxu1 }
 0x21d   :  { %v2779_v9 = vpop.f32.mrb[37].mxu1 }
 0x21e   :  { %v6579_v12 = vpop.f32.mrb[38].mxu1 }
 0x21f   :  { %v2782_v16 = vpop.f32.mrb[39].mxu1 }
 0x220   :  { %v5401_v16 = vld [vmem:[%s7226_s0 + $0x608] ss:$36 sps:$4 sm:$0xff]  }
 0x221   :  { %4539 = vmatmul.mubr.bf16.gmra.mrb[144].mxu1 %v5371_v10  ;;  %v5397_v10 = vld [vmem:[%s7226_s0 + $0x76c] ss:$36 sps:$4 sm:$0xff]  }
 0x222   :  { %3442 = vmatmul.mubr.bf16.gmra.mrb[80].mxu0 %v5370_v13  ;;  %4542 = vmatprep.mubr.bf16.mxu1 %v5374_v15 }
 0x223   :  { %3449 = vmatprep.mubr.bf16.mxu0 %v5372_v17 }
 0x224   :  { %v6590_v18 = vpop.f32.mrb[40].mxu1 }
 0x225   :  { %v2787_v20 = vpop.f32.mrb[41].mxu1 }
 0x226   :  { %v6595_v23 = vpop.f32.mrb[42].mxu1  ;;  %v5400_v20 = vld [vmem:[%s7226_s0 + $0x768] ss:$36 sps:$4 sm:$0xff]  }
 0x227   :  { %v2790_v26 = vpop.f32.mrb[43].mxu1 }
 0x229   :  { %4543 = vmatmul.mubr.bf16.gmra.mrb[148].mxu1 %v5376_v21  ;;  %v5404_v21 = vld [vmem:[%s7226_s0 + $0x650] ss:$36 sps:$4 sm:$0xff]  }
 0x22a   :  { %3450 = vmatmul.mubr.bf16.gmra.mrb[84].mxu0 %v5375_v24  ;;  %4546 = vmatprep.mubr.bf16.mxu1 %v5379_v25  ;;  %v5402_v25 = vld [vmem:[%s7226_s0 + $0x7b4] ss:$36 sps:$4 sm:$0xff]  }
 0x22b   :  { %3457 = vmatprep.mubr.bf16.mxu0 %v5377_v28 }
 0x22c   :  { %v6606_v0 = vpop.f32.mrb[44].mxu1 }
 0x22d   :  { %v2795_v30 = vpop.f32.mrb[45].mxu1 }
 0x22e   :  { %v6611_v32 = vpop.f32.mrb[46].mxu1 }
 0x22f   :  { %v2798_v35 = vpop.f32.mrb[47].mxu1 }
 0x231   :  { %4547 = vmatmul.mubr.bf16.gmra.mrb[152].mxu1 %v5381_v31  ;;  %v5406_v31 = vld [vmem:[%s7226_s0 + $0x698] ss:$36 sps:$4 sm:$0xff]  }
 0x232   :  { %3458 = vmatmul.mubr.bf16.gmra.mrb[88].mxu0 %v5380_v33  ;;  %4550 = vmatprep.mubr.bf16.mxu1 %v5384_v34 }
 0x233   :  { %3465 = vmatprep.mubr.bf16.mxu0 %v5382_v37  ;;  %v5405_v37 = vld [vmem:[%s7226_s0 + $0x7b0] ss:$36 sps:$4 sm:$0xff]  }
 0x234   :  { %v6622_v38 = vpop.f32.mrb[48].mxu1 }
 0x235   :  { %v2803_v5 = vpop.f32.mrb[49].mxu1 }
 0x236   :  { %v6627_v41 = vpop.f32.mrb[50].mxu1  ;;  %v5409_v5 = vld [vmem:[%s7226_s0 + $0x6e0] ss:$36 sps:$4 sm:$0xff]  }
 0x237   :  { %v2806_v45 = vpop.f32.mrb[51].mxu1 }
 0x239   :  { %4551 = vmatmul.mubr.bf16.gmra.mrb[156].mxu1 %v5386_v40 }
 0x23a   :  { %3466 = vmatmul.mubr.bf16.gmra.mrb[92].mxu0 %v5385_v42  ;;  %4554 = vmatprep.mubr.bf16.mxu1 %v5389_v43  ;;  %v5407_v43 = vld [vmem:[%s7226_s0 + $0x7fc] ss:$36 sps:$4 sm:$0xff]  }
 0x23b   :  { %3473 = vmatprep.mubr.bf16.mxu0 %v5387_v46 }
 0x23c   :  { %v6638_v47 = vpop.f32.mrb[52].mxu1 }
 0x23d   :  { %v2811_v50 = vpop.f32.mrb[53].mxu1 }
 0x23e   :  { %v6643_v53 = vpop.f32.mrb[54].mxu1 }
 0x23f   :  { %v2814_v56 = vpop.f32.mrb[55].mxu1 }
 0x241   :  { %4555 = vmatmul.mubr.bf16.gmra.mrb[160].mxu1 %v5391_v51 }
 0x242   :  { %3474 = vmatmul.mubr.bf16.gmra.mrb[96].mxu0 %v5390_v54  ;;  %4558 = vmatprep.mubr.bf16.mxu1 %v5394_v55  ;;  %v5411_v54 = vld [vmem:[%s7226_s0 + $0x728] ss:$36 sps:$4 sm:$0xff]  }
 0x243   :  { %3481 = vmatprep.mubr.bf16.mxu0 %v5392_v58 }
 0x244   :  { %v6654_v61 = vpop.f32.mrb[56].mxu1 }
 0x245   :  { %v2819_v62 = vpop.f32.mrb[57].mxu1 }
 0x246   :  { %v6659_v3 = vpop.f32.mrb[58].mxu1  ;;  %v5414_v62 = vld [vmem:[%s7226_s0 + $0x770] ss:$36 sps:$4 sm:$0xff]  }
 0x247   :  { %v2822_v9 = vpop.f32.mrb[59].mxu1 }
 0x249   :  { %4559 = vmatmul.mubr.bf16.gmra.mrb[164].mxu1 %v5396_v1 }
 0x24a   :  { %3482 = vmatmul.mubr.bf16.gmra.mrb[100].mxu0 %v5395_v4  ;;  %4562 = vmatprep.mubr.bf16.mxu1 %v5399_v7  ;;  %v5412_v7 = vld [vmem:[%s7226_s0 + $0x844] ss:$36 sps:$4 sm:$0xff]  }
 0x24b   :  { %3489 = vmatprep.mubr.bf16.mxu0 %v5397_v10 }
 0x24c   :  { %v6670_v13 = vpop.f32.mrb[60].mxu1 }
 0x24d   :  { %v2827_v15 = vpop.f32.mrb[61].mxu1 }
 0x24e   :  { %v6675_v17 = vpop.f32.mrb[62].mxu1 }
 0x24f   :  { %v2830_v24 = vpop.f32.mrb[63].mxu1 }
 0x251   :  { %4563 = vmatmul.mubr.bf16.gmra.mrb[168].mxu1 %v5401_v16 }
 0x252   :  { %3490 = vmatmul.mubr.bf16.gmra.mrb[104].mxu0 %v5400_v20  ;;  %4566 = vmatprep.mubr.bf16.mxu1 %v5404_v21  ;;  %v5416_v20 = vld [vmem:[%s7226_s0 + $0x7b8] ss:$36 sps:$4 sm:$0xff]  }
 0x253   :  { %3497 = vmatprep.mubr.bf16.mxu0 %v5402_v25 }
 0x254   :  { %v6686_v26 = vpop.f32.mrb[64].mxu1 }
 0x255   :  { %v3283_v28 = vpop.f32.mrb[0].mxu0  ;;  %v2835_v30 = vpop.f32.mrb[65].mxu1 }
 0x256   :  { %v6692_v33 = vadd.f32 %v3283_v28, %v6120_v49  ;;  %v3285_v34 = vpop.f32.mrb[1].mxu0  ;;  %v6694_v35 = vpop.f32.mrb[66].mxu1  ;;  %v5419_v28 = vld [vmem:[%s7226_s0 + $0x800] ss:$36 sps:$4 sm:$0xff]  }
 0x257   :  { %v3286_v40 = vpop.f32.mrb[2].mxu0  ;;  %v2838_v42 = vpop.f32.mrb[67].mxu1  ;;  %v5417_v34 = vld [vmem:[%s7226_s0 + $0x88c] ss:$36 sps:$4 sm:$0xff]  }
 0x258   :  { %v6706_v49 = vadd.f32 %v3286_v40, %v6125_v52  ;;  %v3288_v45 = vpop.f32.mrb[3].mxu0  ;;  %v5410_v52 = vld [vmem:[%s7226_s0 + $0x7f8] ss:$36 sps:$4 sm:$0xff]  }
 0x259   :  { %4567 = vmatmul.mubr.bf16.gmra.mrb[172].mxu1 %v5406_v31 }
 0x25a   :  { %3498 = vmatmul.mubr.bf16.gmra.mrb[108].mxu0 %v5405_v37  ;;  %4570 = vmatprep.mubr.bf16.mxu1 %v5409_v5 }
 0x25b   :  { %3505 = vmatprep.mubr.bf16.mxu0 %v5407_v43  ;;  %v5421_v43 = vld [vmem:[%s7226_s0 + $0x848] ss:$36 sps:$4 sm:$0xff]  }
 0x25c   :  { %v6708_v46 = vpop.f32.mrb[68].mxu1 }
 0x25d   :  { %v3291_v50 = vpop.f32.mrb[4].mxu0  ;;  %v2843_v51 = vpop.f32.mrb[69].mxu1 }
 0x25e   :  { %v6714_v55 = vadd.f32 %v3291_v50, %v6136_v57  ;;  %v3293_v56 = vpop.f32.mrb[5].mxu0  ;;  %v6716_v58 = vpop.f32.mrb[70].mxu1 }
 0x25f   :  { %v3294_v1 = vpop.f32.mrb[6].mxu0  ;;  %v2846_v4 = vpop.f32.mrb[71].mxu1 }
 0x260   :  { %v6728_v57 = vadd.f32 %v3294_v1, %v6141_v60  ;;  %v3296_v9 = vpop.f32.mrb[7].mxu0  ;;  %v5415_v60 = vld [vmem:[%s7226_s0 + $0x840] ss:$36 sps:$4 sm:$0xff]  }
 0x261   :  { %4571 = vmatmul.mubr.bf16.gmra.mrb[176].mxu1 %v5411_v54  ;;  %v5424_v54 = vld [vmem:[%s7226_s0 + $0x890] ss:$36 sps:$4 sm:$0xff]  }
 0x262   :  { %3506 = vmatmul.mubr.bf16.gmra.mrb[112].mxu0 %v5410_v52  ;;  %4574 = vmatprep.mubr.bf16.mxu1 %v5414_v62  ;;  %v5422_v62 = vld [vmem:[%s7226_s0 + $0x8d4] ss:$36 sps:$4 sm:$0xff]  }
 0x263   :  { %3513 = vmatprep.mubr.bf16.mxu0 %v5412_v7 }
 0x264   :  { %v6730_v10 = vpop.f32.mrb[72].mxu1 }
 0x265   :  { %v3299_v15 = vpop.f32.mrb[8].mxu0  ;;  %v2851_v16 = vpop.f32.mrb[73].mxu1 }
 0x266   :  { %v6736_v21 = vadd.f32 %v3299_v15, %v6152_v2  ;;  %v3301_v24 = vpop.f32.mrb[9].mxu0  ;;  %v6738_v25 = vpop.f32.mrb[74].mxu1  ;;  %v5426_v15 = vld [vmem:[%s7226_s0 + $0x8d8] ss:$36 sps:$4 sm:$0xff]  }
 0x267   :  { %v3302_v30 = vpop.f32.mrb[10].mxu0  ;;  %v2854_v31 = vpop.f32.mrb[75].mxu1 }
 0x268   :  { %v6750_v2 = vadd.f32 %v3302_v30, %v6157_v6  ;;  %v3304_v37 = vpop.f32.mrb[11].mxu0  ;;  %v5420_v6 = vld [vmem:[%s7226_s0 + $0x888] ss:$36 sps:$4 sm:$0xff]  }
 0x269   :  { %4575 = vmatmul.mubr.bf16.gmra.mrb[180].mxu1 %v5416_v20 }
 0x26a   :  { %3514 = vmatmul.mubr.bf16.gmra.mrb[116].mxu0 %v5415_v60  ;;  %4578 = vmatprep.mubr.bf16.mxu1 %v5419_v28 }
 0x26b   :  { %3521 = vmatprep.mubr.bf16.mxu0 %v5417_v34 }
 0x26c   :  { %v6752_v5 = vpop.f32.mrb[76].mxu1 }
 0x26d   :  { %v3307_v40 = vpop.f32.mrb[12].mxu0  ;;  %v2859_v42 = vpop.f32.mrb[77].mxu1 }
 0x26e   :  { %v6758_v45 = vadd.f32 %v3307_v40, %v6168_v11  ;;  %v3309_v50 = vpop.f32.mrb[13].mxu0  ;;  %v6760_v51 = vpop.f32.mrb[78].mxu1 }
 0x26f   :  { %v3310_v56 = vpop.f32.mrb[14].mxu0  ;;  %v2862_v52 = vpop.f32.mrb[79].mxu1 }
 0x270   :  { %v6772_v11 = vadd.f32 %v3310_v56, %v6173_v14  ;;  %v3312_v1 = vpop.f32.mrb[15].mxu0  ;;  %v5425_v14 = vld [vmem:[%s7226_s0 + $0x8d0] ss:$36 sps:$4 sm:$0xff]  }
 0x271   :  { %4579 = vmatmul.mubr.bf16.gmra.mrb[184].mxu1 %v5421_v43 }
 0x272   :  { %3522 = vmatmul.mubr.bf16.gmra.mrb[120].mxu0 %v5420_v6  ;;  %4582 = vmatprep.mubr.bf16.mxu1 %v5424_v54 }
 0x273   :  { %3529 = vmatprep.mubr.bf16.mxu0 %v5422_v62 }
 0x274   :  { %v6774_v4 = vpop.f32.mrb[80].mxu1 }
 0x275   :  { %v3315_v7 = vpop.f32.mrb[16].mxu0  ;;  %v2867_v9 = vpop.f32.mrb[81].mxu1 }
 0x276   :  { %v6780_v16 = vadd.f32 %v3315_v7, %v6184_v19  ;;  %v3317_v20 = vpop.f32.mrb[17].mxu0  ;;  %v6782_v24 = vpop.f32.mrb[82].mxu1 }
 0x277   :  { %v3318_v60 = vpop.f32.mrb[18].mxu0  ;;  %v2870_v28 = vpop.f32.mrb[83].mxu1 }
 0x278   :  { %v6788_v30 = vadd.f32 %v3318_v60, %v6189_v22  ;;  %v3320_v31 = vpop.f32.mrb[19].mxu0 }
 0x279   :  { %4583 = vmatmul.mubr.bf16.gmra.mrb[188].mxu1 %v5426_v15 }
 0x27a   :  { %3530 = vmatmul.mubr.bf16.gmra.mrb[124].mxu0 %v5425_v14 }
 0x27c   :  { %v6790_v34 = vpop.f32.mrb[84].mxu1 }
 0x27d   :  { %v3323_v37 = vpop.f32.mrb[20].mxu0  ;;  %v2875_v19 = vpop.f32.mrb[85].mxu1 }
 0x27e   :  { %v6793_v40 = vadd.f32 %v3323_v37, %v6200_v27  ;;  %v3325_v42 = vpop.f32.mrb[21].mxu0  ;;  %v6795_v43 = vpop.f32.mrb[86].mxu1 }
 0x27f   :  { %v3326_v50 = vpop.f32.mrb[22].mxu0  ;;  %v2878_v6 = vpop.f32.mrb[87].mxu1 }
 0x280   :  { %v6798_v54 = vadd.f32 %v3326_v50, %v6205_v29  ;;  %v3328_v22 = vpop.f32.mrb[23].mxu0 }
 0x284   :  { %v6800_v56 = vpop.f32.mrb[88].mxu1 }
 0x285   :  { %v3331_v52 = vpop.f32.mrb[24].mxu0  ;;  %v2883_v62 = vpop.f32.mrb[89].mxu1 }
 0x286   :  { %v6803_v1 = vadd.f32 %v3331_v52, %v6223_v36  ;;  %v3333_v7 = vpop.f32.mrb[25].mxu0  ;;  %v6805_v9 = vpop.f32.mrb[90].mxu1 }
 0x287   :  { %v3334_v27 = vpop.f32.mrb[26].mxu0  ;;  %v2886_v15 = vpop.f32.mrb[91].mxu1 }
 0x288   :  { %v6808_v20 = vadd.f32 %v3334_v27, %v6228_v39  ;;  %v3336_v14 = vpop.f32.mrb[27].mxu0 }
 0x28c   :  { %v6810_v60 = vpop.f32.mrb[92].mxu1 }
 0x28d   :  { %v3339_v29 = vpop.f32.mrb[28].mxu0  ;;  %v2891_v28 = vpop.f32.mrb[93].mxu1 }
 0x28e   :  { %v6813_v31 = vadd.f32 %v3339_v29, %v6242_v44  ;;  %v3341_v37 = vpop.f32.mrb[29].mxu0  ;;  %v6815_v19 = vpop.f32.mrb[94].mxu1 }
 0x28f   :  { %v3342_v36 = vpop.f32.mrb[30].mxu0  ;;  %v2894_v42 = vpop.f32.mrb[95].mxu1 }
 0x290   :  { %v6818_v50 = vadd.f32 %v3342_v36, %v6250_v48  ;;  %v3344_v6 = vpop.f32.mrb[31].mxu0 }
 0x294   :  { %v6820_v22 = vpop.f32.mrb[96].mxu1 }
 0x295   :  { %v3347_v39 = vpop.f32.mrb[32].mxu0  ;;  %v2899_v52 = vpop.f32.mrb[97].mxu1 }
 0x296   :  { %v6823_v62 = vadd.f32 %v3347_v39, %v6558_v59  ;;  %v3349_v7 = vpop.f32.mrb[33].mxu0  ;;  %v6825_v27 = vpop.f32.mrb[98].mxu1 }
 0x297   :  { %7229 = vst [vmem:[#allocation2_spill] sm:$0xff] %v6825_v27  ;;  %v3350_v44 = vpop.f32.mrb[34].mxu0  ;;  %v2902_v15 = vpop.f32.mrb[99].mxu1 }
 0x298   :  { %v6828_v14 = vadd.f32 %v3350_v44, %v6563_v63  ;;  %v3352_v29 = vpop.f32.mrb[35].mxu0 }
 0x29c   :  { %v6830_v28 = vpop.f32.mrb[100].mxu1 }
 0x29d   :  { %7230 = vst [vmem:[#allocation3_spill] sm:$0xff] %v6830_v28  ;;  %v3355_v48 = vpop.f32.mrb[36].mxu0  ;;  %v2907_v37 = vpop.f32.mrb[101].mxu1 }
 0x29e   :  { %v6833_v36 = vadd.f32 %v3355_v48, %v6574_v8  ;;  %v3357_v42 = vpop.f32.mrb[37].mxu0  ;;  %v6835_v6 = vpop.f32.mrb[102].mxu1 }
 0x29f   :  { %7231 = vst [vmem:[#allocation4_spill] sm:$0xff] %v6835_v6  ;;  %v3358_v59 = vpop.f32.mrb[38].mxu0  ;;  %v2910_v39 = vpop.f32.mrb[103].mxu1 }
 0x2a0   :  { %v6838_v52 = vadd.f32 %v3358_v59, %v6579_v12  ;;  %v3360_v7 = vpop.f32.mrb[39].mxu0 }
 0x2a4   :  { %v6840_v15 = vpop.f32.mrb[104].mxu1 }
 0x2a5   :  { %7232 = vst [vmem:[#allocation5_spill] sm:$0xff] %v6840_v15  ;;  %v3363_v63 = vpop.f32.mrb[40].mxu0  ;;  %v2915_v44 = vpop.f32.mrb[105].mxu1 }
 0x2a6   :  { %v6843_v29 = vadd.f32 %v3363_v63, %v6590_v18  ;;  %v3365_v37 = vpop.f32.mrb[41].mxu0  ;;  %v6845_v28 = vpop.f32.mrb[106].mxu1 }
 0x2a7   :  { %7233 = vst [vmem:[#allocation6_spill] sm:$0xff] %v6845_v28  ;;  %v3366_v8 = vpop.f32.mrb[42].mxu0  ;;  %v2918_v48 = vpop.f32.mrb[107].mxu1 }
 0x2a8   :  { %v6848_v42 = vadd.f32 %v3366_v8, %v6595_v23  ;;  %v3368_v39 = vpop.f32.mrb[43].mxu0 }
 0x2ac   :  { %v6850_v6 = vpop.f32.mrb[108].mxu1 }
 0x2ad   :  { %7234 = vst [vmem:[#allocation7_spill] sm:$0xff] %v6850_v6  ;;  %v3371_v12 = vpop.f32.mrb[44].mxu0  ;;  %v2923_v59 = vpop.f32.mrb[109].mxu1 }
 0x2ae   :  { %v6853_v7 = vadd.f32 %v3371_v12, %v6606_v0  ;;  %v3373_v44 = vpop.f32.mrb[45].mxu0  ;;  %v6855_v15 = vpop.f32.mrb[110].mxu1 }
 0x2af   :  { %7235 = vst [vmem:[#allocation8_spill] sm:$0xff] %v6855_v15  ;;  %v3374_v18 = vpop.f32.mrb[46].mxu0  ;;  %v2926_v63 = vpop.f32.mrb[111].mxu1 }
 0x2b0   :  { %v6858_v37 = vadd.f32 %v3374_v18, %v6611_v32  ;;  %v3376_v48 = vpop.f32.mrb[47].mxu0 }
 0x2b4   :  { %v6860_v28 = vpop.f32.mrb[112].mxu1 }
 0x2b5   :  { %7236 = vst [vmem:[#allocation9_spill] sm:$0xff] %v6860_v28  ;;  %v3379_v23 = vpop.f32.mrb[48].mxu0  ;;  %v2931_v8 = vpop.f32.mrb[113].mxu1 }
 0x2b6   :  { %v6863_v39 = vadd.f32 %v3379_v23, %v6622_v38  ;;  %v3381_v59 = vpop.f32.mrb[49].mxu0  ;;  %v6865_v6 = vpop.f32.mrb[114].mxu1 }
 0x2b7   :  { %7237 = vst [vmem:[#allocation10_spill] sm:$0xff] %v6865_v6  ;;  %v3382_v0 = vpop.f32.mrb[50].mxu0  ;;  %v2934_v12 = vpop.f32.mrb[115].mxu1 }
 0x2b8   :  { %v6868_v44 = vadd.f32 %v3382_v0, %v6627_v41  ;;  %v3384_v63 = vpop.f32.mrb[51].mxu0 }
 0x2bc   :  { %v6870_v15 = vpop.f32.mrb[116].mxu1 }
 0x2bd   :  { %7238 = vst [vmem:[#allocation11_spill] sm:$0xff] %v6870_v15  ;;  %v3387_v32 = vpop.f32.mrb[52].mxu0  ;;  %v2939_v18 = vpop.f32.mrb[117].mxu1 }
 0x2be   :  { %v6873_v48 = vadd.f32 %v3387_v32, %v6638_v47  ;;  %v3389_v8 = vpop.f32.mrb[53].mxu0  ;;  %v6875_v28 = vpop.f32.mrb[118].mxu1 }
 0x2bf   :  { %7239 = vst [vmem:[#allocation12_spill] sm:$0xff] %v6875_v28  ;;  %v3390_v38 = vpop.f32.mrb[54].mxu0  ;;  %v2942_v23 = vpop.f32.mrb[119].mxu1 }
 0x2c0   :  { %v6878_v59 = vadd.f32 %v3390_v38, %v6643_v53  ;;  %v3392_v12 = vpop.f32.mrb[55].mxu0 }
 0x2c4   :  { %v6880_v6 = vpop.f32.mrb[120].mxu1 }
 0x2c5   :  { %7240 = vst [vmem:[#allocation13_spill] sm:$0xff] %v6880_v6  ;;  %v3395_v41 = vpop.f32.mrb[56].mxu0  ;;  %v2947_v0 = vpop.f32.mrb[121].mxu1 }
 0x2c6   :  { %v6883_v63 = vadd.f32 %v3395_v41, %v6654_v61  ;;  %v3397_v18 = vpop.f32.mrb[57].mxu0  ;;  %v6885_v15 = vpop.f32.mrb[122].mxu1 }
 0x2c7   :  { %7241 = vst [vmem:[#allocation14_spill] sm:$0xff] %v6885_v15  ;;  %v3398_v47 = vpop.f32.mrb[58].mxu0  ;;  %v2950_v32 = vpop.f32.mrb[123].mxu1 }
 0x2c8   :  { %v6888_v8 = vadd.f32 %v3398_v47, %v6659_v3  ;;  %v3400_v23 = vpop.f32.mrb[59].mxu0 }
 0x2cc   :  { %v6890_v28 = vpop.f32.mrb[124].mxu1 }
 0x2cd   :  { %7242 = vst [vmem:[#allocation15_spill] sm:$0xff] %v6890_v28  ;;  %v3403_v53 = vpop.f32.mrb[60].mxu0  ;;  %v2955_v38 = vpop.f32.mrb[125].mxu1 }
 0x2ce   :  { %v6893_v12 = vadd.f32 %v3403_v53, %v6670_v13  ;;  %v3405_v0 = vpop.f32.mrb[61].mxu0  ;;  %v6895_v6 = vpop.f32.mrb[126].mxu1 }
 0x2cf   :  { %7243 = vst [vmem:[#allocation16_spill] sm:$0xff] %v6895_v6  ;;  %v3406_v61 = vpop.f32.mrb[62].mxu0  ;;  %v2958_v41 = vpop.f32.mrb[127].mxu1 }
 0x2d0   :  { %v6898_v18 = vadd.f32 %v3406_v61, %v6675_v17  ;;  %v3408_v32 = vpop.f32.mrb[63].mxu0 }
 0x2d4   :  { %v4524_v15 = vpop.f32.mrb[128].mxu1 }
 0x2d5   :  { %v3411_v3 = vpop.f32.mrb[64].mxu0  ;;  %v3581_v47 = vadd.f32 %v6714_v55, %v4524_v15  ;;  %v3572_v23 = vpop.f32.mrb[129].mxu1 }
 0x2d6   :  { %v6902_v28 = vadd.f32 %v3411_v3, %v6686_v26  ;;  %v3413_v38 = vpop.f32.mrb[65].mxu0  ;;  %v3573_v13 = vadd.f32 %v6692_v33, %v3572_v23  ;;  %v4525_v53 = vpop.f32.mrb[130].mxu1 }
 0x2d7   :  { %3829 = vst [vmem:[%s7227_s2 + $0x10] sm:$0xff] %v3581_v47  ;;  %v3414_v0 = vpop.f32.mrb[66].mxu0  ;;  %v3584_v17 = vadd.f32 %v6728_v57, %v4525_v53  ;;  %v3575_v61 = vpop.f32.mrb[131].mxu1  ;;  %v3962_v32 = vmul.f32 %v3581_v47, %v3581_v47 }
 0x2d8   :  { %7244 = vst [vmem:[#allocation17_spill] sm:$0xff] %v6902_v28  ;;  %3827 = vst [vmem:[%s7227_s2] sm:$0xff] %v3573_v13  ;;  %v6913_v55 = vadd.f32 %v3414_v0, %v6694_v35  ;;  %v3416_v26 = vpop.f32.mrb[67].mxu0  ;;  %v3576_v15 = vadd.f32 %v6706_v49, %v3575_v61  ;;  %v3960_v33 = vmul.f32 %v3573_v13, %v3573_v13 }
 0x2d9   :  { %3830 = vst [vmem:[%s7227_s2 + $0x18] sm:$0xff] %v3584_v17  ;;  %v3963_v35 = vmul.f32 %v3584_v17, %v3584_v17 }
 0x2da   :  { %7245 = vst [vmem:[#allocation18_spill] sm:$0xff] %v6913_v55  ;;  %3828 = vst [vmem:[%s7227_s2 + $0x8] sm:$0xff] %v3576_v15  ;;  %v3891_v57 = vadd.f32 %v3576_v15, %v3573_v13  ;;  %v3961_v41 = vmul.f32 %v3576_v15, %v3576_v15 }
 0x2dc   :  { %v3892_v3 = vadd.f32 %v3891_v57, %v3581_v47  ;;  %v4024_v23 = vadd.f32 %v3961_v41, %v3960_v33  ;;  %v4528_v38 = vpop.f32.mrb[132].mxu1 }
 0x2dd   :  { %v3419_v53 = vpop.f32.mrb[68].mxu0  ;;  %v3597_v0 = vadd.f32 %v6758_v45, %v4528_v38  ;;  %v3588_v49 = vpop.f32.mrb[133].mxu1 }
 0x2de   :  { %v4025_v61 = vadd.f32 %v4024_v23, %v3962_v32  ;;  %v6924_v26 = vadd.f32 %v3419_v53, %v6708_v46  ;;  %v3421_v6 = vpop.f32.mrb[69].mxu0  ;;  %v3589_v55 = vadd.f32 %v6736_v21, %v3588_v49  ;;  %v3893_v27 = vadd.f32 %v3892_v3, %v3584_v17  ;;  %v4529_v28 = vpop.f32.mrb[134].mxu1 }
 0x2df   :  { %3833 = vst [vmem:[%s7227_s2 + $0x30] sm:$0xff] %v3597_v0  ;;  %v3422_v47 = vpop.f32.mrb[70].mxu0  ;;  %v3600_v13 = vadd.f32 %v6772_v11, %v4529_v28  ;;  %v3591_v15 = vpop.f32.mrb[135].mxu1 }
 0x2e0   :  { %3831 = vst [vmem:[%s7227_s2 + $0x20] sm:$0xff] %v3589_v55  ;;  %v3894_v45 = vadd.f32 %v3893_v27, %v3589_v55  ;;  %v3964_v46 = vmul.f32 %v3589_v55, %v3589_v55  ;;  %v4026_v33 = vadd.f32 %v4025_v61, %v3963_v35  ;;  %v6935_v6 = vadd.f32 %v3422_v47, %v6716_v58  ;;  %v3424_v21 = vpop.f32.mrb[71].mxu0 }
 0x2e1   :  { %3834 = vst [vmem:[%s7227_s2 + $0x38] sm:$0xff] %v3600_v13  ;;  %v3592_v17 = vadd.f32 %v6750_v2, %v3591_v15  ;;  %v3966_v55 = vmul.f32 %v3597_v0, %v3597_v0  ;;  %v3967_v49 = vmul.f32 %v3600_v13, %v3600_v13 }
 0x2e2   :  { %v4027_v57 = vadd.f32 %v4026_v33, %v3964_v46 }
 0x2e3   :  { %3832 = vst [vmem:[%s7227_s2 + $0x28] sm:$0xff] %v3592_v17  ;;  %v3895_v11 = vadd.f32 %v3894_v45, %v3592_v17  ;;  %v3965_v28 = vmul.f32 %v3592_v17, %v3592_v17 }
 0x2e4   :  { %v4532_v27 = vpop.f32.mrb[136].mxu1 }
 0x2e5   :  { %v3896_v41 = vadd.f32 %v3895_v11, %v3597_v0  ;;  %v4028_v32 = vadd.f32 %v4027_v57, %v3965_v28  ;;  %v3427_v58 = vpop.f32.mrb[72].mxu0  ;;  %v3613_v3 = vadd.f32 %v6793_v40, %v4532_v27  ;;  %v3604_v23 = vpop.f32.mrb[137].mxu1 }
 0x2e6   :  { %v6946_v38 = vadd.f32 %v3427_v58, %v6730_v10  ;;  %v3429_v35 = vpop.f32.mrb[73].mxu0  ;;  %v3605_v2 = vadd.f32 %v6780_v16, %v3604_v23  ;;  %v4533_v53 = vpop.f32.mrb[138].mxu1 }
 0x2e7   :  { %v4029_v61 = vadd.f32 %v4028_v32, %v3966_v55  ;;  %3837 = vst [vmem:[%s7227_s2 + $0x50] sm:$0xff] %v3613_v3  ;;  %v3897_v47 = vadd.f32 %v3896_v41, %v3600_v13  ;;  %v3430_v0 = vpop.f32.mrb[74].mxu0  ;;  %v3616_v15 = vadd.f32 %v6798_v54, %v4533_v53  ;;  %v3607_v45 = vpop.f32.mrb[139].mxu1  ;;  %v3970_v11 = vmul.f32 %v3613_v3, %v3613_v3 }
 0x2e8   :  { %3835 = vst [vmem:[%s7227_s2 + $0x40] sm:$0xff] %v3605_v2  ;;  %v3968_v10 = vmul.f32 %v3605_v2, %v3605_v2  ;;  %v6957_v40 = vadd.f32 %v3430_v0, %v6738_v25  ;;  %v3432_v16 = vpop.f32.mrb[75].mxu0  ;;  %v3608_v46 = vadd.f32 %v6788_v30, %v3607_v45 }
 0x2e9   :  { %v3898_v33 = vadd.f32 %v3897_v47, %v3605_v2  ;;  %v4030_v21 = vadd.f32 %v4029_v61, %v3967_v49  ;;  %3838 = vst [vmem:[%s7227_s2 + $0x58] sm:$0xff] %v3616_v15  ;;  %v3971_v35 = vmul.f32 %v3616_v15, %v3616_v15 }
 0x2ea   :  { %3836 = vst [vmem:[%s7227_s2 + $0x48] sm:$0xff] %v3608_v46  ;;  %v3969_v54 = vmul.f32 %v3608_v46, %v3608_v46 }
 0x2eb   :  { %v4031_v13 = vadd.f32 %v4030_v21, %v3968_v10  ;;  %v3899_v17 = vadd.f32 %v3898_v33, %v3608_v46 }
 0x2ec   :  { %v4536_v57 = vpop.f32.mrb[140].mxu1 }
 0x2ed   :  { %v3900_v25 = vadd.f32 %v3899_v17, %v3613_v3  ;;  %v4032_v28 = vadd.f32 %v4031_v13, %v3969_v54  ;;  %v3435_v27 = vpop.f32.mrb[76].mxu0  ;;  %v3629_v30 = vadd.f32 %v6813_v31, %v4536_v57  ;;  %v3620_v55 = vpop.f32.mrb[141].mxu1 }
 0x2ee   :  { %v6968_v41 = vadd.f32 %v3435_v27, %v6752_v5  ;;  %v3437_v32 = vpop.f32.mrb[77].mxu0  ;;  %v3621_v58 = vadd.f32 %v6803_v1, %v3620_v55  ;;  %v4537_v23 = vpop.f32.mrb[142].mxu1 }
 0x2ef   :  { %v4033_v2 = vadd.f32 %v4032_v28, %v3970_v11  ;;  %3841 = vst [vmem:[%s7227_s2 + $0x70] sm:$0xff] %v3629_v30  ;;  %v3901_v53 = vadd.f32 %v3900_v25, %v3616_v15  ;;  %v3438_v3 = vpop.f32.mrb[78].mxu0  ;;  %v3632_v49 = vadd.f32 %v6818_v50, %v4537_v23  ;;  %v3623_v61 = vpop.f32.mrb[143].mxu1  ;;  %v3974_v46 = vmul.f32 %v3629_v30, %v3629_v30 }
 0x2f0   :  { %3839 = vst [vmem:[%s7227_s2 + $0x60] sm:$0xff] %v3621_v58  ;;  %v3972_v5 = vmul.f32 %v3621_v58, %v3621_v58  ;;  %v6979_v31 = vadd.f32 %v3438_v3, %v6760_v51  ;;  %v3440_v1 = vpop.f32.mrb[79].mxu0  ;;  %v3624_v47 = vadd.f32 %v6808_v20, %v3623_v61 }
 0x2f1   :  { %v3902_v0 = vadd.f32 %v3901_v53, %v3621_v58  ;;  %v4034_v45 = vadd.f32 %v4033_v2, %v3971_v35  ;;  %3842 = vst [vmem:[%s7227_s2 + $0x78] sm:$0xff] %v3632_v49  ;;  %v3975_v25 = vmul.f32 %v3632_v49, %v3632_v49 }
 0x2f2   :  { %3840 = vst [vmem:[%s7227_s2 + $0x68] sm:$0xff] %v3624_v47  ;;  %v3973_v50 = vmul.f32 %v3624_v47, %v3624_v47 }
 0x2f3   :  { %v4035_v15 = vadd.f32 %v4034_v45, %v3972_v5  ;;  %v3903_v10 = vadd.f32 %v3902_v0, %v3624_v47 }
 0x2f4   :  { %v4540_v16 = vpop.f32.mrb[144].mxu1 }
 0x2f5   :  { %v3904_v51 = vadd.f32 %v3903_v10, %v3629_v30  ;;  %v4036_v33 = vadd.f32 %v4035_v15, %v3973_v50  ;;  %v3443_v21 = vpop.f32.mrb[80].mxu0  ;;  %v3645_v20 = vadd.f32 %v6833_v36, %v4540_v16  ;;  %v3636_v54 = vpop.f32.mrb[145].mxu1 }
 0x2f6   :  { %v6990_v13 = vadd.f32 %v3443_v21, %v6774_v4  ;;  %v3445_v17 = vpop.f32.mrb[81].mxu0  ;;  %v3637_v57 = vadd.f32 %v6823_v62, %v3636_v54  ;;  %v4541_v11 = vpop.f32.mrb[146].mxu1 }
 0x2f7   :  { %v4037_v28 = vadd.f32 %v4036_v33, %v3974_v46  ;;  %3845 = vst [vmem:[%s7227_s2 + $0x90] sm:$0xff] %v3645_v20  ;;  %v3905_v27 = vadd.f32 %v3904_v51, %v3632_v49  ;;  %v3446_v30 = vpop.f32.mrb[82].mxu0  ;;  %v3648_v55 = vadd.f32 %v6838_v52, %v4541_v11  ;;  %v3639_v32 = vpop.f32.mrb[147].mxu1  ;;  %v3978_v49 = vmul.f32 %v3645_v20, %v3645_v20 }
 0x2f8   :  { %3843 = vst [vmem:[%s7227_s2 + $0x80] sm:$0xff] %v3637_v57  ;;  %v3976_v4 = vmul.f32 %v3637_v57, %v3637_v57  ;;  %v7001_v36 = vadd.f32 %v3446_v30, %v6782_v24  ;;  %v3448_v62 = vpop.f32.mrb[83].mxu0  ;;  %v3640_v58 = vadd.f32 %v6828_v14, %v3639_v32 }
 0x2f9   :  { %v3906_v23 = vadd.f32 %v3905_v27, %v3637_v57  ;;  %v4038_v35 = vadd.f32 %v4037_v28, %v3975_v25  ;;  %3846 = vst [vmem:[%s7227_s2 + $0x98] sm:$0xff] %v3648_v55  ;;  %v3979_v15 = vmul.f32 %v3648_v55, %v3648_v55 }
 0x2fa   :  { %3844 = vst [vmem:[%s7227_s2 + $0x88] sm:$0xff] %v3640_v58  ;;  %v3977_v52 = vmul.f32 %v3640_v58, %v3640_v58 }
 0x2fb   :  { %v4039_v2 = vadd.f32 %v4038_v35, %v3976_v4  ;;  %v3907_v53 = vadd.f32 %v3906_v23, %v3640_v58 }
 0x2fc   :  { %v4544_v3 = vpop.f32.mrb[148].mxu1 }
 0x2fd   :  { %v3908_v24 = vadd.f32 %v3907_v53, %v3645_v20  ;;  %v4040_v61 = vadd.f32 %v4039_v2, %v3977_v52  ;;  %v3451_v5 = vpop.f32.mrb[84].mxu0  ;;  %v3661_v14 = vadd.f32 %v6853_v7, %v4544_v3  ;;  %v3652_v1 = vpop.f32.mrb[149].mxu1 }
 0x2fe   :  { %v7012_v47 = vadd.f32 %v3451_v5, %v6790_v34  ;;  %v3453_v0 = vpop.f32.mrb[85].mxu0  ;;  %v3653_v45 = vadd.f32 %v6843_v29, %v3652_v1  ;;  %v4545_v50 = vpop.f32.mrb[150].mxu1 }
 0x2ff   :  { %v4041_v10 = vadd.f32 %v4040_v61, %v3978_v49  ;;  %3849 = vst [vmem:[%s7227_s2 + $0xb0] sm:$0xff] %v3661_v14  ;;  %v3909_v16 = vadd.f32 %v3908_v24, %v3648_v55  ;;  %v3454_v46 = vpop.f32.mrb[86].mxu0  ;;  %v3664_v51 = vadd.f32 %v6858_v37, %v4545_v50  ;;  %v3655_v33 = vpop.f32.mrb[151].mxu1  ;;  %v3982_v25 = vmul.f32 %v3661_v14, %v3661_v14 }
 0x300   :  { %3847 = vst [vmem:[%s7227_s2 + $0xa0] sm:$0xff] %v3653_v45  ;;  %v3980_v34 = vmul.f32 %v3653_v45, %v3653_v45  ;;  %v7023_v7 = vadd.f32 %v3454_v46, %v6795_v43  ;;  %v3456_v29 = vpop.f32.mrb[87].mxu0  ;;  %v3656_v21 = vadd.f32 %v6848_v42, %v3655_v33 }
 0x301   :  { %v3910_v20 = vadd.f32 %v3909_v16, %v3653_v45  ;;  %v4042_v54 = vadd.f32 %v4041_v10, %v3979_v15  ;;  %3850 = vst [vmem:[%s7227_s2 + $0xb8] sm:$0xff] %v3664_v51  ;;  %v3983_v58 = vmul.f32 %v3664_v51, %v3664_v51 }
 0x302   :  { %3848 = vst [vmem:[%s7227_s2 + $0xa8] sm:$0xff] %v3656_v21  ;;  %v3981_v37 = vmul.f32 %v3656_v21, %v3656_v21 }
 0x303   :  { %v4043_v17 = vadd.f32 %v4042_v54, %v3980_v34  ;;  %v3911_v57 = vadd.f32 %v3910_v20, %v3656_v21 }
 0x304   :  { %v4548_v11 = vpop.f32.mrb[152].mxu1 }
 0x305   :  { %v3912_v43 = vadd.f32 %v3911_v57, %v3661_v14  ;;  %v4044_v28 = vadd.f32 %v4043_v17, %v3981_v37  ;;  %v3459_v27 = vpop.f32.mrb[88].mxu0  ;;  %v3677_v42 = vadd.f32 %v6873_v48, %v4548_v11  ;;  %v3668_v30 = vpop.f32.mrb[153].mxu1 }
 0x306   :  { %v7034_v55 = vadd.f32 %v3459_v27, %v6800_v56  ;;  %v3461_v32 = vpop.f32.mrb[89].mxu0  ;;  %v3669_v4 = vadd.f32 %v6863_v39, %v3668_v30  ;;  %v4549_v62 = vpop.f32.mrb[154].mxu1 }
 0x307   :  { %v4045_v23 = vadd.f32 %v4044_v28, %v3982_v25  ;;  %3853 = vst [vmem:[%s7227_s2 + $0xd0] sm:$0xff] %v3677_v42  ;;  %v3913_v35 = vadd.f32 %v3912_v43, %v3664_v51  ;;  %v3462_v52 = vpop.f32.mrb[90].mxu0  ;;  %v3680_v2 = vadd.f32 %v6878_v59, %v4549_v62  ;;  %v3671_v53 = vpop.f32.mrb[155].mxu1  ;;  %v3986_v1 = vmul.f32 %v3677_v42, %v3677_v42 }
 0x308   :  { %3851 = vst [vmem:[%s7227_s2 + $0xc0] sm:$0xff] %v3669_v4  ;;  %v3984_v56 = vmul.f32 %v3669_v4, %v3669_v4  ;;  %v7045_v48 = vadd.f32 %v3462_v52, %v6805_v9  ;;  %v3464_v39 = vpop.f32.mrb[91].mxu0  ;;  %v3672_v3 = vadd.f32 %v6868_v44, %v3671_v53 }
 0x309   :  { %v3914_v49 = vadd.f32 %v3913_v35, %v3669_v4  ;;  %v4046_v24 = vadd.f32 %v4045_v23, %v3983_v58  ;;  %3854 = vst [vmem:[%s7227_s2 + $0xd8] sm:$0xff] %v3680_v2  ;;  %v3987_v51 = vmul.f32 %v3680_v2, %v3680_v2  ;;  %v7246_v4 = vld [vmem:[#allocation17_spill] sm:$0xff] }
 0x30a   :  { %3852 = vst [vmem:[%s7227_s2 + $0xc8] sm:$0xff] %v3672_v3  ;;  %v3985_v59 = vmul.f32 %v3672_v3, %v3672_v3 }
 0x30b   :  { %v4047_v61 = vadd.f32 %v4046_v24, %v3984_v56  ;;  %v3915_v5 = vadd.f32 %v3914_v49, %v3672_v3  ;;  %v7248_v49 = vld [vmem:[#allocation18_spill] sm:$0xff] }
 0x30c   :  { %v4552_v14 = vpop.f32.mrb[156].mxu1 }
 0x30d   :  { %v3916_v9 = vadd.f32 %v3915_v5, %v3677_v42  ;;  %v4048_v0 = vadd.f32 %v4047_v61, %v3985_v59  ;;  %v3467_v45 = vpop.f32.mrb[92].mxu0  ;;  %v3693_v44 = vadd.f32 %v6893_v12, %v4552_v14  ;;  %v3684_v50 = vpop.f32.mrb[157].mxu1 }
 0x30e   :  { %v7056_v15 = vadd.f32 %v3467_v45, %v6810_v60  ;;  %v3469_v10 = vpop.f32.mrb[93].mxu0  ;;  %v3685_v16 = vadd.f32 %v6883_v63, %v3684_v50  ;;  %v4553_v46 = vpop.f32.mrb[158].mxu1 }
 0x30f   :  { %v4049_v33 = vadd.f32 %v4048_v0, %v3986_v1  ;;  %3857 = vst [vmem:[%s7227_s2 + $0xf0] sm:$0xff] %v3693_v44  ;;  %v3917_v34 = vadd.f32 %v3916_v9, %v3680_v2  ;;  %v3470_v29 = vpop.f32.mrb[94].mxu0  ;;  %v3696_v21 = vadd.f32 %v6898_v18, %v4553_v46  ;;  %v3687_v20 = vpop.f32.mrb[159].mxu1  ;;  %v3990_v43 = vmul.f32 %v3693_v44, %v3693_v44 }
 0x310   :  { %3855 = vst [vmem:[%s7227_s2 + $0xe0] sm:$0xff] %v3685_v16  ;;  %v3988_v60 = vmul.f32 %v3685_v16, %v3685_v16  ;;  %v7067_v12 = vadd.f32 %v3470_v29, %v6815_v19  ;;  %v3472_v63 = vpop.f32.mrb[95].mxu0  ;;  %v3688_v54 = vadd.f32 %v6888_v8, %v3687_v20 }
 0x311   :  { %v3918_v37 = vadd.f32 %v3917_v34, %v3685_v16  ;;  %v4050_v17 = vadd.f32 %v4049_v33, %v3987_v51  ;;  %3858 = vst [vmem:[%s7227_s2 + $0xf8] sm:$0xff] %v3696_v21  ;;  %v3991_v23 = vmul.f32 %v3696_v21, %v3696_v21  ;;  %v7249_v16 = vld [vmem:[#allocation3_spill] sm:$0xff] }
 0x312   :  { %3856 = vst [vmem:[%s7227_s2 + $0xe8] sm:$0xff] %v3688_v54  ;;  %v3989_v18 = vmul.f32 %v3688_v54, %v3688_v54 }
 0x313   :  { %v4051_v57 = vadd.f32 %v4050_v17, %v3988_v60  ;;  %v3919_v11 = vadd.f32 %v3918_v37, %v3688_v54  ;;  %v7250_v37 = vld [vmem:[#allocation4_spill] sm:$0xff] }
 0x314   :  { %v4556_v25 = vpop.f32.mrb[160].mxu1 }
 0x315   :  { %v3920_v19 = vadd.f32 %v3919_v11, %v3693_v44  ;;  %v4052_v28 = vadd.f32 %v4051_v57, %v3989_v18  ;;  %v3475_v27 = vpop.f32.mrb[96].mxu0  ;;  %v3709_v8 = vadd.f32 %v6924_v26, %v4556_v25  ;;  %v3700_v42 = vpop.f32.mrb[161].mxu1  ;;  %v7247_v26 = vld [vmem:[#allocation2_spill] sm:$0xff] }
 0x316   :  { %v7078_v30 = vadd.f32 %v3475_v27, %v6820_v22  ;;  %v3477_v32 = vpop.f32.mrb[97].mxu0  ;;  %v3701_v62 = vadd.f32 %v7246_v4, %v3700_v42  ;;  %v4557_v58 = vpop.f32.mrb[162].mxu1  ;;  %v7251_v4 = vld [vmem:[#allocation5_spill] sm:$0xff] }
 0x317   :  { %v4053_v35 = vadd.f32 %v4052_v28, %v3990_v43  ;;  %3861 = vst [vmem:[%s7227_s2 + $0x110] sm:$0xff] %v3709_v8  ;;  %v3921_v52 = vadd.f32 %v3920_v19, %v3696_v21  ;;  %v3478_v2 = vpop.f32.mrb[98].mxu0  ;;  %v3712_v53 = vadd.f32 %v6935_v6, %v4557_v58  ;;  %v3703_v56 = vpop.f32.mrb[163].mxu1  ;;  %v3994_v9 = vmul.f32 %v3709_v8, %v3709_v8 }
 0x318   :  { %3859 = vst [vmem:[%s7227_s2 + $0x100] sm:$0xff] %v3701_v62  ;;  %v3992_v22 = vmul.f32 %v3701_v62, %v3701_v62  ;;  %v7089_v39 = vadd.f32 %v3478_v2, %v7247_v26  ;;  %v3480_v3 = vpop.f32.mrb[99].mxu0  ;;  %v3704_v24 = vadd.f32 %v7248_v49, %v3703_v56 }
 0x319   :  { %v3922_v59 = vadd.f32 %v3921_v52, %v3701_v62  ;;  %v4054_v61 = vadd.f32 %v4053_v35, %v3991_v23  ;;  %3862 = vst [vmem:[%s7227_s2 + $0x118] sm:$0xff] %v3712_v53  ;;  %v3995_v29 = vmul.f32 %v3712_v53, %v3712_v53  ;;  %v7252_v3 = vld [vmem:[#allocation6_spill] sm:$0xff] }
 0x31a   :  { %3860 = vst [vmem:[%s7227_s2 + $0x108] sm:$0xff] %v3704_v24  ;;  %v3993_v6 = vmul.f32 %v3704_v24, %v3704_v24 }
 0x31b   :  { %v4055_v5 = vadd.f32 %v4054_v61, %v3992_v22  ;;  %v3923_v14 = vadd.f32 %v3922_v59, %v3704_v24 }
 0x31c   :  { %v4560_v1 = vpop.f32.mrb[164].mxu1 }
 0x31d   :  { %v3924_v0 = vadd.f32 %v3923_v14, %v3709_v8  ;;  %v4056_v45 = vadd.f32 %v4055_v5, %v3993_v6  ;;  %v3483_v44 = vpop.f32.mrb[100].mxu0  ;;  %v3725_v50 = vadd.f32 %v6968_v41, %v4560_v1  ;;  %v3716_v10 = vpop.f32.mrb[165].mxu1 }
 0x31e   :  { %v7100_v46 = vadd.f32 %v3483_v44, %v7249_v16  ;;  %v3485_v51 = vpop.f32.mrb[101].mxu0  ;;  %v3717_v33 = vadd.f32 %v6946_v38, %v3716_v10  ;;  %v4561_v34 = vpop.f32.mrb[166].mxu1 }
 0x31f   :  { %v4057_v21 = vadd.f32 %v4056_v45, %v3994_v9  ;;  %3865 = vst [vmem:[%s7227_s2 + $0x130] sm:$0xff] %v3725_v50  ;;  %v3925_v20 = vadd.f32 %v3924_v0, %v3712_v53  ;;  %v3486_v60 = vpop.f32.mrb[102].mxu0  ;;  %v3728_v63 = vadd.f32 %v6979_v31, %v4561_v34  ;;  %v3719_v54 = vpop.f32.mrb[167].mxu1  ;;  %v3998_v28 = vmul.f32 %v3725_v50, %v3725_v50 }
 0x320   :  { %3863 = vst [vmem:[%s7227_s2 + $0x120] sm:$0xff] %v3717_v33  ;;  %v3996_v41 = vmul.f32 %v3717_v33, %v3717_v33  ;;  %v7111_v17 = vadd.f32 %v3486_v60, %v7250_v37  ;;  %v3488_v38 = vpop.f32.mrb[103].mxu0  ;;  %v3720_v18 = vadd.f32 %v6957_v40, %v3719_v54  ;;  %v7254_v54 = vld [vmem:[#allocation8_spill] sm:$0xff] }
 0x321   :  { %v3926_v57 = vadd.f32 %v3925_v20, %v3717_v33  ;;  %v4058_v11 = vadd.f32 %v4057_v21, %v3995_v29  ;;  %3866 = vst [vmem:[%s7227_s2 + $0x138] sm:$0xff] %v3728_v63  ;;  %v3999_v52 = vmul.f32 %v3728_v63, %v3728_v63 }
 0x322   :  { %3864 = vst [vmem:[%s7227_s2 + $0x128] sm:$0xff] %v3720_v18  ;;  %v3997_v31 = vmul.f32 %v3720_v18, %v3720_v18 }
 0x323   :  { %v4059_v25 = vadd.f32 %v4058_v11, %v3996_v41  ;;  %v3927_v43 = vadd.f32 %v3926_v57, %v3720_v18 }
 0x324   :  { %v4564_v19 = vpop.f32.mrb[168].mxu1 }
 0x325   :  { %v3928_v27 = vadd.f32 %v3927_v43, %v3725_v50  ;;  %v4060_v8 = vadd.f32 %v4059_v25, %v3997_v31  ;;  %v3491_v42 = vpop.f32.mrb[104].mxu0  ;;  %v3741_v40 = vadd.f32 %v7012_v47, %v4564_v19  ;;  %v3732_v32 = vpop.f32.mrb[169].mxu1  ;;  %v7253_v50 = vld [vmem:[#allocation7_spill] sm:$0xff] }
 0x326   :  { %v7122_v62 = vadd.f32 %v3491_v42, %v7251_v4  ;;  %v3493_v58 = vpop.f32.mrb[105].mxu0  ;;  %v3733_v23 = vadd.f32 %v6990_v13, %v3732_v32  ;;  %v4565_v35 = vpop.f32.mrb[170].mxu1 }
 0x327   :  { %v4061_v2 = vadd.f32 %v4060_v8, %v3998_v28  ;;  %3869 = vst [vmem:[%s7227_s2 + $0x150] sm:$0xff] %v3741_v40  ;;  %v3929_v53 = vadd.f32 %v3928_v27, %v3728_v63  ;;  %v3494_v56 = vpop.f32.mrb[106].mxu0  ;;  %v3744_v22 = vadd.f32 %v7023_v7, %v4565_v35  ;;  %v3735_v26 = vpop.f32.mrb[171].mxu1  ;;  %v4002_v1 = vmul.f32 %v3741_v40, %v3741_v40  ;;  %v7255_v8 = vld [vmem:[#allocation9_spill] sm:$0xff] }
 0x328   :  { %3867 = vst [vmem:[%s7227_s2 + $0x140] sm:$0xff] %v3733_v23  ;;  %v4000_v47 = vmul.f32 %v3733_v23, %v3733_v23  ;;  %v7133_v49 = vadd.f32 %v3494_v56, %v7252_v3  ;;  %v3496_v13 = vpop.f32.mrb[107].mxu0  ;;  %v3736_v24 = vadd.f32 %v7001_v36, %v3735_v26  ;;  %v7256_v56 = vld [vmem:[#allocation10_spill] sm:$0xff] }
 0x329   :  { %v3930_v59 = vadd.f32 %v3929_v53, %v3733_v23  ;;  %v4062_v61 = vadd.f32 %v4061_v2, %v3999_v52  ;;  %3870 = vst [vmem:[%s7227_s2 + $0x158] sm:$0xff] %v3744_v22  ;;  %v4003_v34 = vmul.f32 %v3744_v22, %v3744_v22 }
 0x32a   :  { %3868 = vst [vmem:[%s7227_s2 + $0x148] sm:$0xff] %v3736_v24  ;;  %v4001_v7 = vmul.f32 %v3736_v24, %v3736_v24 }
 0x32b   :  { %v4063_v6 = vadd.f32 %v4062_v61, %v4000_v47  ;;  %v3931_v5 = vadd.f32 %v3930_v59, %v3736_v24 }
 0x32c   :  { %v4568_v14 = vpop.f32.mrb[172].mxu1 }
 0x32d   :  { %v3932_v9 = vadd.f32 %v3931_v5, %v3741_v40  ;;  %v4064_v0 = vadd.f32 %v4063_v6, %v4001_v7  ;;  %v3499_v45 = vpop.f32.mrb[108].mxu0  ;;  %v3757_v36 = vadd.f32 %v7056_v15, %v4568_v14  ;;  %v3748_v44 = vpop.f32.mrb[173].mxu1 }
 0x32e   :  { %v4672_v10 = vadd.f32 %v3499_v45, %v7253_v50  ;;  %v3501_v16 = vpop.f32.mrb[109].mxu0  ;;  %v3749_v51 = vadd.f32 %v7034_v55, %v3748_v44  ;;  %v4569_v33 = vpop.f32.mrb[174].mxu1 }
 0x32f   :  { %v4065_v29 = vadd.f32 %v4064_v0, %v4002_v1  ;;  %3873 = vst [vmem:[%s7227_s2 + $0x170] sm:$0xff] %v3757_v36  ;;  %v3933_v21 = vadd.f32 %v3932_v9, %v3744_v22  ;;  %v3502_v20 = vpop.f32.mrb[110].mxu0  ;;  %v3760_v60 = vadd.f32 %v7067_v12, %v4569_v33  ;;  %v3751_v63 = vpop.f32.mrb[175].mxu1  ;;  %v4006_v25 = vmul.f32 %v3757_v36, %v3757_v36  ;;  %v7257_v1 = vld [vmem:[#allocation11_spill] sm:$0xff] }
 0x330   :  { %3871 = vst [vmem:[%s7227_s2 + $0x160] sm:$0xff] %v3749_v51  ;;  %v4004_v15 = vmul.f32 %v3749_v51, %v3749_v51  ;;  %v4673_v41 = vadd.f32 %v3502_v20, %v7254_v54  ;;  %v3504_v55 = vpop.f32.mrb[111].mxu0  ;;  %v3752_v37 = vadd.f32 %v7045_v48, %v3751_v63 }
 0x331   :  { %v3934_v38 = vadd.f32 %v3933_v21, %v3749_v51  ;;  %v4066_v18 = vadd.f32 %v4065_v29, %v4003_v34  ;;  %3874 = vst [vmem:[%s7227_s2 + $0x178] sm:$0xff] %v3760_v60  ;;  %v4007_v58 = vmul.f32 %v3760_v60, %v3760_v60  ;;  %v7258_v29 = vld [vmem:[#allocation12_spill] sm:$0xff] }
 0x332   :  { %3872 = vst [vmem:[%s7227_s2 + $0x168] sm:$0xff] %v3752_v37  ;;  %v4005_v12 = vmul.f32 %v3752_v37, %v3752_v37 }
 0x333   :  { %v4067_v57 = vadd.f32 %v4066_v18, %v4004_v15  ;;  %v3935_v11 = vadd.f32 %v3934_v38, %v3752_v37 }
 0x334   :  { %v4572_v31 = vpop.f32.mrb[176].mxu1 }
 0x335   :  { %v3936_v43 = vadd.f32 %v3935_v11, %v3757_v36  ;;  %v4068_v19 = vadd.f32 %v4067_v57, %v4005_v12  ;;  %v3507_v28 = vpop.f32.mrb[112].mxu0  ;;  %v3773_v48 = vadd.f32 %v7100_v46, %v4572_v31  ;;  %v3764_v27 = vpop.f32.mrb[177].mxu1  ;;  %v7259_v11 = vld [vmem:[#allocation13_spill] sm:$0xff] }
 0x336   :  { %v4674_v42 = vadd.f32 %v3507_v28, %v7255_v8  ;;  %v3509_v40 = vpop.f32.mrb[113].mxu0  ;;  %v3765_v32 = vadd.f32 %v7078_v30, %v3764_v27  ;;  %v4573_v4 = vpop.f32.mrb[178].mxu1 }
 0x337   :  { %v4069_v23 = vadd.f32 %v4068_v19, %v4006_v25  ;;  %3877 = vst [vmem:[%s7227_s2 + $0x190] sm:$0xff] %v3773_v48  ;;  %v3937_v35 = vadd.f32 %v3936_v43, %v3760_v60  ;;  %v3510_v52 = vpop.f32.mrb[114].mxu0  ;;  %v3776_v2 = vadd.f32 %v7111_v17, %v4573_v4  ;;  %v3767_v53 = vpop.f32.mrb[179].mxu1  ;;  %v4010_v61 = vmul.f32 %v3773_v48, %v3773_v48 }
 0x338   :  { %3875 = vst [vmem:[%s7227_s2 + $0x180] sm:$0xff] %v3765_v32  ;;  %v4008_v46 = vmul.f32 %v3765_v32, %v3765_v32  ;;  %v4675_v22 = vadd.f32 %v3510_v52, %v7256_v56  ;;  %v3512_v30 = vpop.f32.mrb[115].mxu0  ;;  %v3768_v26 = vadd.f32 %v7089_v39, %v3767_v53 }
 0x339   :  { %v3938_v47 = vadd.f32 %v3937_v35, %v3765_v32  ;;  %v4070_v3 = vadd.f32 %v4069_v23, %v4007_v58  ;;  %3878 = vst [vmem:[%s7227_s2 + $0x198] sm:$0xff] %v3776_v2  ;;  %v4011_v44 = vmul.f32 %v3776_v2, %v3776_v2  ;;  %v7260_v58 = vld [vmem:[#allocation14_spill] sm:$0xff] }
 0x33a   :  { %3876 = vst [vmem:[%s7227_s2 + $0x188] sm:$0xff] %v3768_v26  ;;  %v4009_v17 = vmul.f32 %v3768_v26, %v3768_v26 }
 0x33b   :  { %v4071_v13 = vadd.f32 %v4070_v3, %v4008_v46  ;;  %v3939_v24 = vadd.f32 %v3938_v47, %v3768_v26 }
 0x33c   :  { %v4576_v59 = vpop.f32.mrb[180].mxu1 }
 0x33d   :  { %v3940_v7 = vadd.f32 %v3939_v24, %v3773_v48  ;;  %v4072_v6 = vadd.f32 %v4071_v13, %v4009_v17  ;;  %v3515_v5 = vpop.f32.mrb[116].mxu0  ;;  %v3789_v14 = vadd.f32 %v4672_v10, %v4576_v59  ;;  %v3780_v39 = vpop.f32.mrb[181].mxu1 }
 0x33e   :  { %v4676_v9 = vadd.f32 %v3515_v5, %v7257_v1  ;;  %v3517_v0 = vpop.f32.mrb[117].mxu0  ;;  %v3781_v45 = vadd.f32 %v7122_v62, %v3780_v39  ;;  %v4577_v36 = vpop.f32.mrb[182].mxu1 }
 0x33f   :  { %v4073_v50 = vadd.f32 %v4072_v6, %v4010_v61  ;;  %3881 = vst [vmem:[%s7227_s2 + $0x1b0] sm:$0xff] %v3789_v14  ;;  %v3941_v16 = vadd.f32 %v3940_v7, %v3776_v2  ;;  %v3518_v51 = vpop.f32.mrb[118].mxu0  ;;  %v3792_v33 = vadd.f32 %v4673_v41, %v4577_v36  ;;  %v3783_v34 = vpop.f32.mrb[183].mxu1  ;;  %v4014_v37 = vmul.f32 %v3789_v14, %v3789_v14 }
 0x340   :  { %3879 = vst [vmem:[%s7227_s2 + $0x1a0] sm:$0xff] %v3781_v45  ;;  %v4012_v10 = vmul.f32 %v3781_v45, %v3781_v45  ;;  %v4677_v21 = vadd.f32 %v3518_v51, %v7258_v29  ;;  %v3520_v20 = vpop.f32.mrb[119].mxu0  ;;  %v3784_v62 = vadd.f32 %v7133_v49, %v3783_v34 }
 0x341   :  { %v3942_v60 = vadd.f32 %v3941_v16, %v3781_v45  ;;  %v4074_v63 = vadd.f32 %v4073_v50, %v4011_v44  ;;  %3882 = vst [vmem:[%s7227_s2 + $0x1b8] sm:$0xff] %v3792_v33  ;;  %v4015_v28 = vmul.f32 %v3792_v33, %v3792_v33  ;;  %v7262_v45 = vld [vmem:[#allocation16_spill] sm:$0xff] }
 0x342   :  { %3880 = vst [vmem:[%s7227_s2 + $0x1a8] sm:$0xff] %v3784_v62  ;;  %v4013_v15 = vmul.f32 %v3784_v62, %v3784_v62 }
 0x343   :  { %v4075_v54 = vadd.f32 %v4074_v63, %v4012_v10  ;;  %v3943_v41 = vadd.f32 %v3942_v60, %v3784_v62 }
 0x344   :  { %v4580_v55 = vpop.f32.mrb[184].mxu1 }
 0x345   :  { %v3944_v38 = vadd.f32 %v3943_v41, %v3789_v14  ;;  %v4076_v18 = vadd.f32 %v4075_v54, %v4013_v15  ;;  %v3523_v12 = vpop.f32.mrb[120].mxu0  ;;  %v3805_v57 = vadd.f32 %v4676_v9, %v4580_v55  ;;  %v3796_v49 = vpop.f32.mrb[185].mxu1 }
 0x346   :  { %v4678_v31 = vadd.f32 %v3523_v12, %v7259_v11  ;;  %v3525_v25 = vpop.f32.mrb[121].mxu0  ;;  %v3797_v43 = vadd.f32 %v4674_v42, %v3796_v49  ;;  %v4581_v19 = vpop.f32.mrb[186].mxu1 }
 0x347   :  { %v4077_v48 = vadd.f32 %v4076_v18, %v4014_v37  ;;  %3885 = vst [vmem:[%s7227_s2 + $0x1d0] sm:$0xff] %v3805_v57  ;;  %v3945_v27 = vadd.f32 %v3944_v38, %v3792_v33  ;;  %v3526_v8 = vpop.f32.mrb[122].mxu0  ;;  %v3808_v40 = vadd.f32 %v4677_v21, %v4581_v19  ;;  %v3799_v32 = vpop.f32.mrb[187].mxu1  ;;  %v4018_v26 = vmul.f32 %v3805_v57, %v3805_v57 }
 0x348   :  { %3883 = vst [vmem:[%s7227_s2 + $0x1c0] sm:$0xff] %v3797_v43  ;;  %v4016_v4 = vmul.f32 %v3797_v43, %v3797_v43  ;;  %v4679_v23 = vadd.f32 %v3526_v8, %v7260_v58  ;;  %v3528_v35 = vpop.f32.mrb[123].mxu0  ;;  %v3800_v42 = vadd.f32 %v4675_v22, %v3799_v32  ;;  %v7261_v22 = vld [vmem:[#allocation15_spill] sm:$0xff] }
 0x349   :  { %v3946_v52 = vadd.f32 %v3945_v27, %v3797_v43  ;;  %v4078_v2 = vadd.f32 %v4077_v48, %v4015_v28  ;;  %3886 = vst [vmem:[%s7227_s2 + $0x1d8] sm:$0xff] %v3808_v40  ;;  %v4019_v6 = vmul.f32 %v3808_v40, %v3808_v40 }
 0x34a   :  { %3884 = vst [vmem:[%s7227_s2 + $0x1c8] sm:$0xff] %v3800_v42  ;;  %v4017_v53 = vmul.f32 %v3800_v42, %v3800_v42 }
 0x34b   :  { %v4079_v46 = vadd.f32 %v4078_v2, %v4016_v4  ;;  %v3947_v56 = vadd.f32 %v3946_v52, %v3800_v42 }
 0x34c   :  { %v4584_v30 = vpop.f32.mrb[188].mxu1 }
 0x34d   :  { %v3948_v47 = vadd.f32 %v3947_v56, %v3805_v57  ;;  %v4080_v3 = vadd.f32 %v4079_v46, %v4017_v53  ;;  %v3531_v17 = vpop.f32.mrb[124].mxu0  ;;  %v3812_v13 = vpop.f32.mrb[189].mxu1 }
 0x34e   :  { %v4680_v24 = vadd.f32 %v3531_v17, %v7261_v22  ;;  %v3533_v59 = vpop.f32.mrb[125].mxu0  ;;  %v3813_v61 = vadd.f32 %v4678_v31, %v3812_v13  ;;  %v4585_v7 = vpop.f32.mrb[190].mxu1 }
 0x34f   :  { %v4081_v5 = vadd.f32 %v4080_v3, %v4018_v26  ;;  %v3949_v14 = vadd.f32 %v3948_v47, %v3808_v40  ;;  %v3534_v39 = vpop.f32.mrb[126].mxu0  ;;  %v3815_v1 = vpop.f32.mrb[191].mxu1 }
 0x350   :  { %v3821_v9 = vadd.f32 %v4680_v24, %v4584_v30  ;;  %3887 = vst [vmem:[%s7227_s2 + $0x1e0] sm:$0xff] %v3813_v61  ;;  %v4020_v0 = vmul.f32 %v3813_v61, %v3813_v61  ;;  %v4681_v36 = vadd.f32 %v3534_v39, %v7262_v45  ;;  %v3536_v44 = vpop.f32.mrb[127].mxu0  ;;  %v3816_v50 = vadd.f32 %v4679_v23, %v3815_v1 }
 0x351   :  { %v3950_v16 = vadd.f32 %v3949_v14, %v3813_v61  ;;  %v4082_v51 = vadd.f32 %v4081_v5, %v4019_v6 }
 0x352   :  { %3889 = vst [vmem:[%s7227_s2 + $0x1f0] sm:$0xff] %v3821_v9  ;;  %v3824_v33 = vadd.f32 %v4681_v36, %v4585_v7  ;;  %3888 = vst [vmem:[%s7227_s2 + $0x1e8] sm:$0xff] %v3816_v50  ;;  %v4021_v34 = vmul.f32 %v3816_v50, %v3816_v50  ;;  %v4022_v21 = vmul.f32 %v3821_v9, %v3821_v9 }
 0x353   :  { %v4083_v10 = vadd.f32 %v4082_v51, %v4020_v0  ;;  %v3951_v29 = vadd.f32 %v3950_v16, %v3816_v50 }
 0x354   :  { %3890 = vst [vmem:[%s7227_s2 + $0x1f8] sm:$0xff] %v3824_v33  ;;  %v4023_v60 = vmul.f32 %v3824_v33, %v3824_v33 }
 0x355   :  { %v3952_v20 = vadd.f32 %v3951_v29, %v3821_v9  ;;  %v4084_v62 = vadd.f32 %v4083_v10, %v4021_v34 }
 0x357   :  { %v3953_v63 = vadd.f32 %v3952_v20, %v3824_v33  ;;  %v4085_v15 = vadd.f32 %v4084_v62, %v4022_v21 }
 0x359   :  { %v3954_v54 = vrot.slane %v3953_v63, 4  ;;  %v4086_v41 = vadd.f32 %v4085_v15, %v4023_v60 }
 0x35b   :  { %v3955_v55 = vadd.f32 %v3954_v54, %v3953_v63  ;;  %v4087_v37 = vrot.slane %v4086_v41, 4 }
 0x35d   :  { %v3956_v38 = vrot.slane %v3955_v55, 2  ;;  %v4088_v18 = vadd.f32 %v4087_v37, %v4086_v41 }
 0x35f   :  { %v3957_v12 = vadd.f32 %v3956_v38, %v3955_v55  ;;  %v4089_v57 = vrot.slane %v4088_v18, 2 }
 0x361   :  { %v3958_v49 = vrot.slane %v3957_v12, 1  ;;  %v4090_v11 = vadd.f32 %v4089_v57, %v4088_v18 }
 0x363   :  { %v4091_v31 = vrot.slane %v4090_v11, 1  ;;  %v3959_v25 = vadd.f32 %v3958_v49, %v3957_v12 }
 0x365   :  { %v4092_v43 = vadd.f32 %v4091_v31, %v4090_v11 }
 0x367   :  { %v4094_v19 = vsel %vm4093_vm0, %v3959_v25, %v4092_v43 }
 0x368   :  { %v4096_v28 = vsel %vm4095_vm1, %v4094_v19, 0.0 }
 0x369   :  { %4097 = vst [vmem:[%s7228_s3] sm:$0xff] %v4096_v28 }

</bundles_post_ra>
